<compile_context>
chip_gen: v7x
topology: tpu7x:2x2x1
jax: 0.10.0
libtpu: 0.0.40
codegen_flags: <defaults>
</compile_context>

<pallas_src>
import functools

import jax
import jax.numpy as jnp
import numpy as np
from jax.experimental import pallas as pl
from jax.experimental.pallas import tpu as pltpu


def _sigmoid(x):
    # exp + approximate reciprocal both run on the EUP slot, keeping the divide
    # off the VALU (per perf review).
    return pl.reciprocal(1.0 + jnp.exp(-x), approx=True)


def _layer_step(cb_ref, c_ref, w_taps, b_ref, mask_ref, store_h,
                *, Wp, Ch, Npad, G, GS, CHUNK):
    """One ConvLSTM cell update (one layer, one timestep), chunked over pixels.

    cb_ref : (Ctot, Npad + 2*G) bf16   resident [input ; hidden] padded buffer.
             Lanes [G, G+Npad) hold the flattened (H+2, W+2) padded image; the G
             guard lanes on each side are permanently zero so every 3x3 tap window
             stays in bounds.
    c_ref  : (Ch, Npad) f32            resident cell state.
    w_taps : (9, 4*GS, Ctot) bf16      per-tap conv weights (gate rows 8-aligned).
    b_ref  : (4*GS, 1) f32             conv bias (only live rows are read).
    mask_ref : (1, Npad) f32           1.0 at interior pixels, 0.0 on the border.
    store_h(cs, n, h_f32): stages the new masked hidden chunk into a buffer this
             layer's conv never reads this timestep (no chunk-halo RAW hazard).
    """
    b_gate = [b_ref[g * GS:g * GS + Ch] for g in range(4)]      # (Ch, 1) f32 each
    n_chunks = (Npad + CHUNK - 1) // CHUNK
    # TODO(synk): switch to lax.fori_loop over the full chunks (+ python tail) if the
    # real-size chunk count makes this unrolled loop too large.
    for cidx in range(n_chunks):
        cs = cidx * CHUNK
        n = min(CHUNK, Npad - cs)
        base = G + cs
        # 3x3 'same' conv for this pixel chunk: 9 tap dots accumulated in f32
        # (no materialized im2col — windows feed the MXU directly).
        acc = None
        for tap in range(9):
            ky, kx = tap // 3, tap % 3
            off = base + (ky - 1) * Wp + (kx - 1)                # static, >= 0
            part = jnp.dot(w_taps[tap], cb_ref[:, off:off + n],
                           preferred_element_type=jnp.float32)
            acc = part if acc is None else acc + part

        # Gates: bias added per-gate on the live rows only (the 12 padded rows of
        # the 4*GS accumulator are never touched).
        i = _sigmoid(acc[0:Ch] + b_gate[0])
        f = _sigmoid(acc[GS:GS + Ch] + b_gate[1])
        o = _sigmoid(acc[2 * GS:2 * GS + Ch] + b_gate[2])
        g = jnp.tanh(acc[3 * GS:3 * GS + Ch] + b_gate[3])

        c_prev = c_ref[:, cs:cs + n]
        c_new = f * c_prev + i * g
        # NOTE: border lanes of c accumulate garbage; benign because c is only used
        # elementwise and h is masked before re-entering the conv.
        c_ref[:, cs:cs + n] = c_new

        h_new = (o * jnp.tanh(c_new)) * mask_ref[:, cs:cs + n]   # float mask multiply
        store_h(cs, n, h_new)


def _convlstm_kernel(x_ref, w0_ref, b0_ref, w1_ref, b1_ref, mask_ref, y_ref,
                     cb0_ref, cb1_ref, c0_ref, c1_ref,
                     *, Wp, Cin, Ch, Npad, G, GS, CHUNK):
    t = pl.program_id(0)

    @pl.when(t == 0)
    def _():
        # Zero once: guard lanes + padded border stay zero forever; states start at 0.
        cb0_ref[...] = jnp.zeros_like(cb0_ref)
        cb1_ref[...] = jnp.zeros_like(cb1_ref)
        c0_ref[...] = jnp.zeros_like(c0_ref)
        c1_ref[...] = jnp.zeros_like(c1_ref)

    # Stage this timestep's (pre-padded, lane-dense, bf16) input into the combined
    # buffer; the previous h0 already sits in the hidden rows.
    cb0_ref[0:Cin, G:G + Npad] = x_ref[0]

    w0_taps = w0_ref[...]                     # tiny; hoisted out of the chunk loops
    w1_taps = w1_ref[...]

    common = dict(Wp=Wp, Ch=Ch, Npad=Npad, G=G, GS=GS, CHUNK=CHUNK)

    # Layer 0: new h0 chunks are staged into cb1's *input* rows (layer 0's conv never
    # reads cb1 -> no chunk-boundary hazard), then committed to cb0's hidden rows.
    def store_h0(cs, n, h):
        cb1_ref[0:Ch, G + cs:G + cs + n] = h.astype(cb1_ref.dtype)

    _layer_step(cb0_ref, c0_ref, w0_taps, b0_ref, mask_ref, store_h0, **common)
    cb0_ref[Cin:Cin + Ch, G:G + Npad] = cb1_ref[0:Ch, G:G + Npad]   # h0 for t+1

    # Layer 1: new h1 chunks go straight to the lane-dense output block (never read
    # by layer 1's conv), then committed to cb1's resident hidden rows afterwards.
    def store_h1(cs, n, h):
        y_ref[0, :, cs:cs + n] = h

    _layer_step(cb1_ref, c1_ref, w1_taps, b1_ref, mask_ref, store_h1, **common)
    cb1_ref[Ch:2 * Ch, G:G + Npad] = y_ref[0].astype(cb1_ref.dtype)  # h1 for t+1


def convlstm_model_forward(noisy, w0, b0, w1, b1, *, pixel_chunk=16384):
    """Pallas implementation of Convlstm_model.forward.

    noisy : (T, Cin, H, W) float32   (PyTorch NCHW per timestep; batch of 1 implied)
    w0,w1 : (4*Ch, Cin_l+Ch, 3, 3)   PyTorch OIHW conv weights for layer 0 / 1
    b0,b1 : (4*Ch,)
    returns (T, Ch, H, W) float32    (== torch .view(-1, 5, H, W))
    """
    T, Cin, H, W = noisy.shape
    Ch = 5
    Hp, Wp = H + 2, W + 2
    Npad = Hp * Wp
    G = ((Wp + 1 + 127) // 128) * 128      # 128-aligned guard width, >= Wp+1
    GS = 8                                 # 8-aligned sublane stride between gates
    CHUNK = max(128, (pixel_chunk // 128) * 128)
    Ctot0, Ctot1 = Cin + Ch, 2 * Ch
    Lpad = Npad + 2 * G

    # Input: NCHW -> zero-padded, flattened, lane-dense, bf16 (T, Cin, Npad).
    x = noisy.astype(jnp.float32)
    x_pad = jnp.pad(x, ((0, 0), (0, 0), (1, 1), (1, 1))).reshape(T, Cin, Npad)
    x_pad = x_pad.astype(jnp.bfloat16)

    def prep(w, b):
        # OIHW (4Ch, Ctot, 3, 3) -> (9, 4*GS, Ctot) bf16: tap-major, gate rows
        # 8-aligned so acc can be sliced per-gate without sublane shuffles.
        Ctot = w.shape[1]
        w9 = jnp.transpose(w.astype(jnp.float32), (2, 3, 0, 1)).reshape(9, 4 * Ch, Ctot)
        wz = jnp.zeros((9, 4 * GS, Ctot), jnp.float32)
        bz = jnp.zeros((4 * GS, 1), jnp.float32)
        bf = b.astype(jnp.float32)
        for gate in range(4):
            wz = wz.at[:, gate * GS:gate * GS + Ch, :].set(
                w9[:, gate * Ch:(gate + 1) * Ch, :])
            bz = bz.at[gate * GS:gate * GS + Ch, 0].set(bf[gate * Ch:(gate + 1) * Ch])
        return wz.astype(jnp.bfloat16), bz

    w0_t, b0_2d = prep(w0, b0)
    w1_t, b1_2d = prep(w1, b1)

    # 1.0 at interior pixels of the flattened padded image, 0.0 on the border.
    valid = (jnp.zeros((Hp, Wp), jnp.float32)
             .at[1:H + 1, 1:W + 1].set(1.0).reshape(1, Npad))

    kernel = functools.partial(_convlstm_kernel, Wp=Wp, Cin=Cin, Ch=Ch,
                               Npad=Npad, G=G, GS=GS, CHUNK=CHUNK)

    y = pl.pallas_call(
        kernel,
        out_shape=jax.ShapeDtypeStruct((T, Ch, Npad), jnp.float32),
        grid_spec=pltpu.PrefetchScalarGridSpec(
            num_scalar_prefetch=0,
            grid=(T,),
            in_specs=[
                pl.BlockSpec((1, Cin, Npad), lambda t: (t, 0, 0)),
                pl.BlockSpec((9, 4 * GS, Ctot0), lambda t: (0, 0, 0)),  # grid-invariant
                pl.BlockSpec((4 * GS, 1), lambda t: (0, 0)),
                pl.BlockSpec((9, 4 * GS, Ctot1), lambda t: (0, 0, 0)),
                pl.BlockSpec((4 * GS, 1), lambda t: (0, 0)),
                pl.BlockSpec((1, Npad), lambda t: (0, 0)),
            ],
            out_specs=pl.BlockSpec((1, Ch, Npad), lambda t: (t, 0, 0)),
            scratch_shapes=[
                pltpu.VMEM((Cin + Ch, Lpad), jnp.bfloat16),  # cb0 = [x ; h0], resident
                pltpu.VMEM((2 * Ch, Lpad), jnp.bfloat16),    # cb1 = [h0; h1], resident
                pltpu.VMEM((Ch, Npad), jnp.float32),         # c0
                pltpu.VMEM((Ch, Npad), jnp.float32),         # c1
            ],
        ),
        compiler_params=pltpu.CompilerParams(
            dimension_semantics=("arbitrary",),   # hard recurrence over time
            # Resident bf16 state + one f32 accumulator chunk fits comfortably even at
            # the module's hardcoded 1025x200 size (~30 MB); 64 MiB is within every
            # generation's physical VMEM (raise toward ~100 MiB on v5e/v6e to allow
            # bigger pixel chunks there).
            vmem_limit_bytes=64 * 1024 * 1024,
        ),
    )(x_pad, w0_t, b0_2d, w1_t, b1_2d, valid)

    # TODO(synk): on v7x, split the padded rows across the two TensorCores
    # (pl.core_map over a tensorcore mesh) with a per-timestep 1-row halo exchange
    # through VMEM_SHARED + a REGULAR-semaphore barrier; this version is single-core.

    # Crop the padding and go back to NCHW; torch's .view(-1, 5, H, W) is identity.
    out = y.reshape(T, Ch, Hp, Wp)[:, :, 1:H + 1, 1:W + 1]
    return out.reshape(-1, Ch, H, W)


def reference_forward(noisy, w0, b0, w1, b1):
    """Pure-JAX f32 reference matching the PyTorch module exactly (NCHW conv)."""
    T, Cin, H, W = noisy.shape
    Ch = 5

    def cell(x, h, c, w, b):
        comb = jnp.concatenate([x, h], axis=1)  # (1, Cin+Ch, H, W)
        conv = jax.lax.conv_general_dilated(
            comb, w, window_strides=(1, 1), padding=((1, 1), (1, 1)),
            dimension_numbers=("NCHW", "OIHW", "NCHW"))
        conv = conv + b[None, :, None, None]
        i = jax.nn.sigmoid(conv[:, 0:Ch])
        f = jax.nn.sigmoid(conv[:, Ch:2 * Ch])
        o = jax.nn.sigmoid(conv[:, 2 * Ch:3 * Ch])
        g = jnp.tanh(conv[:, 3 * Ch:4 * Ch])
        c_next = f * c + i * g
        h_next = o * jnp.tanh(c_next)
        return h_next, c_next

    z = jnp.zeros((1, Ch, H, W), jnp.float32)
    h0, c0, h1, c1 = z, z, z, z
    outs = []
    for t in range(T):
        x_t = noisy[t:t + 1]
        h0, c0 = cell(x_t, h0, c0, w0, b0)
        h1, c1 = cell(h0, h1, c1, w1, b1)
        outs.append(h1[0])
    return jnp.stack(outs, axis=0).reshape(-1, Ch, H, W)


if __name__ == "__main__":
    T, Cin, Ch, H, W = 4, 5, 5, 16, 16  # small shapes (module hardcodes 1025x200 view)
    key = jax.random.PRNGKey(0)
    k1, k2, k3, k4, k5 = jax.random.split(key, 5)

    noisy = jax.random.normal(k1, (T, Cin, H, W), jnp.float32)
    # Deterministic synthetic parameters (shapes from ConvLSTMCell.__init__).
    w0 = jax.random.uniform(k2, (4 * Ch, Cin + Ch, 3, 3), jnp.float32, -0.1, 0.1)
    b0 = jax.random.uniform(k3, (4 * Ch,), jnp.float32, -0.1, 0.1)
    w1 = jax.random.uniform(k4, (4 * Ch, Ch + Ch, 3, 3), jnp.float32, -0.1, 0.1)
    b1 = jax.random.uniform(k5, (4 * Ch,), jnp.float32, -0.1, 0.1)

    # pixel_chunk=128 forces the multi-chunk path even at this tiny spatial size so
    # the chunked/staged-commit logic is exercised and validated against the ref.
    out = convlstm_model_forward(noisy, w0, b0, w1, b1, pixel_chunk=128)
    out = jax.block_until_ready(out)

    ref = reference_forward(noisy, w0, b0, w1, b1)
    assert out.shape == ref.shape == (T, Ch, H, W), (out.shape, ref.shape)
    # bf16 recurrent state / weights + approximate-reciprocal sigmoid => looser
    # tolerance than the previous all-f32 version (per perf review).
    np.testing.assert_allclose(np.asarray(out), np.asarray(ref), atol=3e-2, rtol=3e-2)

    print("KERNEL_OK")
</pallas_src>

<mosaic_0001>
module attributes {stable_mosaic.version = 11 : i64} {
  func.func @_convlstm_kernel(%arg0: i32, %arg1: memref<1x5x324xbf16, #tpu.memory_space<vmem>>, %arg2: memref<9x32x10xbf16, #tpu.memory_space<vmem>>, %arg3: memref<32x1xf32, #tpu.memory_space<vmem>>, %arg4: memref<9x32x10xbf16, #tpu.memory_space<vmem>>, %arg5: memref<32x1xf32, #tpu.memory_space<vmem>>, %arg6: memref<1x324xf32, #tpu.memory_space<vmem>>, %arg7: memref<1x5x324xf32, #tpu.memory_space<vmem>>, %arg8: memref<10x580xbf16, #tpu.memory_space<vmem>>, %arg9: memref<10x580xbf16, #tpu.memory_space<vmem>>, %arg10: memref<5x324xf32, #tpu.memory_space<vmem>>, %arg11: memref<5x324xf32, #tpu.memory_space<vmem>>) attributes {dimension_semantics = [#tpu.dimension_semantics<arbitrary>], iteration_bounds = array<i64: 4>, scalar_prefetch = 0 : i64, scratch_operands = 4 : i64, tpu.core_type = #tpu.core_type<tc>, window_params = [{transform_indices = @transform_0, window_bounds = array<i64: 1, 5, 324>}, {pipeline_mode = #tpu.pipeline_mode<synchronous>, transform_indices = @transform_1, window_bounds = array<i64: 9, 32, 10>}, {pipeline_mode = #tpu.pipeline_mode<synchronous>, transform_indices = @transform_2, window_bounds = array<i64: 32, 1>}, {pipeline_mode = #tpu.pipeline_mode<synchronous>, transform_indices = @transform_3, window_bounds = array<i64: 9, 32, 10>}, {pipeline_mode = #tpu.pipeline_mode<synchronous>, transform_indices = @transform_4, window_bounds = array<i64: 32, 1>}, {pipeline_mode = #tpu.pipeline_mode<synchronous>, transform_indices = @transform_5, window_bounds = array<i64: 1, 324>}, {transform_indices = @transform_6, window_bounds = array<i64: 1, 5, 324>}]} {
    %c0_i32 = arith.constant 0 : i32
    %0 = arith.cmpi eq, %arg0, %c0_i32 : i32
    %1 = arith.extui %0 : i1 to i32
    %c0_i32_0 = arith.constant 0 : i32
    %2 = arith.cmpi ne, %1, %c0_i32_0 : i32
    scf.if %2 {
      %cst_253 = arith.constant 0.000000e+00 : bf16
      %547 = vector.broadcast %cst_253 : bf16 to vector<10x580xbf16>
      %c0_254 = arith.constant 0 : index
      %c0_255 = arith.constant 0 : index
      %548 = vector.load %arg8[%c0_254, %c0_255] : memref<10x580xbf16, #tpu.memory_space<vmem>>, vector<10x580xbf16>
      tpu.vector_store %arg8[%c0_254, %c0_255], %547 {strides = array<i32>} : memref<10x580xbf16, #tpu.memory_space<vmem>>, vector<10x580xbf16>,
      %cst_256 = arith.constant 0.000000e+00 : bf16
      %549 = vector.broadcast %cst_256 : bf16 to vector<10x580xbf16>
      %c0_257 = arith.constant 0 : index
      %c0_258 = arith.constant 0 : index
      %550 = vector.load %arg9[%c0_257, %c0_258] : memref<10x580xbf16, #tpu.memory_space<vmem>>, vector<10x580xbf16>
      tpu.vector_store %arg9[%c0_257, %c0_258], %549 {strides = array<i32>} : memref<10x580xbf16, #tpu.memory_space<vmem>>, vector<10x580xbf16>,
      %cst_259 = arith.constant 0.000000e+00 : f32
      %551 = vector.broadcast %cst_259 : f32 to vector<5x324xf32>
      %c0_260 = arith.constant 0 : index
      %c0_261 = arith.constant 0 : index
      %552 = vector.load %arg10[%c0_260, %c0_261] : memref<5x324xf32, #tpu.memory_space<vmem>>, vector<5x324xf32>
      tpu.vector_store %arg10[%c0_260, %c0_261], %551 {strides = array<i32>} : memref<5x324xf32, #tpu.memory_space<vmem>>, vector<5x324xf32>,
      %cst_262 = arith.constant 0.000000e+00 : f32
      %553 = vector.broadcast %cst_262 : f32 to vector<5x324xf32>
      %c0_263 = arith.constant 0 : index
      %c0_264 = arith.constant 0 : index
      %554 = vector.load %arg11[%c0_263, %c0_264] : memref<5x324xf32, #tpu.memory_space<vmem>>, vector<5x324xf32>
      tpu.vector_store %arg11[%c0_263, %c0_264], %553 {strides = array<i32>} : memref<5x324xf32, #tpu.memory_space<vmem>>, vector<5x324xf32>,
    } else {
    }
    %c0 = arith.constant 0 : index
    %c0_1 = arith.constant 0 : index
    %c0_2 = arith.constant 0 : index
    %3 = vector.load %arg1[%c0, %c0_1, %c0_2] : memref<1x5x324xbf16, #tpu.memory_space<vmem>>, vector<1x5x324xbf16>
    %4 = vector.shape_cast %3 : vector<1x5x324xbf16> to vector<5x324xbf16>
    %c0_3 = arith.constant 0 : index
    %c128 = arith.constant 128 : index
    %5 = vector.load %arg8[%c0_3, %c128] : memref<10x580xbf16, #tpu.memory_space<vmem>>, vector<5x324xbf16>
    tpu.vector_store %arg8[%c0_3, %c128], %4 {strides = array<i32>} : memref<10x580xbf16, #tpu.memory_space<vmem>>, vector<5x324xbf16>,
    %c0_4 = arith.constant 0 : index
    %c0_5 = arith.constant 0 : index
    %c0_6 = arith.constant 0 : index
    %6 = vector.load %arg2[%c0_4, %c0_5, %c0_6] : memref<9x32x10xbf16, #tpu.memory_space<vmem>>, vector<9x32x10xbf16>
    %c0_7 = arith.constant 0 : index
    %c0_8 = arith.constant 0 : index
    %c0_9 = arith.constant 0 : index
    %7 = vector.load %arg4[%c0_7, %c0_8, %c0_9] : memref<9x32x10xbf16, #tpu.memory_space<vmem>>, vector<9x32x10xbf16>
    %c0_10 = arith.constant 0 : index
    %c0_11 = arith.constant 0 : index
    %8 = vector.load %arg3[%c0_10, %c0_11] : memref<32x1xf32, #tpu.memory_space<vmem>>, vector<5x1xf32>
    %c8 = arith.constant 8 : index
    %c0_12 = arith.constant 0 : index
    %9 = vector.load %arg3[%c8, %c0_12] : memref<32x1xf32, #tpu.memory_space<vmem>>, vector<5x1xf32>
    %c16 = arith.constant 16 : index
    %c0_13 = arith.constant 0 : index
    %10 = vector.load %arg3[%c16, %c0_13] : memref<32x1xf32, #tpu.memory_space<vmem>>, vector<5x1xf32>
    %c24 = arith.constant 24 : index
    %c0_14 = arith.constant 0 : index
    %11 = vector.load %arg3[%c24, %c0_14] : memref<32x1xf32, #tpu.memory_space<vmem>>, vector<5x1xf32>
    %12 = vector.extract_strided_slice %6 {offsets = [0, 0, 0], sizes = [1, 32, 10], strides = [1, 1, 1]} : vector<9x32x10xbf16> to vector<1x32x10xbf16>
    %13 = vector.shape_cast %12 : vector<1x32x10xbf16> to vector<32x10xbf16>
    %c0_15 = arith.constant 0 : index
    %c109 = arith.constant 109 : index
    %14 = vector.load %arg8[%c0_15, %c109] : memref<10x580xbf16, #tpu.memory_space<vmem>>, vector<10x128xbf16>
    %cst = arith.constant dense<0.000000e+00> : vector<32x128xf32>
    %15 = tpu.matmul %13, %14, %cst {dimension_numbers = #tpu.dot_dimension_numbers<[1], [0], [0], [1], [0, 0, 1, 1], [], []>} : vector<32x10xbf16>, vector<10x128xbf16>, vector<32x128xf32> -> vector<32x128xf32>
    %16 = vector.extract_strided_slice %6 {offsets = [1, 0, 0], sizes = [1, 32, 10], strides = [1, 1, 1]} : vector<9x32x10xbf16> to vector<1x32x10xbf16>
    %17 = vector.shape_cast %16 : vector<1x32x10xbf16> to vector<32x10xbf16>
    %c0_16 = arith.constant 0 : index
    %c110 = arith.constant 110 : index
    %18 = vector.load %arg8[%c0_16, %c110] : memref<10x580xbf16, #tpu.memory_space<vmem>>, vector<10x128xbf16>
    %cst_17 = arith.constant dense<0.000000e+00> : vector<32x128xf32>
    %19 = tpu.matmul %17, %18, %cst_17 {dimension_numbers = #tpu.dot_dimension_numbers<[1], [0], [0], [1], [0, 0, 1, 1], [], []>} : vector<32x10xbf16>, vector<10x128xbf16>, vector<32x128xf32> -> vector<32x128xf32>
    %20 = arith.addf %15, %19 : vector<32x128xf32>
    %21 = vector.extract_strided_slice %6 {offsets = [2, 0, 0], sizes = [1, 32, 10], strides = [1, 1, 1]} : vector<9x32x10xbf16> to vector<1x32x10xbf16>
    %22 = vector.shape_cast %21 : vector<1x32x10xbf16> to vector<32x10xbf16>
    %c0_18 = arith.constant 0 : index
    %c111 = arith.constant 111 : index
    %23 = vector.load %arg8[%c0_18, %c111] : memref<10x580xbf16, #tpu.memory_space<vmem>>, vector<10x128xbf16>
    %cst_19 = arith.constant dense<0.000000e+00> : vector<32x128xf32>
    %24 = tpu.matmul %22, %23, %cst_19 {dimension_numbers = #tpu.dot_dimension_numbers<[1], [0], [0], [1], [0, 0, 1, 1], [], []>} : vector<32x10xbf16>, vector<10x128xbf16>, vector<32x128xf32> -> vector<32x128xf32>
    %25 = arith.addf %20, %24 : vector<32x128xf32>
    %26 = vector.extract_strided_slice %6 {offsets = [3, 0, 0], sizes = [1, 32, 10], strides = [1, 1, 1]} : vector<9x32x10xbf16> to vector<1x32x10xbf16>
    %27 = vector.shape_cast %26 : vector<1x32x10xbf16> to vector<32x10xbf16>
    %c0_20 = arith.constant 0 : index
    %c127 = arith.constant 127 : index
    %28 = vector.load %arg8[%c0_20, %c127] : memref<10x580xbf16, #tpu.memory_space<vmem>>, vector<10x128xbf16>
    %cst_21 = arith.constant dense<0.000000e+00> : vector<32x128xf32>
    %29 = tpu.matmul %27, %28, %cst_21 {dimension_numbers = #tpu.dot_dimension_numbers<[1], [0], [0], [1], [0, 0, 1, 1], [], []>} : vector<32x10xbf16>, vector<10x128xbf16>, vector<32x128xf32> -> vector<32x128xf32>
    %30 = arith.addf %25, %29 : vector<32x128xf32>
    %31 = vector.extract_strided_slice %6 {offsets = [4, 0, 0], sizes = [1, 32, 10], strides = [1, 1, 1]} : vector<9x32x10xbf16> to vector<1x32x10xbf16>
    %32 = vector.shape_cast %31 : vector<1x32x10xbf16> to vector<32x10xbf16>
    %c0_22 = arith.constant 0 : index
    %c128_23 = arith.constant 128 : index
    %33 = vector.load %arg8[%c0_22, %c128_23] : memref<10x580xbf16, #tpu.memory_space<vmem>>, vector<10x128xbf16>
    %cst_24 = arith.constant dense<0.000000e+00> : vector<32x128xf32>
    %34 = tpu.matmul %32, %33, %cst_24 {dimension_numbers = #tpu.dot_dimension_numbers<[1], [0], [0], [1], [0, 0, 1, 1], [], []>} : vector<32x10xbf16>, vector<10x128xbf16>, vector<32x128xf32> -> vector<32x128xf32>
    %35 = arith.addf %30, %34 : vector<32x128xf32>
    %36 = vector.extract_strided_slice %6 {offsets = [5, 0, 0], sizes = [1, 32, 10], strides = [1, 1, 1]} : vector<9x32x10xbf16> to vector<1x32x10xbf16>
    %37 = vector.shape_cast %36 : vector<1x32x10xbf16> to vector<32x10xbf16>
    %c0_25 = arith.constant 0 : index
    %c129 = arith.constant 129 : index
    %38 = vector.load %arg8[%c0_25, %c129] : memref<10x580xbf16, #tpu.memory_space<vmem>>, vector<10x128xbf16>
    %cst_26 = arith.constant dense<0.000000e+00> : vector<32x128xf32>
    %39 = tpu.matmul %37, %38, %cst_26 {dimension_numbers = #tpu.dot_dimension_numbers<[1], [0], [0], [1], [0, 0, 1, 1], [], []>} : vector<32x10xbf16>, vector<10x128xbf16>, vector<32x128xf32> -> vector<32x128xf32>
    %40 = arith.addf %35, %39 : vector<32x128xf32>
    %41 = vector.extract_strided_slice %6 {offsets = [6, 0, 0], sizes = [1, 32, 10], strides = [1, 1, 1]} : vector<9x32x10xbf16> to vector<1x32x10xbf16>
    %42 = vector.shape_cast %41 : vector<1x32x10xbf16> to vector<32x10xbf16>
    %c0_27 = arith.constant 0 : index
    %c145 = arith.constant 145 : index
    %43 = vector.load %arg8[%c0_27, %c145] : memref<10x580xbf16, #tpu.memory_space<vmem>>, vector<10x128xbf16>
    %cst_28 = arith.constant dense<0.000000e+00> : vector<32x128xf32>
    %44 = tpu.matmul %42, %43, %cst_28 {dimension_numbers = #tpu.dot_dimension_numbers<[1], [0], [0], [1], [0, 0, 1, 1], [], []>} : vector<32x10xbf16>, vector<10x128xbf16>, vector<32x128xf32> -> vector<32x128xf32>
    %45 = arith.addf %40, %44 : vector<32x128xf32>
    %46 = vector.extract_strided_slice %6 {offsets = [7, 0, 0], sizes = [1, 32, 10], strides = [1, 1, 1]} : vector<9x32x10xbf16> to vector<1x32x10xbf16>
    %47 = vector.shape_cast %46 : vector<1x32x10xbf16> to vector<32x10xbf16>
    %c0_29 = arith.constant 0 : index
    %c146 = arith.constant 146 : index
    %48 = vector.load %arg8[%c0_29, %c146] : memref<10x580xbf16, #tpu.memory_space<vmem>>, vector<10x128xbf16>
    %cst_30 = arith.constant dense<0.000000e+00> : vector<32x128xf32>
    %49 = tpu.matmul %47, %48, %cst_30 {dimension_numbers = #tpu.dot_dimension_numbers<[1], [0], [0], [1], [0, 0, 1, 1], [], []>} : vector<32x10xbf16>, vector<10x128xbf16>, vector<32x128xf32> -> vector<32x128xf32>
    %50 = arith.addf %45, %49 : vector<32x128xf32>
    %51 = vector.extract_strided_slice %6 {offsets = [8, 0, 0], sizes = [1, 32, 10], strides = [1, 1, 1]} : vector<9x32x10xbf16> to vector<1x32x10xbf16>
    %52 = vector.shape_cast %51 : vector<1x32x10xbf16> to vector<32x10xbf16>
    %c0_31 = arith.constant 0 : index
    %c147 = arith.constant 147 : index
    %53 = vector.load %arg8[%c0_31, %c147] : memref<10x580xbf16, #tpu.memory_space<vmem>>, vector<10x128xbf16>
    %cst_32 = arith.constant dense<0.000000e+00> : vector<32x128xf32>
    %54 = tpu.matmul %52, %53, %cst_32 {dimension_numbers = #tpu.dot_dimension_numbers<[1], [0], [0], [1], [0, 0, 1, 1], [], []>} : vector<32x10xbf16>, vector<10x128xbf16>, vector<32x128xf32> -> vector<32x128xf32>
    %55 = arith.addf %50, %54 : vector<32x128xf32>
    %56 = vector.extract_strided_slice %55 {offsets = [0, 0], sizes = [5, 128], strides = [1, 1]} : vector<32x128xf32> to vector<5x128xf32>
    %57 = vector.broadcast %8 : vector<5x1xf32> to vector<5x128xf32>
    %58 = arith.addf %56, %57 : vector<5x128xf32>
    %cst_33 = arith.constant 0.000000e+00 : f32
    %59 = vector.broadcast %cst_33 : f32 to vector<5x128xf32>
    %60 = arith.subf %59, %58 : vector<5x128xf32>
    %61 = math.exp %60 : vector<5x128xf32>
    %cst_34 = arith.constant 1.000000e+00 : f32
    %62 = vector.broadcast %cst_34 : f32 to vector<5x128xf32>
    %63 = arith.addf %62, %61 : vector<5x128xf32>
    %64 = tpu.reciprocal %63 {approx = true} : vector<5x128xf32> -> vector<5x128xf32>
    %65 = vector.extract_strided_slice %55 {offsets = [8, 0], sizes = [5, 128], strides = [1, 1]} : vector<32x128xf32> to vector<5x128xf32>
    %66 = vector.broadcast %9 : vector<5x1xf32> to vector<5x128xf32>
    %67 = arith.addf %65, %66 : vector<5x128xf32>
    %cst_35 = arith.constant 0.000000e+00 : f32
    %68 = vector.broadcast %cst_35 : f32 to vector<5x128xf32>
    %69 = arith.subf %68, %67 : vector<5x128xf32>
    %70 = math.exp %69 : vector<5x128xf32>
    %cst_36 = arith.constant 1.000000e+00 : f32
    %71 = vector.broadcast %cst_36 : f32 to vector<5x128xf32>
    %72 = arith.addf %71, %70 : vector<5x128xf32>
    %73 = tpu.reciprocal %72 {approx = true} : vector<5x128xf32> -> vector<5x128xf32>
    %74 = vector.extract_strided_slice %55 {offsets = [16, 0], sizes = [5, 128], strides = [1, 1]} : vector<32x128xf32> to vector<5x128xf32>
    %75 = vector.broadcast %10 : vector<5x1xf32> to vector<5x128xf32>
    %76 = arith.addf %74, %75 : vector<5x128xf32>
    %cst_37 = arith.constant 0.000000e+00 : f32
    %77 = vector.broadcast %cst_37 : f32 to vector<5x128xf32>
    %78 = arith.subf %77, %76 : vector<5x128xf32>
    %79 = math.exp %78 : vector<5x128xf32>
    %cst_38 = arith.constant 1.000000e+00 : f32
    %80 = vector.broadcast %cst_38 : f32 to vector<5x128xf32>
    %81 = arith.addf %80, %79 : vector<5x128xf32>
    %82 = tpu.reciprocal %81 {approx = true} : vector<5x128xf32> -> vector<5x128xf32>
    %83 = vector.extract_strided_slice %55 {offsets = [24, 0], sizes = [5, 128], strides = [1, 1]} : vector<32x128xf32> to vector<5x128xf32>
    %84 = vector.broadcast %11 : vector<5x1xf32> to vector<5x128xf32>
    %85 = arith.addf %83, %84 : vector<5x128xf32>
    %86 = math.tanh %85 : vector<5x128xf32>
    %c0_39 = arith.constant 0 : index
    %c0_40 = arith.constant 0 : index
    %87 = vector.load %arg10[%c0_39, %c0_40] : memref<5x324xf32, #tpu.memory_space<vmem>>, vector<5x128xf32>
    %88 = arith.mulf %73, %87 : vector<5x128xf32>
    %89 = arith.mulf %64, %86 : vector<5x128xf32>
    %90 = arith.addf %88, %89 : vector<5x128xf32>
    %c0_41 = arith.constant 0 : index
    %c0_42 = arith.constant 0 : index
    %91 = vector.load %arg10[%c0_41, %c0_42] : memref<5x324xf32, #tpu.memory_space<vmem>>, vector<5x128xf32>
    tpu.vector_store %arg10[%c0_41, %c0_42], %90 {strides = array<i32>} : memref<5x324xf32, #tpu.memory_space<vmem>>, vector<5x128xf32>,
    %92 = math.tanh %90 : vector<5x128xf32>
    %93 = arith.mulf %82, %92 : vector<5x128xf32>
    %c0_43 = arith.constant 0 : index
    %c0_44 = arith.constant 0 : index
    %94 = vector.load %arg6[%c0_43, %c0_44] : memref<1x324xf32, #tpu.memory_space<vmem>>, vector<1x128xf32>
    %95 = vector.broadcast %94 : vector<1x128xf32> to vector<5x128xf32>
    %96 = arith.mulf %93, %95 : vector<5x128xf32>
    %97 = arith.truncf %96 : vector<5x128xf32> to vector<5x128xbf16>
    %c0_45 = arith.constant 0 : index
    %c128_46 = arith.constant 128 : index
    %98 = vector.load %arg9[%c0_45, %c128_46] : memref<10x580xbf16, #tpu.memory_space<vmem>>, vector<5x128xbf16>
    tpu.vector_store %arg9[%c0_45, %c128_46], %97 {strides = array<i32>} : memref<10x580xbf16, #tpu.memory_space<vmem>>, vector<5x128xbf16>,
    %99 = vector.extract_strided_slice %6 {offsets = [0, 0, 0], sizes = [1, 32, 10], strides = [1, 1, 1]} : vector<9x32x10xbf16> to vector<1x32x10xbf16>
    %100 = vector.shape_cast %99 : vector<1x32x10xbf16> to vector<32x10xbf16>
    %c0_47 = arith.constant 0 : index
    %c237 = arith.constant 237 : index
    %101 = vector.load %arg8[%c0_47, %c237] : memref<10x580xbf16, #tpu.memory_space<vmem>>, vector<10x128xbf16>
    %cst_48 = arith.constant dense<0.000000e+00> : vector<32x128xf32>
    %102 = tpu.matmul %100, %101, %cst_48 {dimension_numbers = #tpu.dot_dimension_numbers<[1], [0], [0], [1], [0, 0, 1, 1], [], []>} : vector<32x10xbf16>, vector<10x128xbf16>, vector<32x128xf32> -> vector<32x128xf32>
    %103 = vector.extract_strided_slice %6 {offsets = [1, 0, 0], sizes = [1, 32, 10], strides = [1, 1, 1]} : vector<9x32x10xbf16> to vector<1x32x10xbf16>
    %104 = vector.shape_cast %103 : vector<1x32x10xbf16> to vector<32x10xbf16>
    %c0_49 = arith.constant 0 : index
    %c238 = arith.constant 238 : index
    %105 = vector.load %arg8[%c0_49, %c238] : memref<10x580xbf16, #tpu.memory_space<vmem>>, vector<10x128xbf16>
    %cst_50 = arith.constant dense<0.000000e+00> : vector<32x128xf32>
    %106 = tpu.matmul %104, %105, %cst_50 {dimension_numbers = #tpu.dot_dimension_numbers<[1], [0], [0], [1], [0, 0, 1, 1], [], []>} : vector<32x10xbf16>, vector<10x128xbf16>, vector<32x128xf32> -> vector<32x128xf32>
    %107 = arith.addf %102, %106 : vector<32x128xf32>
    %108 = vector.extract_strided_slice %6 {offsets = [2, 0, 0], sizes = [1, 32, 10], strides = [1, 1, 1]} : vector<9x32x10xbf16> to vector<1x32x10xbf16>
    %109 = vector.shape_cast %108 : vector<1x32x10xbf16> to vector<32x10xbf16>
    %c0_51 = arith.constant 0 : index
    %c239 = arith.constant 239 : index
    %110 = vector.load %arg8[%c0_51, %c239] : memref<10x580xbf16, #tpu.memory_space<vmem>>, vector<10x128xbf16>
    %cst_52 = arith.constant dense<0.000000e+00> : vector<32x128xf32>
    %111 = tpu.matmul %109, %110, %cst_52 {dimension_numbers = #tpu.dot_dimension_numbers<[1], [0], [0], [1], [0, 0, 1, 1], [], []>} : vector<32x10xbf16>, vector<10x128xbf16>, vector<32x128xf32> -> vector<32x128xf32>
    %112 = arith.addf %107, %111 : vector<32x128xf32>
    %113 = vector.extract_strided_slice %6 {offsets = [3, 0, 0], sizes = [1, 32, 10], strides = [1, 1, 1]} : vector<9x32x10xbf16> to vector<1x32x10xbf16>
    %114 = vector.shape_cast %113 : vector<1x32x10xbf16> to vector<32x10xbf16>
    %c0_53 = arith.constant 0 : index
    %c255 = arith.constant 255 : index
    %115 = vector.load %arg8[%c0_53, %c255] : memref<10x580xbf16, #tpu.memory_space<vmem>>, vector<10x128xbf16>
    %cst_54 = arith.constant dense<0.000000e+00> : vector<32x128xf32>
    %116 = tpu.matmul %114, %115, %cst_54 {dimension_numbers = #tpu.dot_dimension_numbers<[1], [0], [0], [1], [0, 0, 1, 1], [], []>} : vector<32x10xbf16>, vector<10x128xbf16>, vector<32x128xf32> -> vector<32x128xf32>
    %117 = arith.addf %112, %116 : vector<32x128xf32>
    %118 = vector.extract_strided_slice %6 {offsets = [4, 0, 0], sizes = [1, 32, 10], strides = [1, 1, 1]} : vector<9x32x10xbf16> to vector<1x32x10xbf16>
    %119 = vector.shape_cast %118 : vector<1x32x10xbf16> to vector<32x10xbf16>
    %c0_55 = arith.constant 0 : index
    %c256 = arith.constant 256 : index
    %120 = vector.load %arg8[%c0_55, %c256] : memref<10x580xbf16, #tpu.memory_space<vmem>>, vector<10x128xbf16>
    %cst_56 = arith.constant dense<0.000000e+00> : vector<32x128xf32>
    %121 = tpu.matmul %119, %120, %cst_56 {dimension_numbers = #tpu.dot_dimension_numbers<[1], [0], [0], [1], [0, 0, 1, 1], [], []>} : vector<32x10xbf16>, vector<10x128xbf16>, vector<32x128xf32> -> vector<32x128xf32>
    %122 = arith.addf %117, %121 : vector<32x128xf32>
    %123 = vector.extract_strided_slice %6 {offsets = [5, 0, 0], sizes = [1, 32, 10], strides = [1, 1, 1]} : vector<9x32x10xbf16> to vector<1x32x10xbf16>
    %124 = vector.shape_cast %123 : vector<1x32x10xbf16> to vector<32x10xbf16>
    %c0_57 = arith.constant 0 : index
    %c257 = arith.constant 257 : index
    %125 = vector.load %arg8[%c0_57, %c257] : memref<10x580xbf16, #tpu.memory_space<vmem>>, vector<10x128xbf16>
    %cst_58 = arith.constant dense<0.000000e+00> : vector<32x128xf32>
    %126 = tpu.matmul %124, %125, %cst_58 {dimension_numbers = #tpu.dot_dimension_numbers<[1], [0], [0], [1], [0, 0, 1, 1], [], []>} : vector<32x10xbf16>, vector<10x128xbf16>, vector<32x128xf32> -> vector<32x128xf32>
    %127 = arith.addf %122, %126 : vector<32x128xf32>
    %128 = vector.extract_strided_slice %6 {offsets = [6, 0, 0], sizes = [1, 32, 10], strides = [1, 1, 1]} : vector<9x32x10xbf16> to vector<1x32x10xbf16>
    %129 = vector.shape_cast %128 : vector<1x32x10xbf16> to vector<32x10xbf16>
    %c0_59 = arith.constant 0 : index
    %c273 = arith.constant 273 : index
    %130 = vector.load %arg8[%c0_59, %c273] : memref<10x580xbf16, #tpu.memory_space<vmem>>, vector<10x128xbf16>
    %cst_60 = arith.constant dense<0.000000e+00> : vector<32x128xf32>
    %131 = tpu.matmul %129, %130, %cst_60 {dimension_numbers = #tpu.dot_dimension_numbers<[1], [0], [0], [1], [0, 0, 1, 1], [], []>} : vector<32x10xbf16>, vector<10x128xbf16>, vector<32x128xf32> -> vector<32x128xf32>
    %132 = arith.addf %127, %131 : vector<32x128xf32>
    %133 = vector.extract_strided_slice %6 {offsets = [7, 0, 0], sizes = [1, 32, 10], strides = [1, 1, 1]} : vector<9x32x10xbf16> to vector<1x32x10xbf16>
    %134 = vector.shape_cast %133 : vector<1x32x10xbf16> to vector<32x10xbf16>
    %c0_61 = arith.constant 0 : index
    %c274 = arith.constant 274 : index
    %135 = vector.load %arg8[%c0_61, %c274] : memref<10x580xbf16, #tpu.memory_space<vmem>>, vector<10x128xbf16>
    %cst_62 = arith.constant dense<0.000000e+00> : vector<32x128xf32>
    %136 = tpu.matmul %134, %135, %cst_62 {dimension_numbers = #tpu.dot_dimension_numbers<[1], [0], [0], [1], [0, 0, 1, 1], [], []>} : vector<32x10xbf16>, vector<10x128xbf16>, vector<32x128xf32> -> vector<32x128xf32>
    %137 = arith.addf %132, %136 : vector<32x128xf32>
    %138 = vector.extract_strided_slice %6 {offsets = [8, 0, 0], sizes = [1, 32, 10], strides = [1, 1, 1]} : vector<9x32x10xbf16> to vector<1x32x10xbf16>
    %139 = vector.shape_cast %138 : vector<1x32x10xbf16> to vector<32x10xbf16>
    %c0_63 = arith.constant 0 : index
    %c275 = arith.constant 275 : index
    %140 = vector.load %arg8[%c0_63, %c275] : memref<10x580xbf16, #tpu.memory_space<vmem>>, vector<10x128xbf16>
    %cst_64 = arith.constant dense<0.000000e+00> : vector<32x128xf32>
    %141 = tpu.matmul %139, %140, %cst_64 {dimension_numbers = #tpu.dot_dimension_numbers<[1], [0], [0], [1], [0, 0, 1, 1], [], []>} : vector<32x10xbf16>, vector<10x128xbf16>, vector<32x128xf32> -> vector<32x128xf32>
    %142 = arith.addf %137, %141 : vector<32x128xf32>
    %143 = vector.extract_strided_slice %142 {offsets = [0, 0], sizes = [5, 128], strides = [1, 1]} : vector<32x128xf32> to vector<5x128xf32>
    %144 = vector.broadcast %8 : vector<5x1xf32> to vector<5x128xf32>
    %145 = arith.addf %143, %144 : vector<5x128xf32>
    %cst_65 = arith.constant 0.000000e+00 : f32
    %146 = vector.broadcast %cst_65 : f32 to vector<5x128xf32>
    %147 = arith.subf %146, %145 : vector<5x128xf32>
    %148 = math.exp %147 : vector<5x128xf32>
    %cst_66 = arith.constant 1.000000e+00 : f32
    %149 = vector.broadcast %cst_66 : f32 to vector<5x128xf32>
    %150 = arith.addf %149, %148 : vector<5x128xf32>
    %151 = tpu.reciprocal %150 {approx = true} : vector<5x128xf32> -> vector<5x128xf32>
    %152 = vector.extract_strided_slice %142 {offsets = [8, 0], sizes = [5, 128], strides = [1, 1]} : vector<32x128xf32> to vector<5x128xf32>
    %153 = vector.broadcast %9 : vector<5x1xf32> to vector<5x128xf32>
    %154 = arith.addf %152, %153 : vector<5x128xf32>
    %cst_67 = arith.constant 0.000000e+00 : f32
    %155 = vector.broadcast %cst_67 : f32 to vector<5x128xf32>
    %156 = arith.subf %155, %154 : vector<5x128xf32>
    %157 = math.exp %156 : vector<5x128xf32>
    %cst_68 = arith.constant 1.000000e+00 : f32
    %158 = vector.broadcast %cst_68 : f32 to vector<5x128xf32>
    %159 = arith.addf %158, %157 : vector<5x128xf32>
    %160 = tpu.reciprocal %159 {approx = true} : vector<5x128xf32> -> vector<5x128xf32>
    %161 = vector.extract_strided_slice %142 {offsets = [16, 0], sizes = [5, 128], strides = [1, 1]} : vector<32x128xf32> to vector<5x128xf32>
    %162 = vector.broadcast %10 : vector<5x1xf32> to vector<5x128xf32>
    %163 = arith.addf %161, %162 : vector<5x128xf32>
    %cst_69 = arith.constant 0.000000e+00 : f32
    %164 = vector.broadcast %cst_69 : f32 to vector<5x128xf32>
    %165 = arith.subf %164, %163 : vector<5x128xf32>
    %166 = math.exp %165 : vector<5x128xf32>
    %cst_70 = arith.constant 1.000000e+00 : f32
    %167 = vector.broadcast %cst_70 : f32 to vector<5x128xf32>
    %168 = arith.addf %167, %166 : vector<5x128xf32>
    %169 = tpu.reciprocal %168 {approx = true} : vector<5x128xf32> -> vector<5x128xf32>
    %170 = vector.extract_strided_slice %142 {offsets = [24, 0], sizes = [5, 128], strides = [1, 1]} : vector<32x128xf32> to vector<5x128xf32>
    %171 = vector.broadcast %11 : vector<5x1xf32> to vector<5x128xf32>
    %172 = arith.addf %170, %171 : vector<5x128xf32>
    %173 = math.tanh %172 : vector<5x128xf32>
    %c0_71 = arith.constant 0 : index
    %c128_72 = arith.constant 128 : index
    %174 = vector.load %arg10[%c0_71, %c128_72] : memref<5x324xf32, #tpu.memory_space<vmem>>, vector<5x128xf32>
    %175 = arith.mulf %160, %174 : vector<5x128xf32>
    %176 = arith.mulf %151, %173 : vector<5x128xf32>
    %177 = arith.addf %175, %176 : vector<5x128xf32>
    %c0_73 = arith.constant 0 : index
    %c128_74 = arith.constant 128 : index
    %178 = vector.load %arg10[%c0_73, %c128_74] : memref<5x324xf32, #tpu.memory_space<vmem>>, vector<5x128xf32>
    tpu.vector_store %arg10[%c0_73, %c128_74], %177 {strides = array<i32>} : memref<5x324xf32, #tpu.memory_space<vmem>>, vector<5x128xf32>,
    %179 = math.tanh %177 : vector<5x128xf32>
    %180 = arith.mulf %169, %179 : vector<5x128xf32>
    %c0_75 = arith.constant 0 : index
    %c128_76 = arith.constant 128 : index
    %181 = vector.load %arg6[%c0_75, %c128_76] : memref<1x324xf32, #tpu.memory_space<vmem>>, vector<1x128xf32>
    %182 = vector.broadcast %181 : vector<1x128xf32> to vector<5x128xf32>
    %183 = arith.mulf %180, %182 : vector<5x128xf32>
    %184 = arith.truncf %183 : vector<5x128xf32> to vector<5x128xbf16>
    %c0_77 = arith.constant 0 : index
    %c256_78 = arith.constant 256 : index
    %185 = vector.load %arg9[%c0_77, %c256_78] : memref<10x580xbf16, #tpu.memory_space<vmem>>, vector<5x128xbf16>
    tpu.vector_store %arg9[%c0_77, %c256_78], %184 {strides = array<i32>} : memref<10x580xbf16, #tpu.memory_space<vmem>>, vector<5x128xbf16>,
    %186 = vector.extract_strided_slice %6 {offsets = [0, 0, 0], sizes = [1, 32, 10], strides = [1, 1, 1]} : vector<9x32x10xbf16> to vector<1x32x10xbf16>
    %187 = vector.shape_cast %186 : vector<1x32x10xbf16> to vector<32x10xbf16>
    %c0_79 = arith.constant 0 : index
    %c365 = arith.constant 365 : index
    %188 = vector.load %arg8[%c0_79, %c365] : memref<10x580xbf16, #tpu.memory_space<vmem>>, vector<10x68xbf16>
    %cst_80 = arith.constant dense<0.000000e+00> : vector<32x68xf32>
    %189 = tpu.matmul %187, %188, %cst_80 {dimension_numbers = #tpu.dot_dimension_numbers<[1], [0], [0], [1], [0, 0, 1, 1], [], []>} : vector<32x10xbf16>, vector<10x68xbf16>, vector<32x68xf32> -> vector<32x68xf32>
    %190 = vector.extract_strided_slice %6 {offsets = [1, 0, 0], sizes = [1, 32, 10], strides = [1, 1, 1]} : vector<9x32x10xbf16> to vector<1x32x10xbf16>
    %191 = vector.shape_cast %190 : vector<1x32x10xbf16> to vector<32x10xbf16>
    %c0_81 = arith.constant 0 : index
    %c366 = arith.constant 366 : index
    %192 = vector.load %arg8[%c0_81, %c366] : memref<10x580xbf16, #tpu.memory_space<vmem>>, vector<10x68xbf16>
    %cst_82 = arith.constant dense<0.000000e+00> : vector<32x68xf32>
    %193 = tpu.matmul %191, %192, %cst_82 {dimension_numbers = #tpu.dot_dimension_numbers<[1], [0], [0], [1], [0, 0, 1, 1], [], []>} : vector<32x10xbf16>, vector<10x68xbf16>, vector<32x68xf32> -> vector<32x68xf32>
    %194 = arith.addf %189, %193 : vector<32x68xf32>
    %195 = vector.extract_strided_slice %6 {offsets = [2, 0, 0], sizes = [1, 32, 10], strides = [1, 1, 1]} : vector<9x32x10xbf16> to vector<1x32x10xbf16>
    %196 = vector.shape_cast %195 : vector<1x32x10xbf16> to vector<32x10xbf16>
    %c0_83 = arith.constant 0 : index
    %c367 = arith.constant 367 : index
    %197 = vector.load %arg8[%c0_83, %c367] : memref<10x580xbf16, #tpu.memory_space<vmem>>, vector<10x68xbf16>
    %cst_84 = arith.constant dense<0.000000e+00> : vector<32x68xf32>
    %198 = tpu.matmul %196, %197, %cst_84 {dimension_numbers = #tpu.dot_dimension_numbers<[1], [0], [0], [1], [0, 0, 1, 1], [], []>} : vector<32x10xbf16>, vector<10x68xbf16>, vector<32x68xf32> -> vector<32x68xf32>
    %199 = arith.addf %194, %198 : vector<32x68xf32>
    %200 = vector.extract_strided_slice %6 {offsets = [3, 0, 0], sizes = [1, 32, 10], strides = [1, 1, 1]} : vector<9x32x10xbf16> to vector<1x32x10xbf16>
    %201 = vector.shape_cast %200 : vector<1x32x10xbf16> to vector<32x10xbf16>
    %c0_85 = arith.constant 0 : index
    %c383 = arith.constant 383 : index
    %202 = vector.load %arg8[%c0_85, %c383] : memref<10x580xbf16, #tpu.memory_space<vmem>>, vector<10x68xbf16>
    %cst_86 = arith.constant dense<0.000000e+00> : vector<32x68xf32>
    %203 = tpu.matmul %201, %202, %cst_86 {dimension_numbers = #tpu.dot_dimension_numbers<[1], [0], [0], [1], [0, 0, 1, 1], [], []>} : vector<32x10xbf16>, vector<10x68xbf16>, vector<32x68xf32> -> vector<32x68xf32>
    %204 = arith.addf %199, %203 : vector<32x68xf32>
    %205 = vector.extract_strided_slice %6 {offsets = [4, 0, 0], sizes = [1, 32, 10], strides = [1, 1, 1]} : vector<9x32x10xbf16> to vector<1x32x10xbf16>
    %206 = vector.shape_cast %205 : vector<1x32x10xbf16> to vector<32x10xbf16>
    %c0_87 = arith.constant 0 : index
    %c384 = arith.constant 384 : index
    %207 = vector.load %arg8[%c0_87, %c384] : memref<10x580xbf16, #tpu.memory_space<vmem>>, vector<10x68xbf16>
    %cst_88 = arith.constant dense<0.000000e+00> : vector<32x68xf32>
    %208 = tpu.matmul %206, %207, %cst_88 {dimension_numbers = #tpu.dot_dimension_numbers<[1], [0], [0], [1], [0, 0, 1, 1], [], []>} : vector<32x10xbf16>, vector<10x68xbf16>, vector<32x68xf32> -> vector<32x68xf32>
    %209 = arith.addf %204, %208 : vector<32x68xf32>
    %210 = vector.extract_strided_slice %6 {offsets = [5, 0, 0], sizes = [1, 32, 10], strides = [1, 1, 1]} : vector<9x32x10xbf16> to vector<1x32x10xbf16>
    %211 = vector.shape_cast %210 : vector<1x32x10xbf16> to vector<32x10xbf16>
    %c0_89 = arith.constant 0 : index
    %c385 = arith.constant 385 : index
    %212 = vector.load %arg8[%c0_89, %c385] : memref<10x580xbf16, #tpu.memory_space<vmem>>, vector<10x68xbf16>
    %cst_90 = arith.constant dense<0.000000e+00> : vector<32x68xf32>
    %213 = tpu.matmul %211, %212, %cst_90 {dimension_numbers = #tpu.dot_dimension_numbers<[1], [0], [0], [1], [0, 0, 1, 1], [], []>} : vector<32x10xbf16>, vector<10x68xbf16>, vector<32x68xf32> -> vector<32x68xf32>
    %214 = arith.addf %209, %213 : vector<32x68xf32>
    %215 = vector.extract_strided_slice %6 {offsets = [6, 0, 0], sizes = [1, 32, 10], strides = [1, 1, 1]} : vector<9x32x10xbf16> to vector<1x32x10xbf16>
    %216 = vector.shape_cast %215 : vector<1x32x10xbf16> to vector<32x10xbf16>
    %c0_91 = arith.constant 0 : index
    %c401 = arith.constant 401 : index
    %217 = vector.load %arg8[%c0_91, %c401] : memref<10x580xbf16, #tpu.memory_space<vmem>>, vector<10x68xbf16>
    %cst_92 = arith.constant dense<0.000000e+00> : vector<32x68xf32>
    %218 = tpu.matmul %216, %217, %cst_92 {dimension_numbers = #tpu.dot_dimension_numbers<[1], [0], [0], [1], [0, 0, 1, 1], [], []>} : vector<32x10xbf16>, vector<10x68xbf16>, vector<32x68xf32> -> vector<32x68xf32>
    %219 = arith.addf %214, %218 : vector<32x68xf32>
    %220 = vector.extract_strided_slice %6 {offsets = [7, 0, 0], sizes = [1, 32, 10], strides = [1, 1, 1]} : vector<9x32x10xbf16> to vector<1x32x10xbf16>
    %221 = vector.shape_cast %220 : vector<1x32x10xbf16> to vector<32x10xbf16>
    %c0_93 = arith.constant 0 : index
    %c402 = arith.constant 402 : index
    %222 = vector.load %arg8[%c0_93, %c402] : memref<10x580xbf16, #tpu.memory_space<vmem>>, vector<10x68xbf16>
    %cst_94 = arith.constant dense<0.000000e+00> : vector<32x68xf32>
    %223 = tpu.matmul %221, %222, %cst_94 {dimension_numbers = #tpu.dot_dimension_numbers<[1], [0], [0], [1], [0, 0, 1, 1], [], []>} : vector<32x10xbf16>, vector<10x68xbf16>, vector<32x68xf32> -> vector<32x68xf32>
    %224 = arith.addf %219, %223 : vector<32x68xf32>
    %225 = vector.extract_strided_slice %6 {offsets = [8, 0, 0], sizes = [1, 32, 10], strides = [1, 1, 1]} : vector<9x32x10xbf16> to vector<1x32x10xbf16>
    %226 = vector.shape_cast %225 : vector<1x32x10xbf16> to vector<32x10xbf16>
    %c0_95 = arith.constant 0 : index
    %c403 = arith.constant 403 : index
    %227 = vector.load %arg8[%c0_95, %c403] : memref<10x580xbf16, #tpu.memory_space<vmem>>, vector<10x68xbf16>
    %cst_96 = arith.constant dense<0.000000e+00> : vector<32x68xf32>
    %228 = tpu.matmul %226, %227, %cst_96 {dimension_numbers = #tpu.dot_dimension_numbers<[1], [0], [0], [1], [0, 0, 1, 1], [], []>} : vector<32x10xbf16>, vector<10x68xbf16>, vector<32x68xf32> -> vector<32x68xf32>
    %229 = arith.addf %224, %228 : vector<32x68xf32>
    %230 = vector.extract_strided_slice %229 {offsets = [0, 0], sizes = [5, 68], strides = [1, 1]} : vector<32x68xf32> to vector<5x68xf32>
    %231 = vector.broadcast %8 : vector<5x1xf32> to vector<5x68xf32>
    %232 = arith.addf %230, %231 : vector<5x68xf32>
    %cst_97 = arith.constant 0.000000e+00 : f32
    %233 = vector.broadcast %cst_97 : f32 to vector<5x68xf32>
    %234 = arith.subf %233, %232 : vector<5x68xf32>
    %235 = math.exp %234 : vector<5x68xf32>
    %cst_98 = arith.constant 1.000000e+00 : f32
    %236 = vector.broadcast %cst_98 : f32 to vector<5x68xf32>
    %237 = arith.addf %236, %235 : vector<5x68xf32>
    %238 = tpu.reciprocal %237 {approx = true} : vector<5x68xf32> -> vector<5x68xf32>
    %239 = vector.extract_strided_slice %229 {offsets = [8, 0], sizes = [5, 68], strides = [1, 1]} : vector<32x68xf32> to vector<5x68xf32>
    %240 = vector.broadcast %9 : vector<5x1xf32> to vector<5x68xf32>
    %241 = arith.addf %239, %240 : vector<5x68xf32>
    %cst_99 = arith.constant 0.000000e+00 : f32
    %242 = vector.broadcast %cst_99 : f32 to vector<5x68xf32>
    %243 = arith.subf %242, %241 : vector<5x68xf32>
    %244 = math.exp %243 : vector<5x68xf32>
    %cst_100 = arith.constant 1.000000e+00 : f32
    %245 = vector.broadcast %cst_100 : f32 to vector<5x68xf32>
    %246 = arith.addf %245, %244 : vector<5x68xf32>
    %247 = tpu.reciprocal %246 {approx = true} : vector<5x68xf32> -> vector<5x68xf32>
    %248 = vector.extract_strided_slice %229 {offsets = [16, 0], sizes = [5, 68], strides = [1, 1]} : vector<32x68xf32> to vector<5x68xf32>
    %249 = vector.broadcast %10 : vector<5x1xf32> to vector<5x68xf32>
    %250 = arith.addf %248, %249 : vector<5x68xf32>
    %cst_101 = arith.constant 0.000000e+00 : f32
    %251 = vector.broadcast %cst_101 : f32 to vector<5x68xf32>
    %252 = arith.subf %251, %250 : vector<5x68xf32>
    %253 = math.exp %252 : vector<5x68xf32>
    %cst_102 = arith.constant 1.000000e+00 : f32
    %254 = vector.broadcast %cst_102 : f32 to vector<5x68xf32>
    %255 = arith.addf %254, %253 : vector<5x68xf32>
    %256 = tpu.reciprocal %255 {approx = true} : vector<5x68xf32> -> vector<5x68xf32>
    %257 = vector.extract_strided_slice %229 {offsets = [24, 0], sizes = [5, 68], strides = [1, 1]} : vector<32x68xf32> to vector<5x68xf32>
    %258 = vector.broadcast %11 : vector<5x1xf32> to vector<5x68xf32>
    %259 = arith.addf %257, %258 : vector<5x68xf32>
    %260 = math.tanh %259 : vector<5x68xf32>
    %c0_103 = arith.constant 0 : index
    %c256_104 = arith.constant 256 : index
    %261 = vector.load %arg10[%c0_103, %c256_104] : memref<5x324xf32, #tpu.memory_space<vmem>>, vector<5x68xf32>
    %262 = arith.mulf %247, %261 : vector<5x68xf32>
    %263 = arith.mulf %238, %260 : vector<5x68xf32>
    %264 = arith.addf %262, %263 : vector<5x68xf32>
    %c0_105 = arith.constant 0 : index
    %c256_106 = arith.constant 256 : index
    %265 = vector.load %arg10[%c0_105, %c256_106] : memref<5x324xf32, #tpu.memory_space<vmem>>, vector<5x68xf32>
    tpu.vector_store %arg10[%c0_105, %c256_106], %264 {strides = array<i32>} : memref<5x324xf32, #tpu.memory_space<vmem>>, vector<5x68xf32>,
    %266 = math.tanh %264 : vector<5x68xf32>
    %267 = arith.mulf %256, %266 : vector<5x68xf32>
    %c0_107 = arith.constant 0 : index
    %c256_108 = arith.constant 256 : index
    %268 = vector.load %arg6[%c0_107, %c256_108] : memref<1x324xf32, #tpu.memory_space<vmem>>, vector<1x68xf32>
    %269 = vector.broadcast %268 : vector<1x68xf32> to vector<5x68xf32>
    %270 = arith.mulf %267, %269 : vector<5x68xf32>
    %271 = arith.truncf %270 : vector<5x68xf32> to vector<5x68xbf16>
    %c0_109 = arith.constant 0 : index
    %c384_110 = arith.constant 384 : index
    %272 = vector.load %arg9[%c0_109, %c384_110] : memref<10x580xbf16, #tpu.memory_space<vmem>>, vector<5x68xbf16>
    tpu.vector_store %arg9[%c0_109, %c384_110], %271 {strides = array<i32>} : memref<10x580xbf16, #tpu.memory_space<vmem>>, vector<5x68xbf16>,
    %c0_111 = arith.constant 0 : index
    %c128_112 = arith.constant 128 : index
    %273 = vector.load %arg9[%c0_111, %c128_112] : memref<10x580xbf16, #tpu.memory_space<vmem>>, vector<5x324xbf16>
    %c5 = arith.constant 5 : index
    %c128_113 = arith.constant 128 : index
    %274 = vector.load %arg8[%c5, %c128_113] : memref<10x580xbf16, #tpu.memory_space<vmem>>, vector<5x324xbf16>
    tpu.vector_store %arg8[%c5, %c128_113], %273 {strides = array<i32>} : memref<10x580xbf16, #tpu.memory_space<vmem>>, vector<5x324xbf16>,
    %c0_114 = arith.constant 0 : index
    %c0_115 = arith.constant 0 : index
    %275 = vector.load %arg5[%c0_114, %c0_115] : memref<32x1xf32, #tpu.memory_space<vmem>>, vector<5x1xf32>
    %c8_116 = arith.constant 8 : index
    %c0_117 = arith.constant 0 : index
    %276 = vector.load %arg5[%c8_116, %c0_117] : memref<32x1xf32, #tpu.memory_space<vmem>>, vector<5x1xf32>
    %c16_118 = arith.constant 16 : index
    %c0_119 = arith.constant 0 : index
    %277 = vector.load %arg5[%c16_118, %c0_119] : memref<32x1xf32, #tpu.memory_space<vmem>>, vector<5x1xf32>
    %c24_120 = arith.constant 24 : index
    %c0_121 = arith.constant 0 : index
    %278 = vector.load %arg5[%c24_120, %c0_121] : memref<32x1xf32, #tpu.memory_space<vmem>>, vector<5x1xf32>
    %279 = vector.extract_strided_slice %7 {offsets = [0, 0, 0], sizes = [1, 32, 10], strides = [1, 1, 1]} : vector<9x32x10xbf16> to vector<1x32x10xbf16>
    %280 = vector.shape_cast %279 : vector<1x32x10xbf16> to vector<32x10xbf16>
    %c0_122 = arith.constant 0 : index
    %c109_123 = arith.constant 109 : index
    %281 = vector.load %arg9[%c0_122, %c109_123] : memref<10x580xbf16, #tpu.memory_space<vmem>>, vector<10x128xbf16>
    %cst_124 = arith.constant dense<0.000000e+00> : vector<32x128xf32>
    %282 = tpu.matmul %280, %281, %cst_124 {dimension_numbers = #tpu.dot_dimension_numbers<[1], [0], [0], [1], [0, 0, 1, 1], [], []>} : vector<32x10xbf16>, vector<10x128xbf16>, vector<32x128xf32> -> vector<32x128xf32>
    %283 = vector.extract_strided_slice %7 {offsets = [1, 0, 0], sizes = [1, 32, 10], strides = [1, 1, 1]} : vector<9x32x10xbf16> to vector<1x32x10xbf16>
    %284 = vector.shape_cast %283 : vector<1x32x10xbf16> to vector<32x10xbf16>
    %c0_125 = arith.constant 0 : index
    %c110_126 = arith.constant 110 : index
    %285 = vector.load %arg9[%c0_125, %c110_126] : memref<10x580xbf16, #tpu.memory_space<vmem>>, vector<10x128xbf16>
    %cst_127 = arith.constant dense<0.000000e+00> : vector<32x128xf32>
    %286 = tpu.matmul %284, %285, %cst_127 {dimension_numbers = #tpu.dot_dimension_numbers<[1], [0], [0], [1], [0, 0, 1, 1], [], []>} : vector<32x10xbf16>, vector<10x128xbf16>, vector<32x128xf32> -> vector<32x128xf32>
    %287 = arith.addf %282, %286 : vector<32x128xf32>
    %288 = vector.extract_strided_slice %7 {offsets = [2, 0, 0], sizes = [1, 32, 10], strides = [1, 1, 1]} : vector<9x32x10xbf16> to vector<1x32x10xbf16>
    %289 = vector.shape_cast %288 : vector<1x32x10xbf16> to vector<32x10xbf16>
    %c0_128 = arith.constant 0 : index
    %c111_129 = arith.constant 111 : index
    %290 = vector.load %arg9[%c0_128, %c111_129] : memref<10x580xbf16, #tpu.memory_space<vmem>>, vector<10x128xbf16>
    %cst_130 = arith.constant dense<0.000000e+00> : vector<32x128xf32>
    %291 = tpu.matmul %289, %290, %cst_130 {dimension_numbers = #tpu.dot_dimension_numbers<[1], [0], [0], [1], [0, 0, 1, 1], [], []>} : vector<32x10xbf16>, vector<10x128xbf16>, vector<32x128xf32> -> vector<32x128xf32>
    %292 = arith.addf %287, %291 : vector<32x128xf32>
    %293 = vector.extract_strided_slice %7 {offsets = [3, 0, 0], sizes = [1, 32, 10], strides = [1, 1, 1]} : vector<9x32x10xbf16> to vector<1x32x10xbf16>
    %294 = vector.shape_cast %293 : vector<1x32x10xbf16> to vector<32x10xbf16>
    %c0_131 = arith.constant 0 : index
    %c127_132 = arith.constant 127 : index
    %295 = vector.load %arg9[%c0_131, %c127_132] : memref<10x580xbf16, #tpu.memory_space<vmem>>, vector<10x128xbf16>
    %cst_133 = arith.constant dense<0.000000e+00> : vector<32x128xf32>
    %296 = tpu.matmul %294, %295, %cst_133 {dimension_numbers = #tpu.dot_dimension_numbers<[1], [0], [0], [1], [0, 0, 1, 1], [], []>} : vector<32x10xbf16>, vector<10x128xbf16>, vector<32x128xf32> -> vector<32x128xf32>
    %297 = arith.addf %292, %296 : vector<32x128xf32>
    %298 = vector.extract_strided_slice %7 {offsets = [4, 0, 0], sizes = [1, 32, 10], strides = [1, 1, 1]} : vector<9x32x10xbf16> to vector<1x32x10xbf16>
    %299 = vector.shape_cast %298 : vector<1x32x10xbf16> to vector<32x10xbf16>
    %c0_134 = arith.constant 0 : index
    %c128_135 = arith.constant 128 : index
    %300 = vector.load %arg9[%c0_134, %c128_135] : memref<10x580xbf16, #tpu.memory_space<vmem>>, vector<10x128xbf16>
    %cst_136 = arith.constant dense<0.000000e+00> : vector<32x128xf32>
    %301 = tpu.matmul %299, %300, %cst_136 {dimension_numbers = #tpu.dot_dimension_numbers<[1], [0], [0], [1], [0, 0, 1, 1], [], []>} : vector<32x10xbf16>, vector<10x128xbf16>, vector<32x128xf32> -> vector<32x128xf32>
    %302 = arith.addf %297, %301 : vector<32x128xf32>
    %303 = vector.extract_strided_slice %7 {offsets = [5, 0, 0], sizes = [1, 32, 10], strides = [1, 1, 1]} : vector<9x32x10xbf16> to vector<1x32x10xbf16>
    %304 = vector.shape_cast %303 : vector<1x32x10xbf16> to vector<32x10xbf16>
    %c0_137 = arith.constant 0 : index
    %c129_138 = arith.constant 129 : index
    %305 = vector.load %arg9[%c0_137, %c129_138] : memref<10x580xbf16, #tpu.memory_space<vmem>>, vector<10x128xbf16>
    %cst_139 = arith.constant dense<0.000000e+00> : vector<32x128xf32>
    %306 = tpu.matmul %304, %305, %cst_139 {dimension_numbers = #tpu.dot_dimension_numbers<[1], [0], [0], [1], [0, 0, 1, 1], [], []>} : vector<32x10xbf16>, vector<10x128xbf16>, vector<32x128xf32> -> vector<32x128xf32>
    %307 = arith.addf %302, %306 : vector<32x128xf32>
    %308 = vector.extract_strided_slice %7 {offsets = [6, 0, 0], sizes = [1, 32, 10], strides = [1, 1, 1]} : vector<9x32x10xbf16> to vector<1x32x10xbf16>
    %309 = vector.shape_cast %308 : vector<1x32x10xbf16> to vector<32x10xbf16>
    %c0_140 = arith.constant 0 : index
    %c145_141 = arith.constant 145 : index
    %310 = vector.load %arg9[%c0_140, %c145_141] : memref<10x580xbf16, #tpu.memory_space<vmem>>, vector<10x128xbf16>
    %cst_142 = arith.constant dense<0.000000e+00> : vector<32x128xf32>
    %311 = tpu.matmul %309, %310, %cst_142 {dimension_numbers = #tpu.dot_dimension_numbers<[1], [0], [0], [1], [0, 0, 1, 1], [], []>} : vector<32x10xbf16>, vector<10x128xbf16>, vector<32x128xf32> -> vector<32x128xf32>
    %312 = arith.addf %307, %311 : vector<32x128xf32>
    %313 = vector.extract_strided_slice %7 {offsets = [7, 0, 0], sizes = [1, 32, 10], strides = [1, 1, 1]} : vector<9x32x10xbf16> to vector<1x32x10xbf16>
    %314 = vector.shape_cast %313 : vector<1x32x10xbf16> to vector<32x10xbf16>
    %c0_143 = arith.constant 0 : index
    %c146_144 = arith.constant 146 : index
    %315 = vector.load %arg9[%c0_143, %c146_144] : memref<10x580xbf16, #tpu.memory_space<vmem>>, vector<10x128xbf16>
    %cst_145 = arith.constant dense<0.000000e+00> : vector<32x128xf32>
    %316 = tpu.matmul %314, %315, %cst_145 {dimension_numbers = #tpu.dot_dimension_numbers<[1], [0], [0], [1], [0, 0, 1, 1], [], []>} : vector<32x10xbf16>, vector<10x128xbf16>, vector<32x128xf32> -> vector<32x128xf32>
    %317 = arith.addf %312, %316 : vector<32x128xf32>
    %318 = vector.extract_strided_slice %7 {offsets = [8, 0, 0], sizes = [1, 32, 10], strides = [1, 1, 1]} : vector<9x32x10xbf16> to vector<1x32x10xbf16>
    %319 = vector.shape_cast %318 : vector<1x32x10xbf16> to vector<32x10xbf16>
    %c0_146 = arith.constant 0 : index
    %c147_147 = arith.constant 147 : index
    %320 = vector.load %arg9[%c0_146, %c147_147] : memref<10x580xbf16, #tpu.memory_space<vmem>>, vector<10x128xbf16>
    %cst_148 = arith.constant dense<0.000000e+00> : vector<32x128xf32>
    %321 = tpu.matmul %319, %320, %cst_148 {dimension_numbers = #tpu.dot_dimension_numbers<[1], [0], [0], [1], [0, 0, 1, 1], [], []>} : vector<32x10xbf16>, vector<10x128xbf16>, vector<32x128xf32> -> vector<32x128xf32>
    %322 = arith.addf %317, %321 : vector<32x128xf32>
    %323 = vector.extract_strided_slice %322 {offsets = [0, 0], sizes = [5, 128], strides = [1, 1]} : vector<32x128xf32> to vector<5x128xf32>
    %324 = vector.broadcast %275 : vector<5x1xf32> to vector<5x128xf32>
    %325 = arith.addf %323, %324 : vector<5x128xf32>
    %cst_149 = arith.constant 0.000000e+00 : f32
    %326 = vector.broadcast %cst_149 : f32 to vector<5x128xf32>
    %327 = arith.subf %326, %325 : vector<5x128xf32>
    %328 = math.exp %327 : vector<5x128xf32>
    %cst_150 = arith.constant 1.000000e+00 : f32
    %329 = vector.broadcast %cst_150 : f32 to vector<5x128xf32>
    %330 = arith.addf %329, %328 : vector<5x128xf32>
    %331 = tpu.reciprocal %330 {approx = true} : vector<5x128xf32> -> vector<5x128xf32>
    %332 = vector.extract_strided_slice %322 {offsets = [8, 0], sizes = [5, 128], strides = [1, 1]} : vector<32x128xf32> to vector<5x128xf32>
    %333 = vector.broadcast %276 : vector<5x1xf32> to vector<5x128xf32>
    %334 = arith.addf %332, %333 : vector<5x128xf32>
    %cst_151 = arith.constant 0.000000e+00 : f32
    %335 = vector.broadcast %cst_151 : f32 to vector<5x128xf32>
    %336 = arith.subf %335, %334 : vector<5x128xf32>
    %337 = math.exp %336 : vector<5x128xf32>
    %cst_152 = arith.constant 1.000000e+00 : f32
    %338 = vector.broadcast %cst_152 : f32 to vector<5x128xf32>
    %339 = arith.addf %338, %337 : vector<5x128xf32>
    %340 = tpu.reciprocal %339 {approx = true} : vector<5x128xf32> -> vector<5x128xf32>
    %341 = vector.extract_strided_slice %322 {offsets = [16, 0], sizes = [5, 128], strides = [1, 1]} : vector<32x128xf32> to vector<5x128xf32>
    %342 = vector.broadcast %277 : vector<5x1xf32> to vector<5x128xf32>
    %343 = arith.addf %341, %342 : vector<5x128xf32>
    %cst_153 = arith.constant 0.000000e+00 : f32
    %344 = vector.broadcast %cst_153 : f32 to vector<5x128xf32>
    %345 = arith.subf %344, %343 : vector<5x128xf32>
    %346 = math.exp %345 : vector<5x128xf32>
    %cst_154 = arith.constant 1.000000e+00 : f32
    %347 = vector.broadcast %cst_154 : f32 to vector<5x128xf32>
    %348 = arith.addf %347, %346 : vector<5x128xf32>
    %349 = tpu.reciprocal %348 {approx = true} : vector<5x128xf32> -> vector<5x128xf32>
    %350 = vector.extract_strided_slice %322 {offsets = [24, 0], sizes = [5, 128], strides = [1, 1]} : vector<32x128xf32> to vector<5x128xf32>
    %351 = vector.broadcast %278 : vector<5x1xf32> to vector<5x128xf32>
    %352 = arith.addf %350, %351 : vector<5x128xf32>
    %353 = math.tanh %352 : vector<5x128xf32>
    %c0_155 = arith.constant 0 : index
    %c0_156 = arith.constant 0 : index
    %354 = vector.load %arg11[%c0_155, %c0_156] : memref<5x324xf32, #tpu.memory_space<vmem>>, vector<5x128xf32>
    %355 = arith.mulf %340, %354 : vector<5x128xf32>
    %356 = arith.mulf %331, %353 : vector<5x128xf32>
    %357 = arith.addf %355, %356 : vector<5x128xf32>
    %c0_157 = arith.constant 0 : index
    %c0_158 = arith.constant 0 : index
    %358 = vector.load %arg11[%c0_157, %c0_158] : memref<5x324xf32, #tpu.memory_space<vmem>>, vector<5x128xf32>
    tpu.vector_store %arg11[%c0_157, %c0_158], %357 {strides = array<i32>} : memref<5x324xf32, #tpu.memory_space<vmem>>, vector<5x128xf32>,
    %359 = math.tanh %357 : vector<5x128xf32>
    %360 = arith.mulf %349, %359 : vector<5x128xf32>
    %c0_159 = arith.constant 0 : index
    %c0_160 = arith.constant 0 : index
    %361 = vector.load %arg6[%c0_159, %c0_160] : memref<1x324xf32, #tpu.memory_space<vmem>>, vector<1x128xf32>
    %362 = vector.broadcast %361 : vector<1x128xf32> to vector<5x128xf32>
    %363 = arith.mulf %360, %362 : vector<5x128xf32>
    %c0_161 = arith.constant 0 : index
    %c0_162 = arith.constant 0 : index
    %c0_163 = arith.constant 0 : index
    %364 = vector.load %arg7[%c0_161, %c0_162, %c0_163] : memref<1x5x324xf32, #tpu.memory_space<vmem>>, vector<1x5x128xf32>
    %365 = vector.shape_cast %364 : vector<1x5x128xf32> to vector<5x128xf32>
    %366 = vector.shape_cast %363 : vector<5x128xf32> to vector<1x5x128xf32>
    tpu.vector_store %arg7[%c0_161, %c0_162, %c0_163], %366 {strides = array<i32>} : memref<1x5x324xf32, #tpu.memory_space<vmem>>, vector<1x5x128xf32>,
    %367 = vector.extract_strided_slice %7 {offsets = [0, 0, 0], sizes = [1, 32, 10], strides = [1, 1, 1]} : vector<9x32x10xbf16> to vector<1x32x10xbf16>
    %368 = vector.shape_cast %367 : vector<1x32x10xbf16> to vector<32x10xbf16>
    %c0_164 = arith.constant 0 : index
    %c237_165 = arith.constant 237 : index
    %369 = vector.load %arg9[%c0_164, %c237_165] : memref<10x580xbf16, #tpu.memory_space<vmem>>, vector<10x128xbf16>
    %cst_166 = arith.constant dense<0.000000e+00> : vector<32x128xf32>
    %370 = tpu.matmul %368, %369, %cst_166 {dimension_numbers = #tpu.dot_dimension_numbers<[1], [0], [0], [1], [0, 0, 1, 1], [], []>} : vector<32x10xbf16>, vector<10x128xbf16>, vector<32x128xf32> -> vector<32x128xf32>
    %371 = vector.extract_strided_slice %7 {offsets = [1, 0, 0], sizes = [1, 32, 10], strides = [1, 1, 1]} : vector<9x32x10xbf16> to vector<1x32x10xbf16>
    %372 = vector.shape_cast %371 : vector<1x32x10xbf16> to vector<32x10xbf16>
    %c0_167 = arith.constant 0 : index
    %c238_168 = arith.constant 238 : index
    %373 = vector.load %arg9[%c0_167, %c238_168] : memref<10x580xbf16, #tpu.memory_space<vmem>>, vector<10x128xbf16>
    %cst_169 = arith.constant dense<0.000000e+00> : vector<32x128xf32>
    %374 = tpu.matmul %372, %373, %cst_169 {dimension_numbers = #tpu.dot_dimension_numbers<[1], [0], [0], [1], [0, 0, 1, 1], [], []>} : vector<32x10xbf16>, vector<10x128xbf16>, vector<32x128xf32> -> vector<32x128xf32>
    %375 = arith.addf %370, %374 : vector<32x128xf32>
    %376 = vector.extract_strided_slice %7 {offsets = [2, 0, 0], sizes = [1, 32, 10], strides = [1, 1, 1]} : vector<9x32x10xbf16> to vector<1x32x10xbf16>
    %377 = vector.shape_cast %376 : vector<1x32x10xbf16> to vector<32x10xbf16>
    %c0_170 = arith.constant 0 : index
    %c239_171 = arith.constant 239 : index
    %378 = vector.load %arg9[%c0_170, %c239_171] : memref<10x580xbf16, #tpu.memory_space<vmem>>, vector<10x128xbf16>
    %cst_172 = arith.constant dense<0.000000e+00> : vector<32x128xf32>
    %379 = tpu.matmul %377, %378, %cst_172 {dimension_numbers = #tpu.dot_dimension_numbers<[1], [0], [0], [1], [0, 0, 1, 1], [], []>} : vector<32x10xbf16>, vector<10x128xbf16>, vector<32x128xf32> -> vector<32x128xf32>
    %380 = arith.addf %375, %379 : vector<32x128xf32>
    %381 = vector.extract_strided_slice %7 {offsets = [3, 0, 0], sizes = [1, 32, 10], strides = [1, 1, 1]} : vector<9x32x10xbf16> to vector<1x32x10xbf16>
    %382 = vector.shape_cast %381 : vector<1x32x10xbf16> to vector<32x10xbf16>
    %c0_173 = arith.constant 0 : index
    %c255_174 = arith.constant 255 : index
    %383 = vector.load %arg9[%c0_173, %c255_174] : memref<10x580xbf16, #tpu.memory_space<vmem>>, vector<10x128xbf16>
    %cst_175 = arith.constant dense<0.000000e+00> : vector<32x128xf32>
    %384 = tpu.matmul %382, %383, %cst_175 {dimension_numbers = #tpu.dot_dimension_numbers<[1], [0], [0], [1], [0, 0, 1, 1], [], []>} : vector<32x10xbf16>, vector<10x128xbf16>, vector<32x128xf32> -> vector<32x128xf32>
    %385 = arith.addf %380, %384 : vector<32x128xf32>
    %386 = vector.extract_strided_slice %7 {offsets = [4, 0, 0], sizes = [1, 32, 10], strides = [1, 1, 1]} : vector<9x32x10xbf16> to vector<1x32x10xbf16>
    %387 = vector.shape_cast %386 : vector<1x32x10xbf16> to vector<32x10xbf16>
    %c0_176 = arith.constant 0 : index
    %c256_177 = arith.constant 256 : index
    %388 = vector.load %arg9[%c0_176, %c256_177] : memref<10x580xbf16, #tpu.memory_space<vmem>>, vector<10x128xbf16>
    %cst_178 = arith.constant dense<0.000000e+00> : vector<32x128xf32>
    %389 = tpu.matmul %387, %388, %cst_178 {dimension_numbers = #tpu.dot_dimension_numbers<[1], [0], [0], [1], [0, 0, 1, 1], [], []>} : vector<32x10xbf16>, vector<10x128xbf16>, vector<32x128xf32> -> vector<32x128xf32>
    %390 = arith.addf %385, %389 : vector<32x128xf32>
    %391 = vector.extract_strided_slice %7 {offsets = [5, 0, 0], sizes = [1, 32, 10], strides = [1, 1, 1]} : vector<9x32x10xbf16> to vector<1x32x10xbf16>
    %392 = vector.shape_cast %391 : vector<1x32x10xbf16> to vector<32x10xbf16>
    %c0_179 = arith.constant 0 : index
    %c257_180 = arith.constant 257 : index
    %393 = vector.load %arg9[%c0_179, %c257_180] : memref<10x580xbf16, #tpu.memory_space<vmem>>, vector<10x128xbf16>
    %cst_181 = arith.constant dense<0.000000e+00> : vector<32x128xf32>
    %394 = tpu.matmul %392, %393, %cst_181 {dimension_numbers = #tpu.dot_dimension_numbers<[1], [0], [0], [1], [0, 0, 1, 1], [], []>} : vector<32x10xbf16>, vector<10x128xbf16>, vector<32x128xf32> -> vector<32x128xf32>
    %395 = arith.addf %390, %394 : vector<32x128xf32>
    %396 = vector.extract_strided_slice %7 {offsets = [6, 0, 0], sizes = [1, 32, 10], strides = [1, 1, 1]} : vector<9x32x10xbf16> to vector<1x32x10xbf16>
    %397 = vector.shape_cast %396 : vector<1x32x10xbf16> to vector<32x10xbf16>
    %c0_182 = arith.constant 0 : index
    %c273_183 = arith.constant 273 : index
    %398 = vector.load %arg9[%c0_182, %c273_183] : memref<10x580xbf16, #tpu.memory_space<vmem>>, vector<10x128xbf16>
    %cst_184 = arith.constant dense<0.000000e+00> : vector<32x128xf32>
    %399 = tpu.matmul %397, %398, %cst_184 {dimension_numbers = #tpu.dot_dimension_numbers<[1], [0], [0], [1], [0, 0, 1, 1], [], []>} : vector<32x10xbf16>, vector<10x128xbf16>, vector<32x128xf32> -> vector<32x128xf32>
    %400 = arith.addf %395, %399 : vector<32x128xf32>
    %401 = vector.extract_strided_slice %7 {offsets = [7, 0, 0], sizes = [1, 32, 10], strides = [1, 1, 1]} : vector<9x32x10xbf16> to vector<1x32x10xbf16>
    %402 = vector.shape_cast %401 : vector<1x32x10xbf16> to vector<32x10xbf16>
    %c0_185 = arith.constant 0 : index
    %c274_186 = arith.constant 274 : index
    %403 = vector.load %arg9[%c0_185, %c274_186] : memref<10x580xbf16, #tpu.memory_space<vmem>>, vector<10x128xbf16>
    %cst_187 = arith.constant dense<0.000000e+00> : vector<32x128xf32>
    %404 = tpu.matmul %402, %403, %cst_187 {dimension_numbers = #tpu.dot_dimension_numbers<[1], [0], [0], [1], [0, 0, 1, 1], [], []>} : vector<32x10xbf16>, vector<10x128xbf16>, vector<32x128xf32> -> vector<32x128xf32>
    %405 = arith.addf %400, %404 : vector<32x128xf32>
    %406 = vector.extract_strided_slice %7 {offsets = [8, 0, 0], sizes = [1, 32, 10], strides = [1, 1, 1]} : vector<9x32x10xbf16> to vector<1x32x10xbf16>
    %407 = vector.shape_cast %406 : vector<1x32x10xbf16> to vector<32x10xbf16>
    %c0_188 = arith.constant 0 : index
    %c275_189 = arith.constant 275 : index
    %408 = vector.load %arg9[%c0_188, %c275_189] : memref<10x580xbf16, #tpu.memory_space<vmem>>, vector<10x128xbf16>
    %cst_190 = arith.constant dense<0.000000e+00> : vector<32x128xf32>
    %409 = tpu.matmul %407, %408, %cst_190 {dimension_numbers = #tpu.dot_dimension_numbers<[1], [0], [0], [1], [0, 0, 1, 1], [], []>} : vector<32x10xbf16>, vector<10x128xbf16>, vector<32x128xf32> -> vector<32x128xf32>
    %410 = arith.addf %405, %409 : vector<32x128xf32>
    %411 = vector.extract_strided_slice %410 {offsets = [0, 0], sizes = [5, 128], strides = [1, 1]} : vector<32x128xf32> to vector<5x128xf32>
    %412 = vector.broadcast %275 : vector<5x1xf32> to vector<5x128xf32>
    %413 = arith.addf %411, %412 : vector<5x128xf32>
    %cst_191 = arith.constant 0.000000e+00 : f32
    %414 = vector.broadcast %cst_191 : f32 to vector<5x128xf32>
    %415 = arith.subf %414, %413 : vector<5x128xf32>
    %416 = math.exp %415 : vector<5x128xf32>
    %cst_192 = arith.constant 1.000000e+00 : f32
    %417 = vector.broadcast %cst_192 : f32 to vector<5x128xf32>
    %418 = arith.addf %417, %416 : vector<5x128xf32>
    %419 = tpu.reciprocal %418 {approx = true} : vector<5x128xf32> -> vector<5x128xf32>
    %420 = vector.extract_strided_slice %410 {offsets = [8, 0], sizes = [5, 128], strides = [1, 1]} : vector<32x128xf32> to vector<5x128xf32>
    %421 = vector.broadcast %276 : vector<5x1xf32> to vector<5x128xf32>
    %422 = arith.addf %420, %421 : vector<5x128xf32>
    %cst_193 = arith.constant 0.000000e+00 : f32
    %423 = vector.broadcast %cst_193 : f32 to vector<5x128xf32>
    %424 = arith.subf %423, %422 : vector<5x128xf32>
    %425 = math.exp %424 : vector<5x128xf32>
    %cst_194 = arith.constant 1.000000e+00 : f32
    %426 = vector.broadcast %cst_194 : f32 to vector<5x128xf32>
    %427 = arith.addf %426, %425 : vector<5x128xf32>
    %428 = tpu.reciprocal %427 {approx = true} : vector<5x128xf32> -> vector<5x128xf32>
    %429 = vector.extract_strided_slice %410 {offsets = [16, 0], sizes = [5, 128], strides = [1, 1]} : vector<32x128xf32> to vector<5x128xf32>
    %430 = vector.broadcast %277 : vector<5x1xf32> to vector<5x128xf32>
    %431 = arith.addf %429, %430 : vector<5x128xf32>
    %cst_195 = arith.constant 0.000000e+00 : f32
    %432 = vector.broadcast %cst_195 : f32 to vector<5x128xf32>
    %433 = arith.subf %432, %431 : vector<5x128xf32>
    %434 = math.exp %433 : vector<5x128xf32>
    %cst_196 = arith.constant 1.000000e+00 : f32
    %435 = vector.broadcast %cst_196 : f32 to vector<5x128xf32>
    %436 = arith.addf %435, %434 : vector<5x128xf32>
    %437 = tpu.reciprocal %436 {approx = true} : vector<5x128xf32> -> vector<5x128xf32>
    %438 = vector.extract_strided_slice %410 {offsets = [24, 0], sizes = [5, 128], strides = [1, 1]} : vector<32x128xf32> to vector<5x128xf32>
    %439 = vector.broadcast %278 : vector<5x1xf32> to vector<5x128xf32>
    %440 = arith.addf %438, %439 : vector<5x128xf32>
    %441 = math.tanh %440 : vector<5x128xf32>
    %c0_197 = arith.constant 0 : index
    %c128_198 = arith.constant 128 : index
    %442 = vector.load %arg11[%c0_197, %c128_198] : memref<5x324xf32, #tpu.memory_space<vmem>>, vector<5x128xf32>
    %443 = arith.mulf %428, %442 : vector<5x128xf32>
    %444 = arith.mulf %419, %441 : vector<5x128xf32>
    %445 = arith.addf %443, %444 : vector<5x128xf32>
    %c0_199 = arith.constant 0 : index
    %c128_200 = arith.constant 128 : index
    %446 = vector.load %arg11[%c0_199, %c128_200] : memref<5x324xf32, #tpu.memory_space<vmem>>, vector<5x128xf32>
    tpu.vector_store %arg11[%c0_199, %c128_200], %445 {strides = array<i32>} : memref<5x324xf32, #tpu.memory_space<vmem>>, vector<5x128xf32>,
    %447 = math.tanh %445 : vector<5x128xf32>
    %448 = arith.mulf %437, %447 : vector<5x128xf32>
    %c0_201 = arith.constant 0 : index
    %c128_202 = arith.constant 128 : index
    %449 = vector.load %arg6[%c0_201, %c128_202] : memref<1x324xf32, #tpu.memory_space<vmem>>, vector<1x128xf32>
    %450 = vector.broadcast %449 : vector<1x128xf32> to vector<5x128xf32>
    %451 = arith.mulf %448, %450 : vector<5x128xf32>
    %c0_203 = arith.constant 0 : index
    %c0_204 = arith.constant 0 : index
    %c128_205 = arith.constant 128 : index
    %452 = vector.load %arg7[%c0_203, %c0_204, %c128_205] : memref<1x5x324xf32, #tpu.memory_space<vmem>>, vector<1x5x128xf32>
    %453 = vector.shape_cast %452 : vector<1x5x128xf32> to vector<5x128xf32>
    %454 = vector.shape_cast %451 : vector<5x128xf32> to vector<1x5x128xf32>
    tpu.vector_store %arg7[%c0_203, %c0_204, %c128_205], %454 {strides = array<i32>} : memref<1x5x324xf32, #tpu.memory_space<vmem>>, vector<1x5x128xf32>,
    %455 = vector.extract_strided_slice %7 {offsets = [0, 0, 0], sizes = [1, 32, 10], strides = [1, 1, 1]} : vector<9x32x10xbf16> to vector<1x32x10xbf16>
    %456 = vector.shape_cast %455 : vector<1x32x10xbf16> to vector<32x10xbf16>
    %c0_206 = arith.constant 0 : index
    %c365_207 = arith.constant 365 : index
    %457 = vector.load %arg9[%c0_206, %c365_207] : memref<10x580xbf16, #tpu.memory_space<vmem>>, vector<10x68xbf16>
    %cst_208 = arith.constant dense<0.000000e+00> : vector<32x68xf32>
    %458 = tpu.matmul %456, %457, %cst_208 {dimension_numbers = #tpu.dot_dimension_numbers<[1], [0], [0], [1], [0, 0, 1, 1], [], []>} : vector<32x10xbf16>, vector<10x68xbf16>, vector<32x68xf32> -> vector<32x68xf32>
    %459 = vector.extract_strided_slice %7 {offsets = [1, 0, 0], sizes = [1, 32, 10], strides = [1, 1, 1]} : vector<9x32x10xbf16> to vector<1x32x10xbf16>
    %460 = vector.shape_cast %459 : vector<1x32x10xbf16> to vector<32x10xbf16>
    %c0_209 = arith.constant 0 : index
    %c366_210 = arith.constant 366 : index
    %461 = vector.load %arg9[%c0_209, %c366_210] : memref<10x580xbf16, #tpu.memory_space<vmem>>, vector<10x68xbf16>
    %cst_211 = arith.constant dense<0.000000e+00> : vector<32x68xf32>
    %462 = tpu.matmul %460, %461, %cst_211 {dimension_numbers = #tpu.dot_dimension_numbers<[1], [0], [0], [1], [0, 0, 1, 1], [], []>} : vector<32x10xbf16>, vector<10x68xbf16>, vector<32x68xf32> -> vector<32x68xf32>
    %463 = arith.addf %458, %462 : vector<32x68xf32>
    %464 = vector.extract_strided_slice %7 {offsets = [2, 0, 0], sizes = [1, 32, 10], strides = [1, 1, 1]} : vector<9x32x10xbf16> to vector<1x32x10xbf16>
    %465 = vector.shape_cast %464 : vector<1x32x10xbf16> to vector<32x10xbf16>
    %c0_212 = arith.constant 0 : index
    %c367_213 = arith.constant 367 : index
    %466 = vector.load %arg9[%c0_212, %c367_213] : memref<10x580xbf16, #tpu.memory_space<vmem>>, vector<10x68xbf16>
    %cst_214 = arith.constant dense<0.000000e+00> : vector<32x68xf32>
    %467 = tpu.matmul %465, %466, %cst_214 {dimension_numbers = #tpu.dot_dimension_numbers<[1], [0], [0], [1], [0, 0, 1, 1], [], []>} : vector<32x10xbf16>, vector<10x68xbf16>, vector<32x68xf32> -> vector<32x68xf32>
    %468 = arith.addf %463, %467 : vector<32x68xf32>
    %469 = vector.extract_strided_slice %7 {offsets = [3, 0, 0], sizes = [1, 32, 10], strides = [1, 1, 1]} : vector<9x32x10xbf16> to vector<1x32x10xbf16>
    %470 = vector.shape_cast %469 : vector<1x32x10xbf16> to vector<32x10xbf16>
    %c0_215 = arith.constant 0 : index
    %c383_216 = arith.constant 383 : index
    %471 = vector.load %arg9[%c0_215, %c383_216] : memref<10x580xbf16, #tpu.memory_space<vmem>>, vector<10x68xbf16>
    %cst_217 = arith.constant dense<0.000000e+00> : vector<32x68xf32>
    %472 = tpu.matmul %470, %471, %cst_217 {dimension_numbers = #tpu.dot_dimension_numbers<[1], [0], [0], [1], [0, 0, 1, 1], [], []>} : vector<32x10xbf16>, vector<10x68xbf16>, vector<32x68xf32> -> vector<32x68xf32>
    %473 = arith.addf %468, %472 : vector<32x68xf32>
    %474 = vector.extract_strided_slice %7 {offsets = [4, 0, 0], sizes = [1, 32, 10], strides = [1, 1, 1]} : vector<9x32x10xbf16> to vector<1x32x10xbf16>
    %475 = vector.shape_cast %474 : vector<1x32x10xbf16> to vector<32x10xbf16>
    %c0_218 = arith.constant 0 : index
    %c384_219 = arith.constant 384 : index
    %476 = vector.load %arg9[%c0_218, %c384_219] : memref<10x580xbf16, #tpu.memory_space<vmem>>, vector<10x68xbf16>
    %cst_220 = arith.constant dense<0.000000e+00> : vector<32x68xf32>
    %477 = tpu.matmul %475, %476, %cst_220 {dimension_numbers = #tpu.dot_dimension_numbers<[1], [0], [0], [1], [0, 0, 1, 1], [], []>} : vector<32x10xbf16>, vector<10x68xbf16>, vector<32x68xf32> -> vector<32x68xf32>
    %478 = arith.addf %473, %477 : vector<32x68xf32>
    %479 = vector.extract_strided_slice %7 {offsets = [5, 0, 0], sizes = [1, 32, 10], strides = [1, 1, 1]} : vector<9x32x10xbf16> to vector<1x32x10xbf16>
    %480 = vector.shape_cast %479 : vector<1x32x10xbf16> to vector<32x10xbf16>
    %c0_221 = arith.constant 0 : index
    %c385_222 = arith.constant 385 : index
    %481 = vector.load %arg9[%c0_221, %c385_222] : memref<10x580xbf16, #tpu.memory_space<vmem>>, vector<10x68xbf16>
    %cst_223 = arith.constant dense<0.000000e+00> : vector<32x68xf32>
    %482 = tpu.matmul %480, %481, %cst_223 {dimension_numbers = #tpu.dot_dimension_numbers<[1], [0], [0], [1], [0, 0, 1, 1], [], []>} : vector<32x10xbf16>, vector<10x68xbf16>, vector<32x68xf32> -> vector<32x68xf32>
    %483 = arith.addf %478, %482 : vector<32x68xf32>
    %484 = vector.extract_strided_slice %7 {offsets = [6, 0, 0], sizes = [1, 32, 10], strides = [1, 1, 1]} : vector<9x32x10xbf16> to vector<1x32x10xbf16>
    %485 = vector.shape_cast %484 : vector<1x32x10xbf16> to vector<32x10xbf16>
    %c0_224 = arith.constant 0 : index
    %c401_225 = arith.constant 401 : index
    %486 = vector.load %arg9[%c0_224, %c401_225] : memref<10x580xbf16, #tpu.memory_space<vmem>>, vector<10x68xbf16>
    %cst_226 = arith.constant dense<0.000000e+00> : vector<32x68xf32>
    %487 = tpu.matmul %485, %486, %cst_226 {dimension_numbers = #tpu.dot_dimension_numbers<[1], [0], [0], [1], [0, 0, 1, 1], [], []>} : vector<32x10xbf16>, vector<10x68xbf16>, vector<32x68xf32> -> vector<32x68xf32>
    %488 = arith.addf %483, %487 : vector<32x68xf32>
    %489 = vector.extract_strided_slice %7 {offsets = [7, 0, 0], sizes = [1, 32, 10], strides = [1, 1, 1]} : vector<9x32x10xbf16> to vector<1x32x10xbf16>
    %490 = vector.shape_cast %489 : vector<1x32x10xbf16> to vector<32x10xbf16>
    %c0_227 = arith.constant 0 : index
    %c402_228 = arith.constant 402 : index
    %491 = vector.load %arg9[%c0_227, %c402_228] : memref<10x580xbf16, #tpu.memory_space<vmem>>, vector<10x68xbf16>
    %cst_229 = arith.constant dense<0.000000e+00> : vector<32x68xf32>
    %492 = tpu.matmul %490, %491, %cst_229 {dimension_numbers = #tpu.dot_dimension_numbers<[1], [0], [0], [1], [0, 0, 1, 1], [], []>} : vector<32x10xbf16>, vector<10x68xbf16>, vector<32x68xf32> -> vector<32x68xf32>
    %493 = arith.addf %488, %492 : vector<32x68xf32>
    %494 = vector.extract_strided_slice %7 {offsets = [8, 0, 0], sizes = [1, 32, 10], strides = [1, 1, 1]} : vector<9x32x10xbf16> to vector<1x32x10xbf16>
    %495 = vector.shape_cast %494 : vector<1x32x10xbf16> to vector<32x10xbf16>
    %c0_230 = arith.constant 0 : index
    %c403_231 = arith.constant 403 : index
    %496 = vector.load %arg9[%c0_230, %c403_231] : memref<10x580xbf16, #tpu.memory_space<vmem>>, vector<10x68xbf16>
    %cst_232 = arith.constant dense<0.000000e+00> : vector<32x68xf32>
    %497 = tpu.matmul %495, %496, %cst_232 {dimension_numbers = #tpu.dot_dimension_numbers<[1], [0], [0], [1], [0, 0, 1, 1], [], []>} : vector<32x10xbf16>, vector<10x68xbf16>, vector<32x68xf32> -> vector<32x68xf32>
    %498 = arith.addf %493, %497 : vector<32x68xf32>
    %499 = vector.extract_strided_slice %498 {offsets = [0, 0], sizes = [5, 68], strides = [1, 1]} : vector<32x68xf32> to vector<5x68xf32>
    %500 = vector.broadcast %275 : vector<5x1xf32> to vector<5x68xf32>
    %501 = arith.addf %499, %500 : vector<5x68xf32>
    %cst_233 = arith.constant 0.000000e+00 : f32
    %502 = vector.broadcast %cst_233 : f32 to vector<5x68xf32>
    %503 = arith.subf %502, %501 : vector<5x68xf32>
    %504 = math.exp %503 : vector<5x68xf32>
    %cst_234 = arith.constant 1.000000e+00 : f32
    %505 = vector.broadcast %cst_234 : f32 to vector<5x68xf32>
    %506 = arith.addf %505, %504 : vector<5x68xf32>
    %507 = tpu.reciprocal %506 {approx = true} : vector<5x68xf32> -> vector<5x68xf32>
    %508 = vector.extract_strided_slice %498 {offsets = [8, 0], sizes = [5, 68], strides = [1, 1]} : vector<32x68xf32> to vector<5x68xf32>
    %509 = vector.broadcast %276 : vector<5x1xf32> to vector<5x68xf32>
    %510 = arith.addf %508, %509 : vector<5x68xf32>
    %cst_235 = arith.constant 0.000000e+00 : f32
    %511 = vector.broadcast %cst_235 : f32 to vector<5x68xf32>
    %512 = arith.subf %511, %510 : vector<5x68xf32>
    %513 = math.exp %512 : vector<5x68xf32>
    %cst_236 = arith.constant 1.000000e+00 : f32
    %514 = vector.broadcast %cst_236 : f32 to vector<5x68xf32>
    %515 = arith.addf %514, %513 : vector<5x68xf32>
    %516 = tpu.reciprocal %515 {approx = true} : vector<5x68xf32> -> vector<5x68xf32>
    %517 = vector.extract_strided_slice %498 {offsets = [16, 0], sizes = [5, 68], strides = [1, 1]} : vector<32x68xf32> to vector<5x68xf32>
    %518 = vector.broadcast %277 : vector<5x1xf32> to vector<5x68xf32>
    %519 = arith.addf %517, %518 : vector<5x68xf32>
    %cst_237 = arith.constant 0.000000e+00 : f32
    %520 = vector.broadcast %cst_237 : f32 to vector<5x68xf32>
    %521 = arith.subf %520, %519 : vector<5x68xf32>
    %522 = math.exp %521 : vector<5x68xf32>
    %cst_238 = arith.constant 1.000000e+00 : f32
    %523 = vector.broadcast %cst_238 : f32 to vector<5x68xf32>
    %524 = arith.addf %523, %522 : vector<5x68xf32>
    %525 = tpu.reciprocal %524 {approx = true} : vector<5x68xf32> -> vector<5x68xf32>
    %526 = vector.extract_strided_slice %498 {offsets = [24, 0], sizes = [5, 68], strides = [1, 1]} : vector<32x68xf32> to vector<5x68xf32>
    %527 = vector.broadcast %278 : vector<5x1xf32> to vector<5x68xf32>
    %528 = arith.addf %526, %527 : vector<5x68xf32>
    %529 = math.tanh %528 : vector<5x68xf32>
    %c0_239 = arith.constant 0 : index
    %c256_240 = arith.constant 256 : index
    %530 = vector.load %arg11[%c0_239, %c256_240] : memref<5x324xf32, #tpu.memory_space<vmem>>, vector<5x68xf32>
    %531 = arith.mulf %516, %530 : vector<5x68xf32>
    %532 = arith.mulf %507, %529 : vector<5x68xf32>
    %533 = arith.addf %531, %532 : vector<5x68xf32>
    %c0_241 = arith.constant 0 : index
    %c256_242 = arith.constant 256 : index
    %534 = vector.load %arg11[%c0_241, %c256_242] : memref<5x324xf32, #tpu.memory_space<vmem>>, vector<5x68xf32>
    tpu.vector_store %arg11[%c0_241, %c256_242], %533 {strides = array<i32>} : memref<5x324xf32, #tpu.memory_space<vmem>>, vector<5x68xf32>,
    %535 = math.tanh %533 : vector<5x68xf32>
    %536 = arith.mulf %525, %535 : vector<5x68xf32>
    %c0_243 = arith.constant 0 : index
    %c256_244 = arith.constant 256 : index
    %537 = vector.load %arg6[%c0_243, %c256_244] : memref<1x324xf32, #tpu.memory_space<vmem>>, vector<1x68xf32>
    %538 = vector.broadcast %537 : vector<1x68xf32> to vector<5x68xf32>
    %539 = arith.mulf %536, %538 : vector<5x68xf32>
    %c0_245 = arith.constant 0 : index
    %c0_246 = arith.constant 0 : index
    %c256_247 = arith.constant 256 : index
    %540 = vector.load %arg7[%c0_245, %c0_246, %c256_247] : memref<1x5x324xf32, #tpu.memory_space<vmem>>, vector<1x5x68xf32>
    %541 = vector.shape_cast %540 : vector<1x5x68xf32> to vector<5x68xf32>
    %542 = vector.shape_cast %539 : vector<5x68xf32> to vector<1x5x68xf32>
    tpu.vector_store %arg7[%c0_245, %c0_246, %c256_247], %542 {strides = array<i32>} : memref<1x5x324xf32, #tpu.memory_space<vmem>>, vector<1x5x68xf32>,
    %c0_248 = arith.constant 0 : index
    %c0_249 = arith.constant 0 : index
    %c0_250 = arith.constant 0 : index
    %543 = vector.load %arg7[%c0_248, %c0_249, %c0_250] : memref<1x5x324xf32, #tpu.memory_space<vmem>>, vector<1x5x324xf32>
    %544 = vector.shape_cast %543 : vector<1x5x324xf32> to vector<5x324xf32>
    %545 = arith.truncf %544 : vector<5x324xf32> to vector<5x324xbf16>
    %c5_251 = arith.constant 5 : index
    %c128_252 = arith.constant 128 : index
    %546 = vector.load %arg9[%c5_251, %c128_252] : memref<10x580xbf16, #tpu.memory_space<vmem>>, vector<5x324xbf16>
    tpu.vector_store %arg9[%c5_251, %c128_252], %545 {strides = array<i32>} : memref<10x580xbf16, #tpu.memory_space<vmem>>, vector<5x324xbf16>,
    return
  }
  func.func @transform_0(%arg0: i32) -> (i32, i32, i32) {
    %c0_i32 = arith.constant 0 : i32
    %c0_i32_0 = arith.constant 0 : i32
    %c0_i32_1 = arith.constant 0 : i32
    return %arg0, %c0_i32, %c0_i32_0 : i32, i32, i32
  }
  func.func @transform_1(%arg0: i32) -> (i32, i32, i32) {
    %c0_i32 = arith.constant 0 : i32
    %c0_i32_0 = arith.constant 0 : i32
    %c0_i32_1 = arith.constant 0 : i32
    %c0_i32_2 = arith.constant 0 : i32
    return %c0_i32, %c0_i32_0, %c0_i32_1 : i32, i32, i32
  }
  func.func @transform_2(%arg0: i32) -> (i32, i32) {
    %c0_i32 = arith.constant 0 : i32
    %c0_i32_0 = arith.constant 0 : i32
    %c0_i32_1 = arith.constant 0 : i32
    return %c0_i32, %c0_i32_0 : i32, i32
  }
  func.func @transform_3(%arg0: i32) -> (i32, i32, i32) {
    %c0_i32 = arith.constant 0 : i32
    %c0_i32_0 = arith.constant 0 : i32
    %c0_i32_1 = arith.constant 0 : i32
    %c0_i32_2 = arith.constant 0 : i32
    return %c0_i32, %c0_i32_0, %c0_i32_1 : i32, i32, i32
  }
  func.func @transform_4(%arg0: i32) -> (i32, i32) {
    %c0_i32 = arith.constant 0 : i32
    %c0_i32_0 = arith.constant 0 : i32
    %c0_i32_1 = arith.constant 0 : i32
    return %c0_i32, %c0_i32_0 : i32, i32
  }
  func.func @transform_5(%arg0: i32) -> (i32, i32) {
    %c0_i32 = arith.constant 0 : i32
    %c0_i32_0 = arith.constant 0 : i32
    %c0_i32_1 = arith.constant 0 : i32
    return %c0_i32, %c0_i32_0 : i32, i32
  }
  func.func @transform_6(%arg0: i32) -> (i32, i32, i32) {
    %c0_i32 = arith.constant 0 : i32
    %c0_i32_0 = arith.constant 0 : i32
    %c0_i32_1 = arith.constant 0 : i32
    return %arg0, %c0_i32, %c0_i32_0 : i32, i32, i32
  }
}

</mosaic_0001>

<bundles_post_ra>
// kernel: tpu_custom_call.1
= control target key start
LH: loop header
LB: loop body
LE: loop exit
PB: predicated region body
PF: predicated region fallthrough
CT: control target
= control target key end

     0   :  { %11 = vsyncpa [#allocation7], 0  ;;  %s7078_s0 = inlined_call_operand.hbm [shape: bf16[4,5,324], index: 0, kind: input, shape index: {}]   ;;  %s7079_s1 = inlined_call_operand.hbm [shape: bf16[9,32,10], index: 1, kind: input, shape index: {}]   ;;  %s7080_s2 = inlined_call_operand.hbm [shape: f32[32,1], index: 2, kind: input, shape index: {}]   ;;  %s7081_s3 = inlined_call_operand.hbm [shape: bf16[9,32,10], index: 3, kind: input, shape index: {}]   ;;  %s7082_s4 = inlined_call_operand.hbm [shape: f32[32,1], index: 4, kind: input, shape index: {}]   ;;  %s7083_s5 = inlined_call_operand.hbm [shape: f32[1,324], index: 5, kind: input, shape index: {}]   ;;  %s7084_s6 = inlined_call_operand.hbm [shape: f32[4,5,324], index: 6, kind: output, shape index: {}]  }
   0x1   :  { %13 = vsyncpa [#allocation7 + $0x1], 0 }
   0x2   :  { %14 = vsyncpa [#allocation10], 0 }
   0x3   :  { %15 = vsyncpa [#allocation13], 0 }
   0x4   :  { %16 = vsyncpa [#allocation16], 0 }
   0x5   :  { %17 = vsyncpa [#allocation8], 0 }
   0x6   :  { %19 = vsyncpa [#allocation8 + $0x1], 0  ;;  %s6096_s21 = smov 0   ;;  %s6098_s22 = smov 0  }
   0x7   :  { %s6100_s23 = smov 0   ;;  %s6102_s24 = smov 0  }
   0x8 LB: > { %s6039_s25 = smov [#allocation9]   ;;  %s6117_s27 = sadd.s32 4294967295, %s6037_s24   ;;  %s6037_s24 = sphi %s6102_s24, %s7124_s24   ;;  %s6033_s23 = sphi %s6100_s23, %s7123_s23   ;;  %s6029_s22 = sphi %s6098_s22, %s7122_s22   ;;  %s6025_s21 = sphi %s6096_s21, %s7121_s21  }
   0x9   : > { %s199_s26 = sshll.u32 %s6039_s25, 4  ;;  %p4580_p0 = scmp.ge.s32.totalorder %s6037_s24, 1  ;;  %s6123_s26 = int_to_ptr.vmem [resolvable:$true] %s199_s26 }
   0xa   : > { %p7085_p1 = scmp.eq.s32.totalorder %s6117_s27, 0  ;;  %p187_p2 = scmp.lt.s32.totalorder %s6037_s24, 5 }
   0xb   : > { %s6040_s29 = smov [#allocation12]   ;;  %s6041_s8 = smov [#allocation11]  }
   0xc   : > { %p6125_p4 = pnand %p4580_p0, %p187_p2  ;;  %s225_s30 = sshll.u32 %s6040_s29, 4  ;;  %s6137_s30 = int_to_ptr.vmem [resolvable:$true] %s225_s30 }
   0xd   : > { %s212_s9 = sshll.u32 %s6041_s8, 4  ;;  %s5789_s12 = scalar_lea.hbm %s7079_s1, 2304  ;;  %s6139_s9 = int_to_ptr.vmem [resolvable:$true] %s212_s9 }
   0xe   : > { %s7090_s28 = scalar_select %p6125_p4, 1, 0 }
   0xf   : > { %p5539_p5 = pneg %p6125_p4  ;;  %p5790_p7 = scmp.ne.s32.totalorder %s7079_s1, %s5789_s12 }
  0x10   : > { %p5796_p11 = scmp.lt.u32.totalorder %s5789_s12, %s7079_s1 }
  0x11   : > { %p6133_p6 = pnand %p5539_p5, %p7085_p1 }
  0x13   : > { %p6149_p8 = pneg %p6133_p6 }
  0x15   : > { %p5792_p9 = pnand %p6149_p8, %p5790_p7 }
  0x17   : > { %p5793_p10 = pneg %p5792_p9 }
  0x19   : > { %p5798_p12 = pnand %p5796_p11, %p5793_p10 }
  0x1b   : > { %5801 = shalt.err (!%p5798_p12)
}
  0x1c   : > { %s5802_s18 = scalar_lea.vmem %s6123_s26, 2304  ;;  %p5810_p5 = scmp.lt.s32.totalorder %s6123_s26, %s6123_s26 }
  0x1d   : > { %p5803_p13 = scmp.ne.s32.totalorder %s6123_s26, %s5802_s18  ;;  %p5811_p3 = scmp.lt.s32.totalorder %s5802_s18, %s5802_s18 }
  0x1f   : > { %p5805_p0 = pnand %p5803_p13, %p6149_p8  ;;  %p5812_p7 = por %p5811_p3, %p5810_p5 }
  0x21   : > { %p5806_p2 = pneg %p5805_p0 }
  0x23   : > { %p5813_p9 = pnand %p5812_p7, %p5806_p2 }
  0x25   : > { %5816 = shalt.err (!%p5813_p9)
}
  0x26   : > { %s6042_s19 = smov 64   ;;  %s6043_s20 = smov 4  }
  0x27   : > { %5542 = dma.hbm_to_vmem [thread:$0]  (!%p6133_p6), %s7079_s1, 2304, %s6123_s26, [#allocation10], %s6042_s19, %s6042_s19, %s6043_s20  }
  0x28   : > { %s5817_s11 = scalar_lea.hbm %s7081_s3, 2304 }
  0x29   : > { %p5818_p3 = scmp.ne.s32.totalorder %s7081_s3, %s5817_s11  ;;  %p5824_p12 = scmp.lt.u32.totalorder %s5817_s11, %s7081_s3 }
  0x2b   : > { %p5820_p10 = pnand %p5818_p3, %p6149_p8 }
  0x2d   : > { %p5821_p11 = pneg %p5820_p10 }
  0x2f   : > { %p5826_p13 = pnand %p5824_p12, %p5821_p11 }
  0x31   : > { %5829 = shalt.err (!%p5826_p13)
}
  0x32   : > { %s5830_s26 = scalar_lea.vmem %s6137_s30, 2304  ;;  %p5838_p7 = scmp.lt.s32.totalorder %s6137_s30, %s6137_s30 }
  0x33   : > { %p5831_p0 = scmp.ne.s32.totalorder %s6137_s30, %s5830_s26  ;;  %p5839_p9 = scmp.lt.s32.totalorder %s5830_s26, %s5830_s26 }
  0x35   : > { %p5833_p2 = pnand %p5831_p0, %p6149_p8  ;;  %p5840_p3 = por %p5839_p9, %p5838_p7 }
  0x37   : > { %p5834_p5 = pneg %p5833_p2 }
  0x39   : > { %p5841_p10 = pnand %p5840_p3, %p5834_p5 }
  0x3b   : > { %5844 = shalt.err (!%p5841_p10)
}
  0x3c   : > { %5548 = dma.hbm_to_vmem [thread:$0]  (!%p6133_p6), %s7081_s3, 2304, %s6137_s30, [#allocation13], %s6042_s19, %s6042_s19, %s6043_s20  }
  0x3d   : > { %s5845_s8 = scalar_lea.hbm %s7080_s2, 512 }
  0x3e   : > { %p5846_p11 = scmp.ne.s32.totalorder %s7080_s2, %s5845_s8  ;;  %p5852_p0 = scmp.lt.u32.totalorder %s5845_s8, %s7080_s2 }
  0x40   : > { %p5848_p12 = pnand %p5846_p11, %p6149_p8 }
  0x42   : > { %p5849_p13 = pneg %p5848_p12 }
  0x44   : > { %p5854_p2 = pnand %p5852_p0, %p5849_p13 }
  0x46   : > { %5857 = shalt.err (!%p5854_p2)
}
  0x47   : > { %s5858_s30 = scalar_lea.vmem %s6139_s9, 512  ;;  %p5866_p3 = scmp.lt.s32.totalorder %s6139_s9, %s6139_s9 }
  0x48   : > { %p5859_p5 = scmp.ne.s32.totalorder %s6139_s9, %s5858_s30  ;;  %p5867_p10 = scmp.lt.s32.totalorder %s5858_s30, %s5858_s30 }
  0x4a   : > { %p5861_p7 = pnand %p5859_p5, %p6149_p8  ;;  %p5868_p11 = por %p5867_p10, %p5866_p3 }
  0x4c   : > { %p5862_p9 = pneg %p5861_p7 }
  0x4e   : > { %p5869_p12 = pnand %p5868_p11, %p5862_p9 }
  0x50   : > { %5872 = shalt.err (!%p5869_p12)
}
  0x51   : > { %s6044_s19 = smov 128   ;;  %s6045_s20 = smov 8  }
  0x52   : > { %5545 = dma.hbm_to_vmem [thread:$0]  (!%p6133_p6), %s7080_s2, 512, %s6139_s9, [#allocation10], %s6044_s19, %s6044_s19, %s6045_s20  }
  0x53   : > { %s6046_s26 = smov [#allocation14]   ;;  %s6047_s18 = smov [#allocation15]  }
  0x54   : > { %s238_s17 = sshll.u32 %s6046_s26, 4  ;;  %s252_s25 = sshll.u32 %s6047_s18, 4  ;;  %s239_s17 = int_to_ptr.vmem [resolvable:$true] %s238_s17  ;;  %s253_s25 = int_to_ptr.vmem [resolvable:$true] %s252_s25 }
  0x55   : > { %s5873_s10 = scalar_lea.hbm %s7082_s4, 512 }
  0x56   : > { %p5874_p13 = scmp.ne.s32.totalorder %s7082_s4, %s5873_s10  ;;  %p5880_p5 = scmp.lt.u32.totalorder %s5873_s10, %s7082_s4 }
  0x58   : > { %p5876_p0 = pnand %p5874_p13, %p6149_p8 }
  0x5a   : > { %p5877_p2 = pneg %p5876_p0 }
  0x5c   : > { %p5882_p7 = pnand %p5880_p5, %p5877_p2 }
  0x5e   : > { %5885 = shalt.err (!%p5882_p7)
}
  0x5f   : > { %s5886_s9 = scalar_lea.vmem %s239_s17, 512  ;;  %p5894_p11 = scmp.lt.s32.totalorder %s239_s17, %s239_s17 }
  0x60   : > { %p5887_p9 = scmp.ne.s32.totalorder %s239_s17, %s5886_s9  ;;  %p5895_p12 = scmp.lt.s32.totalorder %s5886_s9, %s5886_s9 }
  0x62   : > { %p5889_p3 = pnand %p5887_p9, %p6149_p8  ;;  %p5896_p1 = por %p5895_p12, %p5894_p11 }
  0x64   : > { %p5890_p10 = pneg %p5889_p3 }
  0x66   : > { %p5897_p4 = pnand %p5896_p1, %p5890_p10 }
  0x68   : > { %5900 = shalt.err (!%p5897_p4)
}
  0x69   : > { %5551 = dma.hbm_to_vmem [thread:$0]  (!%p6133_p6), %s7082_s4, 512, %s239_s17, [#allocation13], %s6044_s19, %s6044_s19, %s6045_s20  }
  0x6a   : > { %s5901_s29 = scalar_lea.hbm %s7083_s5, 48 }
  0x6b   : > { %p5902_p13 = scmp.ne.s32.totalorder %s7083_s5, %s5901_s29  ;;  %p5908_p4 = scmp.lt.u32.totalorder %s5901_s29, %s7083_s5 }
  0x6d   : > { %p5904_p0 = pnand %p5902_p13, %p6149_p8 }
  0x6f   : > { %p5905_p1 = pneg %p5904_p0 }
  0x71   : > { %p5910_p2 = pnand %p5908_p4, %p5905_p1 }
  0x73   : > { %5913 = shalt.err (!%p5910_p2)
}
  0x74   : > { %s5914_s13 = scalar_lea.vmem %s253_s25, 48  ;;  %s5921_s19 = scalar_lea.vmem %s253_s25, 64 }
  0x75   : > { %p5915_p5 = scmp.ne.s32.totalorder %s253_s25, %s5914_s13  ;;  %p5922_p3 = scmp.lt.s32.totalorder %s253_s25, %s253_s25 }
  0x76   : > { %p5923_p10 = scmp.lt.s32.totalorder %s5921_s19, %s5914_s13 }
  0x77   : > { %p5917_p7 = pnand %p5915_p5, %p6149_p8 }
  0x78   : > { %p5924_p11 = por %p5923_p10, %p5922_p3 }
  0x79   : > { %p5918_p9 = pneg %p5917_p7 }
  0x7b   : > { %p5925_p12 = pnand %p5924_p11, %p5918_p9 }
  0x7d   : > { %5928 = shalt.err (!%p5925_p12)
}
  0x7e   : > { %5554 = dma.hbm_to_vmem [thread:$0]  (!%p6133_p6), %s7083_s5, 48, %s253_s25, [#allocation16]  }
  0x7f   : > { %s4579_s15 = sadd.s32 4294967294, %s6037_s24   ;;  %s6254_s7 = sadd.s32 1, %s6037_s24  }
  0x80   : > { %s32_s30 = sadd.s32 1, %s6033_s23  ;;  %s29_s9 = ssub.s32 %s6037_s24, %s6254_s7 }
  0x81   : > { %p39_p8 = scmp.ne.s32.totalorder %s6033_s23, %s6029_s22  ;;  %p30_p13 = scmp.eq.s32.totalorder %s29_s9, 0 }
  0x82   : > { %p40_p0 = scmp.eq.s32.totalorder %s6037_s24, 0  ;;  %p45_p1 = scmp.ne.s32.totalorder %s6029_s22, %s6025_s21 }
  0x83   : > { %p174_p4 = scmp.eq.s32.totalorder %s6117_s27, 3  ;;  %p7093_p5 = scmp.eq.s32.totalorder %s6117_s27, 0 }
  0x84   : > { %s6266_s14 = scalar_select %p30_p13, %s6033_s23, %s32_s30  }
  0x85   : > { %p41_p2 = por %p40_p0, %p39_p8  ;;  %p6270_p7 = por %p7093_p5, %p45_p1 }
  0x86   : > { %p6274_p6 = por %p174_p4, %p39_p8  ;;  %p180_p9 = scmp.eq.s32.totalorder %s4579_s15, 3 }
  0x87   : > { %p5568_p3 = scmp.lt.s32.totalorder %s6037_s24, 4  ;;  %s263_s26 = sand.u32 1, %s6033_s23  }
  0x88   : > { %s7095_s25 = scalar_select %p6274_p6, 1, 0 }
  0x89   : > { %p6280_p10 = por %p180_p9, %p45_p1  ;;  %s5510_s29 = smul.u32 12, %s263_s26 }
  0x8a   : > { %p6284_p11 = pnand %p5568_p3, %p41_p2  ;;  %s5511_s10 = smul.u32 192, %s6037_s24 }
  0x8b   : > { %s7096_s18 = scalar_select %p6280_p10, 1, 0 }
  0x8c   : > { %s6292_s13 = scalar_lea.hbm %s7078_s0, %s5511_s10  ;;  %s267_s19 = scalar_lea.vmem [#allocation6], %s5510_s29 }
  0x8d   : > { %s275_s20 = sshll.u32 %s267_s19, 4  ;;  %s264_s17 = scalar_lea.sflag [#allocation7], %s263_s26  ;;  %s6294_s20 = int_to_ptr.vmem [resolvable:$true] %s275_s20 }
  0x8e   : > { %s5929_s15 = scalar_lea.hbm %s6292_s13, 192  ;;  %p5931_p8 = pneg %p6284_p11 }
  0x8f   : > { %p5930_p12 = scmp.ne.s32.totalorder %s6292_s13, %s5929_s15  ;;  %s5934_s10 = scalar_lea.hbm %s7078_s0, 768 }
  0x90   : > { %p5935_p1 = scmp.lt.u32.totalorder %s6292_s13, %s7078_s0  ;;  %p5936_p4 = scmp.lt.u32.totalorder %s5934_s10, %s5929_s15 }
  0x91   : > { %p5932_p13 = pnand %p5931_p8, %p5930_p12  ;;  %p5938_p5 = scmp.lt.u32.totalorder %s5929_s15, %s6292_s13 }
  0x92   : > { %p5937_p2 = por %p5936_p4, %p5935_p1 }
  0x93   : > { %p5933_p0 = pneg %p5932_p13 }
  0x94   : > { %p5939_p9 = por %p5938_p5, %p5937_p2 }
  0x96   : > { %p5940_p3 = pnand %p5939_p9, %p5933_p0 }
  0x98   : > { %5943 = shalt.err (!%p5940_p3)
}
  0x99   : > { %s5944_s26 = scalar_lea.vmem %s6294_s20, 192  ;;  %s6048_s29 = smov [#allocation6]  }
  0x9a   : > { %p5945_p12 = scmp.ne.s32.totalorder %s6294_s20, %s5944_s26  ;;  %s5949_s19 = sshll.u32 %s6048_s29, 4  ;;  %s5950_s19 = int_to_ptr.vmem [resolvable:$false] %s5949_s19 }
  0x9b   : > { %s5951_s30 = scalar_lea.vmem %s5950_s19, 384  ;;  %p5952_p6 = scmp.lt.s32.totalorder %s6294_s20, %s5950_s19 }
  0x9c   : > { %p5947_p13 = pnand %p5945_p12, %p5931_p8  ;;  %p5953_p1 = scmp.lt.s32.totalorder %s5951_s30, %s5944_s26 }
  0x9e   : > { %p5948_p10 = pneg %p5947_p13  ;;  %p5954_p4 = por %p5953_p1, %p5952_p6 }
  0xa0   : > { %p5955_p2 = pnand %p5954_p4, %p5948_p10 }
  0xa2   : > { %5958 = shalt.err (!%p5955_p2)
}
  0xa3   : > { %5558 = dma.hbm_to_vmem [thread:$0]  (!%p6284_p11), %s6292_s13, 192, %s6294_s20, %s264_s17  }
  0xa4   : > { %p7098_p0 = scmp.ne.s32.totalorder %s7090_s28, 0 }
  0xa5   : > { %s6324_s15 = sand.u32 (!%p7098_p0), 1, %s6029_s22  }
  0xa6   : > { %284 = sbr.rel (%p7098_p0) target bundleno = 1307 (0x51b), region = 44  ;;  %s287_s10 = scalar_lea.sflag (!%p7098_p0), [#allocation7], %s6324_s15 }
  0xa7   : > { %s5512_s9 = smul.u32 (!%p7098_p0), 12, %s6324_s15 }
  0xa9   : > { %s6328_s11 = scalar_lea.vmem (!%p7098_p0), [#allocation6], %s5512_s9 }
  0xad   : > { %6004 = dma.done.wait (%p6270_p7), %s287_s10, 192  }
  0xae   : > { %6006 = vsyncadd (%p6270_p7), %s287_s10, 4294967104  ;;  %p7099_p6 = scmp.eq.s32.totalorder %s6117_s27, 0 }
  0xb0   : > { %6008 = dma.done.wait (%p7099_p6), [#allocation10], 2816   ;;  %p7100_p10 = pmov %p7099_p6 }
  0xb1   : > { %p7101_p11 = pmov %p7099_p6 }
  0xb2   : > { %6010 = vsyncadd (%p7100_p10), [#allocation10], 4294964480 }
  0xb3   : > { %6012 = dma.done.wait (%p7101_p11), [#allocation13], 2816   ;;  %p7102_p8 = pmov %p7099_p6 }
  0xb4   : > { %p7103_p5 = pmov %p7099_p6 }
  0xb5   : > { %6014 = vsyncadd (%p7102_p8), [#allocation13], 4294964480 }
  0xb6   : > { %6016 = dma.done.wait (%p7103_p5), [#allocation16], 48   ;;  %p7104_p9 = pmov %p7103_p5 }
  0xb7   : > { %s5513_s28 = smul.u32 24, %s6324_s15  ;;  %p7105_p7 = scmp.ne.s32.totalorder %s6117_s27, 0 }
  0xb8   : > { %6018 = vsyncadd (%p7104_p9), [#allocation16], 4294967248  ;;  %v6049_v0 = vmov (!%p7105_p7), 0   ;;  %v6050_v1 = vmov (!%p7105_p7), 0.0   ;;  %vm360_vm0 = vcmask (!%p7105_p7), 552960  }
  0xb9   : > { %s6347_s16 = scalar_lea.vmem [#allocation17], %s5513_s28  ;;  %343 = sbr.rel (%p7105_p7) target bundleno = 192 (0xc0), region = 72  ;;  %344 = vst [vmem:[#allocation2] sm:$0xff] (!%p7105_p7), %v6049_v0  ;;  %345 = vst [vmem:[#allocation2 + $0x8] sm:$0xff] (!%p7105_p7), %v6049_v0 }
  0xba   : > { %348 = vst [vmem:[#allocation2 + $0x14] sm:$0x11] (!%p7105_p7), %v6049_v0  ;;  %349 = vst [vmem:[#allocation2 + $0x1c] sm:$0x11] (!%p7105_p7), %v6049_v0 }
  0xbb   : > { %352 = vst [vmem:[#allocation3] sm:$0xff] (!%p7105_p7), %v6049_v0  ;;  %353 = vst [vmem:[#allocation3 + $0x8] sm:$0xff] (!%p7105_p7), %v6049_v0 }
  0xbc   : > { %355 = vst [vmem:[#allocation3 + $0x14] sm:$0x11] (!%p7105_p7), %v6049_v0  ;;  %356 = vst [vmem:[#allocation3 + $0x1c] sm:$0x11] (!%p7105_p7), %v6049_v0 }
  0xbd   : > { %358 = vst [vmem:[#allocation4] sm:$0x1f] (!%p7105_p7), %v6050_v1  ;;  %359 = vst [vmem:[#allocation4 + $0x8] sm:$0x1f] (!%p7105_p7), %v6050_v1 }
  0xbe   : > { %362 = vst [vmem:[#allocation5] sm:$0x1f] (!%p7105_p7), %v6050_v1  ;;  %363 = vst [vmem:[#allocation5 + $0x8] sm:$0x1f] (!%p7105_p7), %v6050_v1 }
  0xbf   : > { %361 = vst.msk [vmem:[#allocation4 + $0x10] sm:$0x1f] (!%p7105_p7), %vm360_vm0, %v6050_v1  ;;  %364 = vst.msk [vmem:[#allocation5 + $0x10] sm:$0x1f] (!%p7105_p7), %vm360_vm0, %v6050_v1 }
  0xc0 PF: > { %v365_v2 = vld [vmem:[%s6328_s11] sm:$0x77]  ;;  %vm367_vm1 = vcmask 1042432   ;;  %vm368_vm2 = vsmask.f32 2304  ;;  %vm370_vm3 = vcmask 1046532  }
  0xc1   : > { %vm6352_vm4 = vmand %vm367_vm1, %vm368_vm2  ;;  %vm371_vm5 = vsmask.f32 6400  ;;  %v374_v4 = vld [vmem:[#allocation2 + $0x4] sm:$0x77]  ;;  %vm377_vm8 = vcmask 550912   ;;  %vm484_vm10 = vcmask 80896  }
  0xc2   : > { %vm372_vm6 = vmand %vm370_vm3, %vm371_vm5  ;;  %v366_v5 = vld [vmem:[%s6328_s11 + $0x8] sm:$0x7]  ;;  %v379_v8 = vld [vmem:[#allocation2 + $0xc] sm:$0x7]  ;;  %s6051_s8 = smov 19   ;;  %s6052_s13 = smov 18  }
  0xc3   : > { %vm373_vm7 = vmor %vm372_vm6, %vm6352_vm4  ;;  %v6365_v10 = vld [vmem:[#allocation9 + $0x10] sm:$0xff]   ;;  %v5629_v11 = vld [vmem:[#allocation2] ss:$20 sps:$4 sm:$0x1f]   ;;  %s6053_s20 = smov 17   ;;  %s6054_s17 = smov 1  }
  0xc4   : > { %v375_v6 = vsel %vm373_vm7, %v365_v2, %v374_v4  ;;  %vm6359_vm9 = vmand %vm377_vm8, %vm368_vm2  ;;  %4942 = vmatprep.mubr.msk.bf16.mxu0 %vm484_vm10, %v6365_v10  ;;  %4996 = vmatprep.mubr.msk.bf16.mxu1 %vm484_vm10, %v6365_v10  ;;  %v854_v14 = vld [vmem:[#allocation2 + $0x18] sm:$0x11]  ;;  %s6055_s12 = smov 127   ;;  %s6056_s26 = smov 111   ;;  %vm558_vm11 = vcmask 154624   ;;  %vm482_vm12 = vcmask 146432  }
  0xc5   : > { %376 = vst [vmem:[#allocation2 + $0x4] sm:$0x77] %v375_v6  ;;  %v380_v9 = vsel %vm6359_vm9, %v366_v5, %v379_v8  ;;  %554 = vrot.lane.b32.xlu1 %v5629_v11, %s6051_s8  ;;  %478 = vrot.lane.b32.xlu0 %v5629_v11, %s6052_s13  ;;  %v1235_v15 = vld [vmem:[#allocation2 + $0x18] sm:$0x11]  ;;  %s6057_s29 = smov 110   ;;  %s6058_s19 = smov 109  }
  0xc6   : > { %381 = vst [vmem:[#allocation2 + $0xc] sm:$0x7] %v380_v9  ;;  %v1837_v21 = vld [vmem:[#allocation2 + $0x1c] sm:$0x11]  ;;  %vm491_vm13 = vcmask 1044480   ;;  %vm632_vm14 = vcmask 138240  }
  0xc7   : > { %v1544_v24 = vld [vmem:[#allocation2 + $0x1c] sm:$0x11]  ;;  %v6425_v35 = vld [vmem:[#allocation9 + $0x18] sm:$0xff]   ;;  %vm710_vm15 = vcmask 7168   ;;  %v6464_v60 = vld [vmem:[#allocation9 + $0x30] sm:$0xff]   ;;  %vm877_vm0 = vcmask 1039360  }
  0xc8   : > { %v6427_v36 = vld [vmem:[#allocation9] sm:$0xff]   ;;  %v6437_v45 = vld [vmem:[#allocation9 + $0x8] sm:$0xff]   ;;  %v6487_v9 = vld [vmem:[#allocation9 + $0x38] sm:$0xff]   ;;  %vm955_vm1 = vcmask 908288   ;;  %vm1033_vm2 = vcmask 900096   ;;  %vm7088_vm3 = vcmask 891904  }
  0xc9   : > { %v6440_v49 = vld [vmem:[#allocation9 + $0x20] sm:$0xff]   ;;  %v6461_v59 = vld [vmem:[#allocation9 + $0x28] sm:$0xff]   ;;  %vm2441_vm5 = vcmask 1043458   ;;  %vm2442_vm6 = vsmask.f32 7946  ;;  %vm2444_vm7 = vcmask 1047558  }
  0xca   : > { %vm2445_vm8 = vsmask.f32 7962  ;;  %s5514_s30 = smul.u32 384, %s6117_s27  ;;  %s4461_s9 = sshll.u32 %s6347_s16, 4  ;;  %s7024_s9 = int_to_ptr.vmem [resolvable:$true] %s4461_s9 }
  0xcb   : > { %s4447_s27 = scalar_lea.sflag [#allocation8], %s6324_s15  ;;  %p7118_p12 = scmp.ne.s32.totalorder %s7095_s25, 0 }
  0xcc   : > { %v5631_v12 = vld [vmem:[#allocation2 + $0x4] ss:$20 sps:$4 sm:$0x1f]   ;;  %s7022_s28 = scalar_lea.hbm %s7084_s6, %s5514_s30 }
  0xcd   : > { %556 = vrot.lane.b32.xlu1 %v5631_v12, %s6051_s8  ;;  %480 = vrot.lane.b32.xlu0 %v5631_v12, %s6052_s13  ;;  %v853_v13 = vld [vmem:[#allocation2 + $0x4] sm:$0xff]  ;;  %v6411_v27 = vld [vmem:[#allocation2 + $0xc] ss:$20 sps:$4 sm:$0x1f]  }
  0xce   : > { %v4621_v16 = vcombine.high %v853_v13, %v854_v14  ;;  %v4620_v17 = vcombine.low %v853_v13, %v854_v14  ;;  %v4638_v18 = vcombine.high %v853_v13, %v1235_v15  ;;  %v4637_v19 = vcombine.low %v853_v13, %v1235_v15  ;;  %v1836_v20 = vld [vmem:[#allocation2 + $0x8] sm:$0xff]  ;;  %v5648_v0 = vld [vmem:[#allocation2 + $0x4] ss:$20 sps:$4 sm:$0x1f]  }
  0xcf   : > { %v4662_v22 = vcombine.high %v1836_v20, %v1837_v21  ;;  %v4661_v23 = vcombine.low %v1836_v20, %v1837_v21  ;;  %v4651_v25 = vcombine.high %v1836_v20, %v1544_v24  ;;  %v4650_v26 = vcombine.low %v1836_v20, %v1544_v24  ;;  %v2453_v7 = vld [vmem:[#allocation2 + $0xc] sm:$0xc] }
  0xd1   : > { %630 = vrot.lane.b32.xlu1 %v5631_v12, %s6053_s20  ;;  %628 = vrot.lane.b32.xlu0 %v5629_v11, %s6053_s20 }
  0xd5   : > { %708 = vrot.lane.b32.xlu1 %v5631_v12, %s6054_s17  ;;  %706 = vrot.lane.b32.xlu0 %v5629_v11, %s6054_s17  ;;  %v6489_v11 = vld [vmem:[#allocation9 + $0x40] sm:$0xff]   ;;  %v798_v12 = vsel %vm491_vm13, %v5648_v0, 0 }
  0xd9   : > { %875 = vrot.lane.b32.xlu1 %v4621_v16, %s6055_s12  ;;  %873 = vrot.lane.b32.xlu0 %v4620_v17, %s6055_s12 }
  0xdd   : > { %1246 = vrot.lane.b32.xlu1 %v4638_v18, %s6052_s13  ;;  %1244 = vrot.lane.b32.xlu0 %v4637_v19, %s6052_s13 }
  0xe1   : > { %953 = vrot.lane.b32.xlu1 %v4621_v16, %s6056_s26  ;;  %951 = vrot.lane.b32.xlu0 %v4620_v17, %s6056_s26 }
  0xe5   : > { %1303 = vrot.lane.b32.xlu1 %v4638_v18, %s6051_s8  ;;  %1301 = vrot.lane.b32.xlu0 %v4637_v19, %s6051_s8 }
  0xe9   : > { %1031 = vrot.lane.b32.xlu1 %v4621_v16, %s6057_s29  ;;  %1029 = vrot.lane.b32.xlu0 %v4620_v17, %s6057_s29 }
  0xed   : > { %1360 = vrot.lane.b32.xlu1 %v4638_v18, %s6053_s20  ;;  %1358 = vrot.lane.b32.xlu0 %v4637_v19, %s6053_s20 }
  0xf1   : > { %1109 = vrot.lane.b32.xlu1 %v4621_v16, %s6058_s19  ;;  %1107 = vrot.lane.b32.xlu0 %v4620_v17, %s6058_s19  ;;  %v455_v17 = vld [vmem:[#allocation11 + $0x8] sm:$0x1f] }
  0xf5   : > { %1421 = vrot.lane.b32.xlu1 %v4638_v18, %s6054_s17  ;;  %1419 = vrot.lane.b32.xlu0 %v4637_v19, %s6054_s17  ;;  %v5654_v19 = vld [vmem:[#allocation2 + $0x8] ss:$20 sps:$4 sm:$0x1f]  }
  0xf9   : > { %1848 = vrot.lane.b32.xlu1 %v4662_v22, %s6052_s13  ;;  %1846 = vrot.lane.b32.xlu0 %v4661_v23, %s6052_s13 }
  0xfd   : > { %1905 = vrot.lane.b32.xlu1 %v4662_v22, %s6051_s8  ;;  %1903 = vrot.lane.b32.xlu0 %v4661_v23, %s6051_s8 }
 0x101   : > { %1555 = vrot.lane.b32.xlu1 %v4651_v25, %s6055_s12  ;;  %1553 = vrot.lane.b32.xlu0 %v4650_v26, %s6055_s12 }
 0x105   : > { %1962 = vrot.lane.b32.xlu1 %v4662_v22, %s6053_s20  ;;  %1960 = vrot.lane.b32.xlu0 %v4661_v23, %s6053_s20 }
 0x109   : > { %1616 = vrot.lane.b32.xlu1 %v4651_v25, %s6056_s26  ;;  %1614 = vrot.lane.b32.xlu0 %v4650_v26, %s6056_s26 }
 0x10d   : > { %2023 = vrot.lane.b32.xlu1 %v4662_v22, %s6054_s17  ;;  %2021 = vrot.lane.b32.xlu0 %v4661_v23, %s6054_s17  ;;  %v6059_v22 = vmov 0  }
 0x10e   : > { %5628 = vset.pattern.permute.xlu1 %v6059_v22  ;;  %5627 = vset.pattern.permute.xlu0 %v6059_v22 }
 0x111   : > { %1677 = vrot.lane.b32.xlu1 %v4651_v25, %s6057_s29  ;;  %1675 = vrot.lane.b32.xlu0 %v4650_v26, %s6057_s29 }
 0x115   : > { %1738 = vrot.lane.b32.xlu1 %v4651_v25, %s6058_s19  ;;  %1736 = vrot.lane.b32.xlu0 %v4650_v26, %s6058_s19  ;;  %v6514_v25 = vld [vmem:[#allocation9 + $0x48] sm:$0xff]   ;;  %v6516_v26 = vld [vmem:[#allocation9 + $0x50] sm:$0xff]  }
 0x119   : > { %2145 = vrot.lane.b32.xlu0 %v6411_v27, %s6055_s12  ;;  %2203 = vrot.lane.b32.xlu1 %v6411_v27, %s6056_s26 }
 0x11d   : > { %2261 = vrot.lane.b32.xlu0 %v6411_v27, %s6057_s29  ;;  %2319 = vrot.lane.b32.xlu1 %v6411_v27, %s6058_s19 }
 0x121   : > { %1188 = vperm.xlu1 %5628, %v455_v17  }
 0x137   : > { %v555_v28 = vpop.permute.xlu1 %554  ;;  %v479_v29 = vpop.permute.xlu0 %478 }
 0x13f   : > { %v557_v30 = vpop.permute.xlu1 %556  ;;  %v481_v31 = vpop.permute.xlu0 %480 }
 0x140   : > { %v559_v32 = vsel %vm558_vm11, %v555_v28, %v557_v30  ;;  %v483_v33 = vsel %vm482_vm12, %v479_v29, %v481_v31 }
 0x141   : > { %5456 = vmatprep.subr.msk.bf16.mxu0 %vm491_vm13, %v483_v33  ;;  %v493_v34 = vsel %vm491_vm13, %v483_v33, 0  ;;  %v567_v37 = vsel %vm491_vm13, %v559_v32, 0  ;;  %v456_v33 = vld [vmem:[#allocation11 + $0x10] sm:$0x1f] }
 0x142   : > { %4941 = vmatpush3.bf16.msra.mxu0 %v493_v34  ;;  %v1488_v34 = vsel %vm491_vm13, %v5654_v19, 0  ;;  %1199 = vperm.xlu1 %5628, %v456_v33  }
 0x143   : > { %v631_v38 = vpop.permute.xlu1 %630  ;;  %v629_v39 = vpop.permute.xlu0 %628  ;;  %5457 = vmatprep.subr.msk.bf16.mxu0 %vm491_vm13, %v559_v32  ;;  %v454_v32 = vld [vmem:[#allocation11] sm:$0x1f] }
 0x144   : > { %v633_v40 = vsel %vm632_vm14, %v629_v39, %v631_v38  ;;  %1177 = vperm.xlu0 %5627, %v454_v32   ;;  %v457_v38 = vld [vmem:[#allocation11 + $0x18] sm:$0x1f] }
 0x145   : > { %4943 = vmatmul.mubr.msk.bf16.vlgmr.msra.gmra.mrb[0].mxu0 %vm484_vm10, %v6425_v35  ;;  %v641_v46 = vsel %vm491_vm13, %v633_v40, 0 }
 0x146   : > { %4947 = vmatpush3.bf16.msra.mxu0 %v567_v37  ;;  %4948 = vmatprep.mubr.msk.bf16.mxu0 %vm484_vm10, %v6427_v36 }
 0x147   : > { %v709_v41 = vpop.permute.xlu1 %708  ;;  %v707_v42 = vpop.permute.xlu0 %706  ;;  %5458 = vmatprep.subr.msk.bf16.mxu0 %vm491_vm13, %v633_v40 }
 0x148   : > { %v711_v50 = vsel %vm710_vm15, %v707_v42, %v709_v41  ;;  %1210 = vperm.xlu0 %5627, %v457_v38   ;;  %v6538_v41 = vld [vmem:[#allocation9 + $0x58] sm:$0xff]   ;;  %v6540_v42 = vld [vmem:[#allocation9 + $0x60] sm:$0xff]  }
 0x149   : > { %v719_v61 = vsel %vm491_vm13, %v711_v50, 0 }
 0x14b   : > { %v876_v43 = vpop.permute.xlu1 %875  ;;  %v874_v44 = vpop.permute.xlu0 %873 }
 0x14c   : > { %v878_v15 = vsel %vm877_vm0, %v874_v44, %v876_v43 }
 0x14d   : > { %v886_v28 = vsel %vm491_vm13, %v878_v15, 0 }
 0x14f   : > { %v1247_v47 = vpop.permute.xlu1 %1246  ;;  %v1245_v48 = vpop.permute.xlu0 %1244 }
 0x150   : > { %v1248_v51 = vsel %vm482_vm12, %v1245_v48, %v1247_v47 }
 0x151   : > { %4949 = vmatmul.mubr.msk.bf16.vlgmr.msra.gmra.mrb[0].mxu0 %vm484_vm10, %v6437_v45  ;;  %5465 = vmatprep.subr.msk.bf16.mxu1 %vm491_vm13, %v1248_v51  ;;  %v1250_v52 = vsel %vm491_vm13, %v1248_v51, 0 }
 0x152   : > { %4995 = vmatpush3.bf16.msra.mxu1 %v1250_v52  ;;  %4953 = vmatpush3.bf16.msra.mxu0 %v641_v46 }
 0x153   : > { %v6448_v53 = vpop.permute.xlu1 %953  ;;  %v6450_v54 = vpop.permute.xlu0 %951  ;;  %4954 = vmatprep.mubr.msk.bf16.mxu0 %vm484_vm10, %v6440_v49  ;;  %5459 = vmatprep.subr.msk.bf16.mxu0 %vm491_vm13, %v711_v50 }
 0x154   : > { %v956_v29 = vsel %vm955_vm1, %v6450_v54, %v6448_v53  ;;  %v6558_v53 = vld [vmem:[#allocation9 + $0x68] sm:$0xff]   ;;  %v6560_v54 = vld [vmem:[#allocation9 + $0x70] sm:$0xff]  }
 0x155   : > { %4997 = vmatmul.mubr.msk.bf16.vlgmr.msra.gmra.mrb[0].mxu1 %vm484_vm10, %v6425_v35  ;;  %v964_v43 = vsel %vm491_vm13, %v956_v29, 0 }
 0x156   : > { %5002 = vmatprep.mubr.msk.bf16.mxu1 %vm484_vm10, %v6427_v36 }
 0x157   : > { %v1304_v55 = vpop.permute.xlu1 %1303  ;;  %v1302_v56 = vpop.permute.xlu0 %1301 }
 0x158   : > { %v1305_v57 = vsel %vm558_vm11, %v1302_v56, %v1304_v55 }
 0x159   : > { %v1307_v58 = vsel %vm491_vm13, %v1305_v57, 0  ;;  %5466 = vmatprep.subr.msk.bf16.mxu1 %vm491_vm13, %v1305_v57 }
 0x15a   : > { %5001 = vmatpush3.bf16.msra.mxu1 %v1307_v58 }
 0x15b   : > { %v6467_v62 = vpop.permute.xlu1 %1031  ;;  %v6469_v63 = vpop.permute.xlu0 %1029 }
 0x15c   : > { %v1034_v44 = vsel %vm1033_vm2, %v6469_v63, %v6467_v62  ;;  %v6578_v63 = vld [vmem:[#allocation9 + $0x78] sm:$0xff]  }
 0x15d   : > { %4955 = vmatmul.mubr.msk.bf16.vlgmr.msra.gmra.mrb[0].mxu0 %vm484_vm10, %v6461_v59  ;;  %v1042_v55 = vsel %vm491_vm13, %v1034_v44, 0 }
 0x15e   : > { %4959 = vmatpush3.bf16.msra.mxu0 %v719_v61  ;;  %4960 = vmatprep.mubr.msk.bf16.mxu0 %vm484_vm10, %v6464_v60 }
 0x15f   : > { %v1361_v1 = vpop.permute.xlu1 %1360  ;;  %v1359_v2 = vpop.permute.xlu0 %1358  ;;  %5460 = vmatprep.subr.msk.bf16.mxu0 %vm491_vm13, %v5648_v0  ;;  %v6580_v0 = vld [vmem:[#allocation9 + $0x80] sm:$0xff]  }
 0x160   : > { %v1362_v4 = vsel %vm632_vm14, %v1359_v2, %v1361_v1 }
 0x161   : > { %5003 = vmatmul.mubr.msk.bf16.vlgmr.msra.gmra.mrb[0].mxu1 %vm484_vm10, %v6437_v45  ;;  %v1364_v5 = vsel %vm491_vm13, %v1362_v4, 0  ;;  %5467 = vmatprep.subr.msk.bf16.mxu1 %vm491_vm13, %v1362_v4 }
 0x162   : > { %5007 = vmatpush3.bf16.msra.mxu1 %v1364_v5  ;;  %5008 = vmatprep.mubr.msk.bf16.mxu1 %vm484_vm10, %v6440_v49 }
 0x163   : > { %v6483_v6 = vpop.permute.xlu1 %1109  ;;  %v6485_v8 = vpop.permute.xlu0 %1107 }
 0x164   : > { %v1112_v56 = vsel %vm7088_vm3, %v6485_v8, %v6483_v6 }
 0x165   : > { %v1120_v1 = vsel %vm491_vm13, %v1112_v56, 0 }
 0x167   : > { %v1422_v13 = vpop.permute.xlu1 %1421  ;;  %v1420_v14 = vpop.permute.xlu0 %1419 }
 0x168   : > { %v1423_v16 = vsel %vm710_vm15, %v1420_v14, %v1422_v13 }
 0x169   : > { %4961 = vmatmul.mubr.msk.bf16.vlgmr.msra.gmra.mrb[0].mxu0 %vm484_vm10, %v6487_v9  ;;  %5468 = vmatprep.subr.msk.bf16.mxu1 %vm491_vm13, %v1423_v16  ;;  %v1425_v18 = vsel %vm491_vm13, %v1423_v16, 0 }
 0x16a   : > { %4965 = vmatpush3.bf16.msra.mxu0 %v798_v12  ;;  %4966 = vmatprep.mubr.msk.bf16.mxu0 %vm484_vm10, %v6489_v11  ;;  %v5660_v12 = vld [vmem:[#allocation9 + $0x88] sm:$0xff]  }
 0x16b   : > { %5461 = vmatprep.subr.msk.bf16.mxu0 %vm491_vm13, %v878_v15  ;;  %v6501_v20 = vpop.permute.xlu1 %1848  ;;  %v6503_v21 = vpop.permute.xlu0 %1846 }
 0x16c   : > { %v1850_v2 = vsel %vm482_vm12, %v6503_v21, %v6501_v20 }
 0x16d   : > { %5009 = vmatmul.mubr.msk.bf16.vlgmr.msra.gmra.mrb[0].mxu1 %vm484_vm10, %v6461_v59  ;;  %v1852_v13 = vsel %vm491_vm13, %v1850_v2, 0 }
 0x16e   : > { %5013 = vmatpush3.bf16.msra.mxu1 %v1425_v18  ;;  %5014 = vmatprep.mubr.msk.bf16.mxu1 %vm484_vm10, %v6464_v60 }
 0x16f   : > { %5469 = vmatprep.subr.msk.bf16.mxu1 %vm491_vm13, %v5654_v19  ;;  %v6510_v23 = vpop.permute.xlu1 %1905  ;;  %v6512_v24 = vpop.permute.xlu0 %1903 }
 0x170   : > { %v1907_v14 = vsel %vm558_vm11, %v6512_v24, %v6510_v23 }
 0x171   : > { %v1909_v16 = vsel %vm491_vm13, %v1907_v14, 0 }
 0x173   : > { %v1556_v30 = vpop.permute.xlu1 %1555  ;;  %v1554_v31 = vpop.permute.xlu0 %1553 }
 0x174   : > { %v1557_v37 = vsel %vm877_vm0, %v1554_v31, %v1556_v30 }
 0x175   : > { %4967 = vmatmul.mubr.msk.bf16.vlgmr.msra.gmra.mrb[0].mxu0 %vm484_vm10, %v6514_v25  ;;  %v1559_v48 = vsel %vm491_vm13, %v1557_v37, 0 }
 0x176   : > { %4971 = vmatpush3.bf16.msra.mxu0 %v886_v28  ;;  %4972 = vmatprep.mubr.msk.bf16.mxu0 %vm484_vm10, %v6516_v26 }
 0x177   : > { %5462 = vmatprep.subr.msk.bf16.mxu0 %vm491_vm13, %v956_v29  ;;  %v6534_v39 = vpop.permute.xlu1 %1962  ;;  %v6536_v40 = vpop.permute.xlu0 %1960 }
 0x178   : > { %v1964_v17 = vsel %vm632_vm14, %v6536_v40, %v6534_v39 }
 0x179   : > { %5015 = vmatmul.mubr.msk.bf16.vlgmr.msra.gmra.mrb[0].mxu1 %vm484_vm10, %v6487_v9 }
 0x17a   : > { %5019 = vmatpush3.bf16.msra.mxu1 %v1488_v34  ;;  %5020 = vmatprep.mubr.msk.bf16.mxu1 %vm484_vm10, %v6489_v11 }
 0x17b   : > { %5470 = vmatprep.subr.msk.bf16.mxu1 %vm491_vm13, %v1557_v37  ;;  %v1617_v46 = vpop.permute.xlu1 %1616  ;;  %v1615_v47 = vpop.permute.xlu0 %1614 }
 0x17c   : > { %v1618_v50 = vsel %vm955_vm1, %v1615_v47, %v1617_v46 }
 0x17d   : > { %v1620_v61 = vsel %vm491_vm13, %v1618_v50, 0 }
 0x17f   : > { %v2024_v51 = vpop.permute.xlu1 %2023  ;;  %v2022_v52 = vpop.permute.xlu0 %2021 }
 0x180   : > { %v2025_v18 = vsel %vm710_vm15, %v2022_v52, %v2024_v51 }
 0x181   : > { %4973 = vmatmul.mubr.msk.bf16.vlgmr.msra.gmra.mrb[0].mxu0 %vm484_vm10, %v6538_v41 }
 0x182   : > { %4977 = vmatpush3.bf16.msra.mxu0 %v964_v43  ;;  %4978 = vmatprep.mubr.msk.bf16.mxu0 %vm484_vm10, %v6540_v42 }
 0x183   : > { %5463 = vmatprep.subr.msk.bf16.mxu0 %vm491_vm13, %v1034_v44  ;;  %v1678_v57 = vpop.permute.xlu1 %1677  ;;  %v1676_v58 = vpop.permute.xlu0 %1675 }
 0x184   : > { %v1679_v62 = vsel %vm1033_vm2, %v1676_v58, %v1678_v57 }
 0x185   : > { %5021 = vmatmul.mubr.msk.bf16.vlgmr.msra.gmra.mrb[0].mxu1 %vm484_vm10, %v6514_v25  ;;  %v1681_v6 = vsel %vm491_vm13, %v1679_v62, 0 }
 0x186   : > { %5025 = vmatpush3.bf16.msra.mxu1 %v1559_v48  ;;  %5026 = vmatprep.mubr.msk.bf16.mxu1 %vm484_vm10, %v6516_v26 }
 0x187   : > { %5471 = vmatprep.subr.msk.bf16.mxu1 %vm491_vm13, %v1618_v50  ;;  %v1739_v4 = vpop.permute.xlu1 %1738  ;;  %v1737_v5 = vpop.permute.xlu0 %1736 }
 0x188   : > { %v1740_v8 = vsel %vm7088_vm3, %v1737_v5, %v1739_v4  ;;  %vm6708_vm3 = vmand %vm2444_vm7, %vm2445_vm8  ;;  %vm2401_vm7 = vcmask 552960   ;;  %vm2451_vm8 = vcmask 551938  }
 0x189   : > { %v1742_v15 = vsel %vm491_vm13, %v1740_v8, 0 }
 0x18d   : > { %4979 = vmatmul.mubr.msk.bf16.vlgmr.msra.gmra.mrb[0].mxu0 %vm484_vm10, %v6558_v53 }
 0x18e   : > { %4983 = vmatpush3.bf16.msra.mxu0 %v1042_v55  ;;  %4984 = vmatprep.mubr.msk.bf16.mxu0 %vm484_vm10, %v6560_v54 }
 0x18f   : > { %5464 = vmatprep.subr.msk.bf16.mxu0 %vm491_vm13, %v1112_v56 }
 0x191   : > { %5027 = vmatmul.mubr.msk.bf16.vlgmr.msra.gmra.mrb[0].mxu1 %vm484_vm10, %v6538_v41 }
 0x192   : > { %5031 = vmatpush3.bf16.msra.mxu1 %v1620_v61  ;;  %5032 = vmatprep.mubr.msk.bf16.mxu1 %vm484_vm10, %v6540_v42 }
 0x193   : > { %5472 = vmatprep.subr.msk.bf16.mxu1 %vm491_vm13, %v1679_v62 }
 0x199   : > { %4985 = vmatmul.mubr.msk.bf16.vlgmr.msra.gmra.mrb[0].mxu0 %vm484_vm10, %v6578_v63 }
 0x19a   : > { %4989 = vmatpush3.bf16.msra.mxu0 %v1120_v1  ;;  %4990 = vmatprep.mubr.msk.bf16.mxu0 %vm484_vm10, %v6580_v0  ;;  %v1215_v1 = vld [vmem:[#allocation4] sm:$0x1f] }
 0x19b   : > { %5474 = vmatprep.subr.msk.bf16.mxu0 %vm491_vm13, %v1850_v2 }
 0x19d   : > { %5033 = vmatmul.mubr.msk.bf16.vlgmr.msra.gmra.mrb[0].mxu1 %vm484_vm10, %v6558_v53 }
 0x19e   : > { %5037 = vmatpush3.bf16.msra.mxu1 %v1681_v6  ;;  %5038 = vmatprep.mubr.msk.bf16.mxu1 %vm484_vm10, %v6560_v54 }
 0x19f   : > { %5473 = vmatprep.subr.msk.bf16.mxu1 %vm491_vm13, %v1740_v8 }
 0x1a5   : > { %4991 = vmatmul.mubr.msk.bf16.vlgmr.msra.gmra.mrb[0].mxu0 %vm484_vm10, %v5660_v12 }
 0x1a6   : > { %5049 = vmatpush3.bf16.msra.mxu0 %v1852_v13  ;;  %5050 = vmatprep.mubr.msk.bf16.mxu0 %vm484_vm10, %v6365_v10  ;;  %v1966_v10 = vsel %vm491_vm13, %v1964_v17, 0 }
 0x1a7   : > { %5475 = vmatprep.subr.msk.bf16.mxu0 %vm491_vm13, %v1907_v14 }
 0x1a9   : > { %5039 = vmatmul.mubr.msk.bf16.vlgmr.msra.gmra.mrb[0].mxu1 %vm484_vm10, %v6578_v63 }
 0x1aa   : > { %5043 = vmatpush3.bf16.msra.mxu1 %v1742_v15  ;;  %5044 = vmatprep.mubr.msk.bf16.mxu1 %vm484_vm10, %v6580_v0 }
 0x1ad   : > { %5051 = vmatmul.mubr.msk.bf16.vlgmr.msra.gmra.mrb[4].mxu0 %vm484_vm10, %v6425_v35  ;;  %v2027_v35 = vsel %vm491_vm13, %v2025_v18, 0 }
 0x1ae   : > { %5055 = vmatpush3.bf16.msra.mxu0 %v1909_v16  ;;  %5056 = vmatprep.mubr.msk.bf16.mxu0 %vm484_vm10, %v6427_v36  ;;  %v2090_v36 = vsel %vm491_vm13, %v6411_v27, 0 }
 0x1af   : > { %5476 = vmatprep.subr.msk.bf16.mxu0 %vm491_vm13, %v1964_v17 }
 0x1b5   : > { %5045 = vmatmul.mubr.msk.bf16.vlgmr.msra.gmra.mrb[0].mxu1 %vm484_vm10, %v5660_v12 }
 0x1b9   : > { %5057 = vmatmul.mubr.msk.bf16.vlgmr.msra.gmra.mrb[4].mxu0 %vm484_vm10, %v6437_v45  ;;  %v2146_v45 = vpop.permute.xlu0 %2145 }
 0x1ba   : > { %5061 = vmatpush3.bf16.msra.mxu0 %v1966_v10  ;;  %5062 = vmatprep.mubr.msk.bf16.mxu0 %vm484_vm10, %v6440_v49  ;;  %v2148_v49 = vsel %vm491_vm13, %v2146_v45, 0 }
 0x1bb   : > { %5477 = vmatprep.subr.msk.bf16.mxu0 %vm491_vm13, %v2025_v18 }
 0x1c5   : > { %5063 = vmatmul.mubr.msk.bf16.vlgmr.msra.gmra.mrb[4].mxu0 %vm484_vm10, %v6461_v59  ;;  %v2204_v59 = vpop.permute.xlu1 %2203 }
 0x1c6   : > { %5067 = vmatpush3.bf16.msra.mxu0 %v2027_v35  ;;  %5068 = vmatprep.mubr.msk.bf16.mxu0 %vm484_vm10, %v6464_v60  ;;  %v2262_v60 = vpop.permute.xlu0 %2261 }
 0x1c7   : > { %5478 = vmatprep.subr.msk.bf16.mxu0 %vm491_vm13, %v6411_v27  ;;  %v2206_v27 = vsel %vm491_vm13, %v2204_v59, 0 }
 0x1ca   : > { %v6668_v22 = vpop.permute.xlu0 %1177 }
 0x1ce   : > { %v6675_v38 = vpop.permute.xlu0 %1210 }
 0x1d1   : > { %5069 = vmatmul.mubr.msk.bf16.vlgmr.msra.gmra.mrb[4].mxu0 %vm484_vm10, %v6487_v9  ;;  %v2264_v9 = vsel %vm491_vm13, %v2262_v60, 0 }
 0x1d2   : > { %5073 = vmatpush3.bf16.msra.mxu0 %v2090_v36  ;;  %5074 = vmatprep.mubr.msk.bf16.mxu0 %vm484_vm10, %v6489_v11  ;;  %v2320_v11 = vpop.permute.xlu1 %2319  ;;  %v4636_v36 = vld [vmem:[#allocation15] ss:$0 sm:$0xff] }
 0x1d3   : > { %5479 = vmatprep.subr.msk.bf16.mxu0 %vm491_vm13, %v2146_v45  ;;  %v2322_v19 = vsel %vm491_vm13, %v2320_v11, 0  ;;  %v1817_v45 = vld [vmem:[#allocation4 + $0x8] sm:$0x1f] }
 0x1d6   : > { %v6666_v20 = vpop.permute.xlu1 %1188 }
 0x1dd   : > { %5075 = vmatmul.mubr.msk.bf16.vlgmr.msra.gmra.mrb[4].mxu0 %vm484_vm10, %v6514_v25 }
 0x1de   : > { %5079 = vmatpush3.bf16.msra.mxu0 %v2148_v49  ;;  %5080 = vmatprep.mubr.msk.bf16.mxu0 %vm484_vm10, %v6516_v26  ;;  %v6671_v26 = vpop.permute.xlu1 %1199 }
 0x1df   : > { %5480 = vmatprep.subr.msk.bf16.mxu0 %vm491_vm13, %v2204_v59 }
 0x1e9   : > { %5081 = vmatmul.mubr.msk.bf16.vlgmr.msra.gmra.mrb[4].mxu0 %vm484_vm10, %v6538_v41 }
 0x1ea   : > { %5085 = vmatpush3.bf16.msra.mxu0 %v2206_v27  ;;  %5086 = vmatprep.mubr.msk.bf16.mxu0 %vm484_vm10, %v6540_v42 }
 0x1eb   : > { %5481 = vmatprep.subr.msk.bf16.mxu0 %vm491_vm13, %v2262_v60 }
 0x1f5   : > { %5087 = vmatmul.mubr.msk.bf16.vlgmr.msra.gmra.mrb[4].mxu0 %vm484_vm10, %v6558_v53 }
 0x1f6   : > { %5091 = vmatpush3.bf16.msra.mxu0 %v2264_v9  ;;  %5092 = vmatprep.mubr.msk.bf16.mxu0 %vm484_vm10, %v6560_v54 }
 0x1f7   : > { %5482 = vmatprep.subr.msk.bf16.mxu0 %vm491_vm13, %v2320_v11 }
 0x201   : > { %5093 = vmatmul.mubr.msk.bf16.vlgmr.msra.gmra.mrb[4].mxu0 %vm484_vm10, %v6578_v63 }
 0x202   : > { %5097 = vmatpush3.bf16.msra.mxu0 %v2322_v19  ;;  %5098 = vmatprep.mubr.msk.bf16.mxu0 %vm484_vm10, %v6580_v0 }
 0x20d   : > { %5099 = vmatmul.mubr.msk.bf16.vlgmr.msra.gmra.mrb[4].mxu0 %vm484_vm10, %v5660_v12 }
 0x278   : > { %v4992_v21 = vpop.f32.mrb[0].mxu0 }
 0x279   : > { %v1156_v23 = vpop.f32.mrb[1].mxu0  ;;  %v1202_v31 = vadd.f32 %v4992_v21, %v6671_v26  ;;  %v1231_v21 = vld [vmem:[#allocation3 + $0x4] sm:$0x7] }
 0x27a   : > { %v1180_v24 = vadd.f32 %v6668_v22, %v1156_v23  ;;  %v4993_v25 = vpop.f32.mrb[2].mxu0 }
 0x27b   : > { %v1159_v28 = vpop.f32.mrb[3].mxu0  ;;  %v1203_v37 = vsub.f32 0.0, %v1202_v31  ;;  %v1213_v40 = vadd.f32 %v4993_v25, %v6675_v38  ;;  %v5663_v31 = vld [vmem:[#allocation3] ss:$20 sps:$4 sm:$0x1f]  }
 0x27c   : > { %v1181_v29 = vsub.f32 0.0, %v1180_v24  ;;  %v1191_v30 = vadd.f32 %v6666_v20, %v1159_v28  ;;  %v6684_v28 = vld [vmem:[#allocation12 + $0x10] sm:$0xff]   ;;  %2483 = vrot.lane.b32.xlu1 %v5663_v31, %s6052_s13 }
 0x27d   : > { %v1204_v39 = vmul.f32 1.442695, %v1203_v37  ;;  %5104 = vmatprep.mubr.msk.bf16.mxu1 %vm484_vm10, %v6684_v28  ;;  %5158 = vmatprep.mubr.msk.bf16.mxu0 %vm484_vm10, %v6684_v28 }
 0x27e   : > { %v1182_v32 = vmul.f32 1.442695, %v1181_v29  ;;  %v1192_v33 = vsub.f32 0.0, %v1191_v30 }
 0x280   : > { %5693 = vpow2.f32 %v1182_v32  ;;  %v1193_v34 = vmul.f32 1.442695, %v1192_v33  ;;  %v6690_v33 = vld [vmem:[#allocation15 + $0x1] ss:$0 sm:$0xff]  ;;  %2556 = vrot.lane.b32.xlu1 %v5663_v31, %s6051_s8 }
 0x282   : > { %5695 = vpow2.f32 %v1193_v34 }
 0x283   : > { %5697 = vpow2.f32 %v1204_v39  ;;  %v1833_v39 = vld [vmem:[#allocation3 + $0x8] sm:$0x7] }
 0x284   : > { %5699 = vtanh.f32 %v1213_v40  ;;  %2629 = vrot.lane.b32.xlu1 %v5663_v31, %s6053_s20 }
 0x288   : > { %v5046_v41 = vpop.f32.mrb[0].mxu1  ;;  %2706 = vrot.lane.b32.xlu1 %v5663_v31, %s6054_s17 }
 0x289   : > { %v1778_v42 = vpop.f32.mrb[1].mxu1  ;;  %v1809_v57 = vadd.f32 %v5046_v41, %v6671_v26 }
 0x28a   : > { %v5694_v43 = vpop.eup %5693  ;;  %v1797_v44 = vadd.f32 %v1778_v42, %v6668_v22  ;;  %v5047_v46 = vpop.f32.mrb[2].mxu1  ;;  %v2853_v42 = vld [vmem:[#allocation3 + $0x18] sm:$0x11] }
 0x28b   : > { %v1184_v47 = vadd.f32 1.0, %v5694_v43  ;;  %v1781_v48 = vpop.f32.mrb[3].mxu1  ;;  %v1810_v61 = vsub.f32 0.0, %v1809_v57  ;;  %v1815_v4 = vadd.f32 %v5047_v46, %v6675_v38 }
 0x28c   : > { %v5696_v50 = vpop.eup %5695  ;;  %v1798_v51 = vsub.f32 0.0, %v1797_v44  ;;  %v1803_v52 = vadd.f32 %v1781_v48, %v6666_v20 }
 0x28d   : > { %5701 = vrcp.f32 %v1184_v47  ;;  %v1195_v53 = vadd.f32 1.0, %v5696_v50  ;;  %v5698_v58 = vpop.eup %5697  ;;  %v1811_v6 = vmul.f32 1.442695, %v1810_v61 }
 0x28e   : > { %v1799_v54 = vmul.f32 1.442695, %v1798_v51  ;;  %v1804_v55 = vsub.f32 0.0, %v1803_v52  ;;  %v5700_v62 = vpop.eup %5699  ;;  %v1206_v0 = vadd.f32 1.0, %v5698_v58  ;;  %v3227_v58 = vld [vmem:[#allocation3 + $0x18] sm:$0x11] }
 0x28f   : > { %5703 = vrcp.f32 %v1195_v53 }
 0x290   : > { %v1805_v56 = vmul.f32 1.442695, %v1804_v55  ;;  %5705 = vpow2.f32 %v1799_v54  ;;  %v2448_v54 = vld [vmem:[#allocation2 + $0x4] sm:$0xcc] }
 0x292   : > { %5707 = vpow2.f32 %v1805_v56 }
 0x293   : > { %5709 = vrcp.f32 %v1206_v0 }
 0x294   : > { %5711 = vtanh.f32 %v1815_v4 }
 0x295   : > { %5713 = vpow2.f32 %v1811_v6 }
 0x297   : > { %v5702_v63 = vpop.eup %5701 }
 0x298   : > { %v1217_v2 = vmul.f32 %v5702_v63, %v5700_v62 }
 0x299   : > { %v5704_v5 = vpop.eup %5703 }
 0x29a   : > { %v1216_v8 = vmul.f32 %v5704_v5, %v1215_v1  ;;  %v5706_v12 = vpop.eup %5705 }
 0x29b   : > { %v1801_v15 = vadd.f32 1.0, %v5706_v12 }
 0x29c   : > { %v5708_v13 = vpop.eup %5707  ;;  %v1218_v14 = vadd.f32 %v1217_v2, %v1216_v8 }
 0x29d   : > { %v1807_v16 = vadd.f32 1.0, %v5708_v13  ;;  %v5710_v17 = vpop.eup %5709 }
 0x29e   : > { %1219 = vst [vmem:[#allocation4] sm:$0x1f] %v1218_v14  ;;  %5715 = vtanh.f32 %v1218_v14  ;;  %v5712_v10 = vpop.eup %5711 }
 0x29f   : > { %5717 = vrcp.f32 %v1801_v15  ;;  %v5714_v18 = vpop.eup %5713 }
 0x2a0   : > { %5719 = vrcp.f32 %v1807_v16  ;;  %v1813_v60 = vadd.f32 1.0, %v5714_v18 }
 0x2a2   : > { %5721 = vrcp.f32 %v1813_v60 }
 0x2a8   : > { %v5716_v35 = vpop.eup %5715 }
 0x2a9   : > { %v5718_v49 = vpop.eup %5717  ;;  %v1221_v59 = vmul.f32 %v5716_v35, %v5710_v17 }
 0x2aa   : > { %v5720_v27 = vpop.eup %5719  ;;  %v1819_v9 = vmul.f32 %v5718_v49, %v5712_v10  ;;  %v2397_v49 = vld [vmem:[#allocation4 + $0x10] sm:$0x1f] }
 0x2ab   : > { %v1229_v11 = vmul.f32 %v4636_v36, %v1221_v59  ;;  %v1818_v19 = vmul.f32 %v5720_v27, %v1817_v45 }
 0x2ac   : > { %v5722_v30 = vpop.eup %5721 }
 0x2ad   : > { %v1230_v23 = vpack.c.bf16 %v1229_v11, %v1229_v11  ;;  %v1820_v24 = vadd.f32 %v1819_v9, %v1818_v19  ;;  %v6742_v19 = vld [vmem:[#allocation15 + $0x2] ss:$0 sm:$0xff] }
 0x2af   : > { %v1232_v25 = vsel %vm6352_vm4, %v1230_v23, %v1231_v21  ;;  %1821 = vst [vmem:[#allocation4 + $0x8] sm:$0x1f] %v1820_v24  ;;  %5723 = vtanh.f32 %v1820_v24  ;;  %v2414_v24 = vld [vmem:[#allocation3 + $0xc] sm:$0x7] }
 0x2b0   : > { %1233 = vst [vmem:[#allocation3 + $0x4] sm:$0x7] %v1232_v25 }
 0x2b7   : > { %v5661_v29 = vld [vmem:[#allocation3 + $0x4] ss:$20 sps:$4 sm:$0x1f]  }
 0x2b8   : > { %2485 = vrot.lane.b32.xlu0 %v5661_v29, %s6052_s13 }
 0x2b9   : > { %v5724_v32 = vpop.eup %5723 }
 0x2ba   : > { %v1823_v34 = vmul.f32 %v5724_v32, %v5722_v30  ;;  %v3826_v30 = vld [vmem:[#allocation3 + $0x1c] sm:$0x11] }
 0x2bc   : > { %v1831_v37 = vmul.f32 %v6690_v33, %v1823_v34  ;;  %2558 = vrot.lane.b32.xlu0 %v5661_v29, %s6051_s8 }
 0x2be   : > { %v1832_v40 = vpack.c.bf16 %v1831_v37, %v1831_v37 }
 0x2c0   : > { %v1834_v41 = vsel %vm6352_vm4, %v1832_v40, %v1833_v39  ;;  %2631 = vrot.lane.b32.xlu0 %v5661_v29, %s6053_s20  ;;  %vm6704_vm4 = vmand %vm2441_vm5, %vm2442_vm6 }
 0x2c1   : > { %1835 = vst [vmem:[#allocation3 + $0x8] sm:$0x7] %v1834_v41  ;;  %vm7089_vm5 = vmor %vm6708_vm3, %vm6704_vm4 }
 0x2c4   : > { %2708 = vrot.lane.b32.xlu0 %v5661_v29, %s6054_s17 }
 0x2c8   : > { %v2852_v43 = vld [vmem:[#allocation3 + $0x4] sm:$0xff] }
 0x2c9   : > { %v4709_v44 = vcombine.high %v2852_v43, %v2853_v42  ;;  %v4708_v46 = vcombine.low %v2852_v43, %v2853_v42  ;;  %v2417_v47 = vld [vmem:[#allocation3 + $0x4] sm:$0x77]  ;;  %v6729_v61 = vcombine.high %v2852_v43, %v3227_v58  ;;  %v6731_v62 = vcombine.low %v2852_v43, %v3227_v58 }
 0x2ca   : > { %v2420_v48 = vshrl.u32 %v2417_v47, 16  ;;  %v2423_v50 = vshll.u32 %v2417_v47, 16 }
 0x2cb   : > { %2874 = vrot.lane.b32.xlu0 %v4709_v44, %s6055_s12  ;;  %2872 = vrot.lane.b32.xlu1 %v4708_v46, %s6055_s12 }
 0x2cc   : > { %v2422_v52 = vrot.slane %v2420_v48, 5  ;;  %v2425_v53 = vrot.slane %v2423_v50, 6 }
 0x2ce   : > { %v2426_v55 = vor.u32 %v2425_v53, %v2422_v52 }
 0x2cf   : > { %2951 = vrot.lane.b32.xlu0 %v4709_v44, %s6056_s26  ;;  %2949 = vrot.lane.b32.xlu1 %v4708_v46, %s6056_s26 }
 0x2d0   : > { %v2435_v56 = vrot.slane %v2426_v55, 4  ;;  %v2449_v57 = vsel %vm7089_vm5, %v2426_v55, %v2448_v54  ;;  %vm6750_vm5 = vmand %vm2451_vm8, %vm2442_vm6  ;;  %v6768_v54 = vld [vmem:[#allocation12 + $0x18] sm:$0xff]   ;;  %vm7116_vm6 = vcmask 891904  }
 0x2d1   : > { %2450 = vst [vmem:[#allocation2 + $0x4] sm:$0xcc] %v2449_v57  ;;  %v6772_v57 = vld [vmem:[#allocation12] sm:$0xff]  }
 0x2d2   : > { %2456 = vst [vmem:[#allocation2 + $0x18] sm:$0x11] %v2435_v56 }
 0x2d3   : > { %3028 = vrot.lane.b32.xlu0 %v4709_v44, %s6057_s29  ;;  %3026 = vrot.lane.b32.xlu1 %v4708_v46, %s6057_s29 }
 0x2d7   : > { %3105 = vrot.lane.b32.xlu0 %v4709_v44, %s6058_s19  ;;  %3103 = vrot.lane.b32.xlu1 %v4708_v46, %s6058_s19 }
 0x2db   : > { %3238 = vrot.lane.b32.xlu0 %v6729_v61, %s6052_s13  ;;  %3236 = vrot.lane.b32.xlu1 %v6731_v62, %s6052_s13 }
 0x2e0   : > { %v5100_v63 = vpop.f32.mrb[4].mxu0 }
 0x2e1   : > { %v2358_v0 = vpop.f32.mrb[5].mxu0  ;;  %v2389_v13 = vadd.f32 %v5100_v63, %v6671_v26 }
 0x2e2   : > { %v2377_v1 = vadd.f32 %v2358_v0, %v6668_v22  ;;  %v5101_v2 = vpop.f32.mrb[6].mxu0 }
 0x2e3   : > { %v2361_v4 = vpop.f32.mrb[7].mxu0  ;;  %v2390_v15 = vsub.f32 0.0, %v2389_v13  ;;  %v2395_v16 = vadd.f32 %v5101_v2, %v6675_v38 }
 0x2e4   : > { %v2378_v5 = vsub.f32 0.0, %v2377_v1  ;;  %v2383_v6 = vadd.f32 %v2361_v4, %v6666_v20 }
 0x2e5   : > { %v2391_v17 = vmul.f32 1.442695, %v2390_v15  ;;  %v6793_v15 = vld [vmem:[#allocation12 + $0x20] sm:$0xff]  }
 0x2e6   : > { %v2379_v8 = vmul.f32 1.442695, %v2378_v5  ;;  %v2384_v12 = vsub.f32 0.0, %v2383_v6  ;;  %v6789_v6 = vld [vmem:[#allocation12 + $0x8] sm:$0xff]  }
 0x2e8   : > { %5725 = vpow2.f32 %v2379_v8  ;;  %v2385_v14 = vmul.f32 1.442695, %v2384_v12  ;;  %v3536_v8 = vld [vmem:[#allocation3 + $0x1c] sm:$0x11] }
 0x2ea   : > { %5727 = vpow2.f32 %v2385_v14 }
 0x2eb   : > { %5729 = vtanh.f32 %v2395_v16 }
 0x2ec   : > { %5731 = vpow2.f32 %v2391_v17 }
 0x2ee   : > { %v2484_v50 = vpop.permute.xlu1 %2483 }
 0x2f2   : > { %v5726_v10 = vpop.eup %5725  ;;  %v2557_v56 = vpop.permute.xlu1 %2556 }
 0x2f3   : > { %v2381_v18 = vadd.f32 1.0, %v5726_v10 }
 0x2f4   : > { %v5728_v22 = vpop.eup %5727 }
 0x2f5   : > { %5733 = vrcp.f32 %v2381_v18  ;;  %v2387_v35 = vadd.f32 1.0, %v5728_v22  ;;  %v5730_v20 = vpop.eup %5729 }
 0x2f6   : > { %v5732_v36 = vpop.eup %5731  ;;  %v2630_v1 = vpop.permute.xlu1 %2629 }
 0x2f7   : > { %5735 = vrcp.f32 %v2387_v35  ;;  %v2393_v27 = vadd.f32 1.0, %v5732_v36 }
 0x2f9   : > { %5737 = vrcp.f32 %v2393_v27 }
 0x2fa   : > { %v2707_v5 = vpop.permute.xlu1 %2706 }
 0x2ff   : > { %v5734_v45 = vpop.eup %5733 }
 0x300   : > { %v2399_v26 = vmul.f32 %v5734_v45, %v5730_v20  ;;  %v6809_v20 = vld [vmem:[#allocation12 + $0x28] sm:$0xff]  }
 0x301   : > { %v5736_v59 = vpop.eup %5735 }
 0x302   : > { %v2398_v60 = vmul.f32 %v5736_v59, %v2397_v49  ;;  %v6814_v49 = vld [vmem:[#allocation12 + $0x30] sm:$0xff]   ;;  %v5679_v59 = vld [vmem:[#allocation3 + $0x4] ss:$20 sps:$4 sm:$0x1f]  }
 0x303   : > { %v5738_v38 = vpop.eup %5737 }
 0x304   : > { %v2400_v9 = vadd.f32 %v2399_v26, %v2398_v60 }
 0x306   : > { %5739 = vtanh.f32 %v2400_v9  ;;  %2402 = vst.msk [vmem:[#allocation4 + $0x10] sm:$0x1f] %vm2401_vm7, %v2400_v9 }
 0x310   : > { %v5740_v11 = vpop.eup %5739 }
 0x311   : > { %v2404_v21 = vmul.f32 %v5740_v11, %v5738_v38  ;;  %v6830_v11 = vld [vmem:[#allocation12 + $0x38] sm:$0xff]  }
 0x313   : > { %v2412_v23 = vmul.f32 %v6742_v19, %v2404_v21  ;;  %v2460_v21 = vld [vmem:[#allocation14 + $0x8] sm:$0x1f] }
 0x315   : > { %v2413_v25 = vpack.c.bf16 %v2412_v23, %v2412_v23  ;;  %v2459_v23 = vld [vmem:[#allocation14] sm:$0x1f] }
 0x317   : > { %v2415_v29 = vsel %vm6359_vm9, %v2413_v25, %v2414_v24  ;;  %vm2457_vm9 = vcmask 548864   ;;  %v6839_v24 = vld [vmem:[#allocation12 + $0x40] sm:$0xff]   ;;  %v2797_v25 = vsel %vm491_vm13, %v5679_v59, 0 }
 0x318   : > { %2416 = vst [vmem:[#allocation3 + $0xc] sm:$0x7] %v2415_v29 }
 0x31f   : > { %v3825_v31 = vld [vmem:[#allocation3 + $0x8] sm:$0xff] }
 0x320   : > { %v4750_v32 = vcombine.high %v3825_v31, %v3826_v30  ;;  %v4749_v34 = vcombine.low %v3825_v31, %v3826_v30  ;;  %v2418_v37 = vld [vmem:[#allocation3 + $0xc] sm:$0x7]  ;;  %v4739_v14 = vcombine.high %v3825_v31, %v3536_v8 }
 0x321   : > { %v2428_v39 = vshrl.u32 %v2418_v37, 16  ;;  %v2431_v40 = vshll.u32 %v2418_v37, 16  ;;  %v6804_v18 = vld [vmem:[#allocation3 + $0xc] ss:$20 sps:$4 sm:$0x1f]  }
 0x322   : > { %3837 = vrot.lane.b32.xlu0 %v4750_v32, %s6052_s13  ;;  %3835 = vrot.lane.b32.xlu1 %v4749_v34, %s6052_s13  ;;  %v2462_v30 = vld [vmem:[#allocation14 + $0x18] sm:$0x1f]  ;;  %s6060_s13 = smov [#allocation17]  }
 0x323   : > { %v2430_v41 = vrot.slane %v2428_v39, 5  ;;  %v2433_v42 = vrot.slane %v2431_v40, 6  ;;  %v6859_v40 = vld [vmem:[#allocation12 + $0x58] sm:$0xff]  }
 0x325   : > { %v2434_v44 = vor.u32 %v2433_v42, %v2430_v41  ;;  %v6861_v41 = vld [vmem:[#allocation12 + $0x60] sm:$0xff]  }
 0x326   : > { %3295 = vrot.lane.b32.xlu0 %v6729_v61, %s6051_s8  ;;  %3293 = vrot.lane.b32.xlu1 %v6731_v62, %s6051_s8 }
 0x327   : > { %v2436_v46 = vrot.slane %v2434_v44, 4  ;;  %v2454_v47 = vsel %vm6750_vm5, %v2434_v44, %v2453_v7  ;;  %v6870_v44 = vld [vmem:[#allocation12 + $0x68] sm:$0xff]  }
 0x328   : > { %2455 = vst [vmem:[#allocation2 + $0xc] sm:$0xc] %v2454_v47 }
 0x329   : > { %2458 = vst.msk [vmem:[#allocation2 + $0x20] sm:$0x1] %vm2457_vm9, %v2436_v46  ;;  %v6872_v46 = vld [vmem:[#allocation12 + $0x70] sm:$0xff]  }
 0x32a   : > { %3894 = vrot.lane.b32.xlu0 %v4750_v32, %s6051_s8  ;;  %3892 = vrot.lane.b32.xlu1 %v4749_v34, %s6051_s8  ;;  %v2486_v48 = vpop.permute.xlu0 %2485  ;;  %s5959_s8 = scalar_lea.vmem %s7024_s9, 384 }
 0x32b   : > { %v2487_v52 = vsel %vm482_vm12, %v2484_v50, %v2486_v48  ;;  %v6881_v50 = vld [vmem:[#allocation12 + $0x78] sm:$0xff]   ;;  %p5960_p3 = scmp.ne.s32.totalorder %s7024_s9, %s5959_s8 }
 0x32c   : > { %v2495_v53 = vsel %vm491_vm13, %v2487_v52, 0  ;;  %5483 = vmatprep.subr.msk.bf16.mxu1 %vm491_vm13, %v2487_v52  ;;  %v6883_v52 = vld [vmem:[#allocation12 + $0x80] sm:$0xff]  }
 0x32d   : > { %5103 = vmatpush3.bf16.msra.mxu1 %v2495_v53  ;;  %p5961_p13 = pnand %p5960_p3, %p7118_p12 }
 0x32e   : > { %3352 = vrot.lane.b32.xlu0 %v6729_v61, %s6053_s20  ;;  %3350 = vrot.lane.b32.xlu1 %v6731_v62, %s6053_s20  ;;  %v2559_v55 = vpop.permute.xlu0 %2558 }
 0x32f   : > { %v2560_v58 = vsel %vm558_vm11, %v2557_v56, %v2559_v55  ;;  %v6890_v55 = vld [vmem:[#allocation12 + $0x88] sm:$0xff]   ;;  %p5962_p1 = pneg %p5961_p13 }
 0x330   : > { %v2568_v63 = vsel %vm491_vm13, %v2560_v58, 0  ;;  %5105 = vmatmul.mubr.msk.bf16.vlgmr.msra.gmra.mrb[4].mxu1 %vm484_vm10, %v6768_v54  ;;  %5484 = vmatprep.subr.msk.bf16.mxu1 %vm491_vm13, %v2560_v58 }
 0x331   : > { %5109 = vmatpush3.bf16.msra.mxu1 %v2568_v63  ;;  %5110 = vmatprep.mubr.msk.bf16.mxu1 %vm484_vm10, %v6772_v57 }
 0x332   : > { %3951 = vrot.lane.b32.xlu0 %v4750_v32, %s6053_s20  ;;  %3949 = vrot.lane.b32.xlu1 %v4749_v34, %s6053_s20  ;;  %v2632_v0 = vpop.permute.xlu0 %2631  ;;  %s5963_s20 = sshll.u32 %s6060_s13, 4  ;;  %s5964_s20 = int_to_ptr.vmem [resolvable:$false] %s5963_s20 }
 0x333   : > { %v2633_v2 = vsel %vm632_vm14, %v2630_v1, %v2632_v0  ;;  %p5966_p4 = scmp.lt.s32.totalorder %s7024_s9, %s5964_s20 }
 0x334   : > { %5485 = vmatprep.subr.msk.bf16.mxu1 %vm491_vm13, %v2633_v2  ;;  %v2641_v16 = vsel %vm491_vm13, %v2633_v2, 0 }
 0x336   : > { %3413 = vrot.lane.b32.xlu0 %v6729_v61, %s6054_s17  ;;  %3411 = vrot.lane.b32.xlu1 %v6731_v62, %s6054_s17  ;;  %v2709_v4 = vpop.permute.xlu0 %2708  ;;  %v4738_v61 = vcombine.low %v3825_v31, %v3536_v8  ;;  %v2461_v31 = vld [vmem:[#allocation14 + $0x10] sm:$0x1f] }
 0x337   : > { %v2710_v62 = vsel %vm710_vm15, %v2707_v5, %v2709_v4 }
 0x338   : > { %v2718_v26 = vsel %vm491_vm13, %v2710_v62, 0 }
 0x33a   : > { %4012 = vrot.lane.b32.xlu0 %v4750_v32, %s6054_s17  ;;  %4010 = vrot.lane.b32.xlu1 %v4749_v34, %s6054_s17  ;;  %v6848_v32 = vld [vmem:[#allocation12 + $0x48] sm:$0xff]   ;;  %v6850_v34 = vld [vmem:[#allocation12 + $0x50] sm:$0xff]   ;;  %s5965_s17 = scalar_lea.vmem %s5964_s20, 768 }
 0x33b   : > { %p5967_p2 = scmp.lt.s32.totalorder %s5965_s17, %s5959_s8 }
 0x33c   : > { %5111 = vmatmul.mubr.msk.bf16.vlgmr.msra.gmra.mrb[4].mxu1 %vm484_vm10, %v6789_v6 }
 0x33d   : > { %v2875_v12 = vpop.permute.xlu0 %2874  ;;  %v2873_v13 = vpop.permute.xlu1 %2872  ;;  %5115 = vmatpush3.bf16.msra.mxu1 %v2641_v16  ;;  %5116 = vmatprep.mubr.msk.bf16.mxu1 %vm484_vm10, %v6793_v15  ;;  %p5968_p0 = por %p5967_p2, %p5966_p4 }
 0x33e   : > { %3547 = vrot.lane.b32.xlu0 %v4739_v14, %s6055_s12  ;;  %3545 = vrot.lane.b32.xlu1 %v4738_v61, %s6055_s12  ;;  %v2876_v29 = vsel %vm877_vm0, %v2873_v13, %v2875_v12 }
 0x33f   : > { %5486 = vmatprep.subr.msk.bf16.mxu1 %vm491_vm13, %v2710_v62  ;;  %v2884_v37 = vsel %vm491_vm13, %v2876_v29, 0  ;;  %p5969_p6 = pnand %p5968_p0, %p5962_p1 }
 0x341   : > { %v2952_v17 = vpop.permute.xlu0 %2951  ;;  %v2950_v10 = vpop.permute.xlu1 %2949 }
 0x342   : > { %3606 = vrot.lane.b32.xlu0 %v4738_v61, %s6056_s26  ;;  %4134 = vrot.lane.b32.xlu1 %v6804_v18, %s6055_s12  ;;  %v2953_v39 = vsel %vm955_vm1, %v2950_v10, %v2952_v17 }
 0x343   : > { %v2961_v42 = vsel %vm491_vm13, %v2953_v39, 0 }
 0x345   : > { %v3029_v22 = vpop.permute.xlu0 %3028  ;;  %v3027_v35 = vpop.permute.xlu1 %3026 }
 0x346   : > { %4192 = vrot.lane.b32.xlu0 %v6804_v18, %s6056_s26  ;;  %3608 = vrot.lane.b32.xlu1 %v4739_v14, %s6056_s26  ;;  %v3030_v7 = vsel %vm1033_vm2, %v3027_v35, %v3029_v22 }
 0x347   : > { %v3038_v47 = vsel %vm491_vm13, %v3030_v7, 0 }
 0x348   : > { %5117 = vmatmul.mubr.msk.bf16.vlgmr.msra.gmra.mrb[4].mxu1 %vm484_vm10, %v6809_v20 }
 0x349   : > { %v3106_v36 = vpop.permute.xlu0 %3105  ;;  %v3104_v45 = vpop.permute.xlu1 %3103  ;;  %5121 = vmatpush3.bf16.msra.mxu1 %v2718_v26  ;;  %5122 = vmatprep.mubr.msk.bf16.mxu1 %vm484_vm10, %v6814_v49 }
 0x34a   : > { %3669 = vrot.lane.b32.xlu0 %v4739_v14, %s6057_s29  ;;  %3667 = vrot.lane.b32.xlu1 %v4738_v61, %s6057_s29  ;;  %v3107_v48 = vsel %vm7116_vm6, %v3104_v45, %v3106_v36 }
 0x34b   : > { %5487 = vmatprep.subr.msk.bf16.mxu1 %vm491_vm13, %v5679_v59  ;;  %v3115_v53 = vsel %vm491_vm13, %v3107_v48, 0 }
 0x34d   : > { %v3239_v27 = vpop.permute.xlu0 %3238  ;;  %v3237_v60 = vpop.permute.xlu1 %3236 }
 0x34e   : > { %v3240_v9 = vsel %vm482_vm12, %v3237_v60, %v3239_v27  ;;  %3728 = vrot.lane.b32.xlu0 %v4738_v61, %s6058_s19  ;;  %4250 = vrot.lane.b32.xlu1 %v6804_v18, %s6057_s29 }
 0x34f   : > { %v3242_v38 = vsel %vm491_vm13, %v3240_v9, 0  ;;  %5492 = vmatprep.subr.msk.bf16.mxu0 %vm491_vm13, %v3240_v9 }
 0x350   : > { %5157 = vmatpush3.bf16.msra.mxu0 %v3242_v38 }
 0x352   : > { %4308 = vrot.lane.b32.xlu0 %v6804_v18, %s6058_s19  ;;  %3730 = vrot.lane.b32.xlu1 %v4739_v14, %s6058_s19 }
 0x353   : > { %5159 = vmatmul.mubr.msk.bf16.vlgmr.msra.gmra.mrb[8].mxu0 %vm484_vm10, %v6768_v54 }
 0x354   : > { %5164 = vmatprep.mubr.msk.bf16.mxu0 %vm484_vm10, %v6772_v57  ;;  %5123 = vmatmul.mubr.msk.bf16.vlgmr.msra.gmra.mrb[4].mxu1 %vm484_vm10, %v6830_v11 }
 0x355   : > { %5127 = vmatpush3.bf16.msra.mxu1 %v2797_v25  ;;  %5128 = vmatprep.mubr.msk.bf16.mxu1 %vm484_vm10, %v6839_v24 }
 0x356   : > { %3183 = vperm.xlu0 %5627, %v2460_v21   ;;  %3172 = vperm.xlu1 %5628, %v2459_v23  }
 0x357   : > { %5488 = vmatprep.subr.msk.bf16.mxu1 %vm491_vm13, %v2876_v29 }
 0x35a   : > { %3205 = vperm.xlu0 %5627, %v2462_v30   ;;  %3194 = vperm.xlu1 %5628, %v2461_v31  }
 0x360   : > { %5129 = vmatmul.mubr.msk.bf16.vlgmr.msra.gmra.mrb[4].mxu1 %vm484_vm10, %v6848_v32 }
 0x361   : > { %5133 = vmatpush3.bf16.msra.mxu1 %v2884_v37  ;;  %5134 = vmatprep.mubr.msk.bf16.mxu1 %vm484_vm10, %v6850_v34 }
 0x362   : > { %5489 = vmatprep.subr.msk.bf16.mxu1 %vm491_vm13, %v2953_v39 }
 0x36c   : > { %5135 = vmatmul.mubr.msk.bf16.vlgmr.msra.gmra.mrb[4].mxu1 %vm484_vm10, %v6859_v40 }
 0x36d   : > { %5139 = vmatpush3.bf16.msra.mxu1 %v2961_v42  ;;  %5140 = vmatprep.mubr.msk.bf16.mxu1 %vm484_vm10, %v6861_v41 }
 0x36e   : > { %5490 = vmatprep.subr.msk.bf16.mxu1 %vm491_vm13, %v3030_v7 }
 0x378   : > { %5141 = vmatmul.mubr.msk.bf16.vlgmr.msra.gmra.mrb[4].mxu1 %vm484_vm10, %v6870_v44 }
 0x379   : > { %5145 = vmatpush3.bf16.msra.mxu1 %v3038_v47  ;;  %5146 = vmatprep.mubr.msk.bf16.mxu1 %vm484_vm10, %v6872_v46 }
 0x37a   : > { %5491 = vmatprep.subr.msk.bf16.mxu1 %vm491_vm13, %v3107_v48 }
 0x384   : > { %5147 = vmatmul.mubr.msk.bf16.vlgmr.msra.gmra.mrb[4].mxu1 %vm484_vm10, %v6881_v50 }
 0x385   : > { %5151 = vmatpush3.bf16.msra.mxu1 %v3115_v53  ;;  %5152 = vmatprep.mubr.msk.bf16.mxu1 %vm484_vm10, %v6883_v52 }
 0x390   : > { %5153 = vmatmul.mubr.msk.bf16.vlgmr.msra.gmra.mrb[4].mxu1 %vm484_vm10, %v6890_v55 }
 0x391   : > { %5212 = vmatprep.mubr.msk.bf16.mxu1 %vm484_vm10, %v6684_v28 }
 0x394   : > { %v3838_v56 = vpop.permute.xlu0 %3837  ;;  %v3836_v58 = vpop.permute.xlu1 %3835 }
 0x395   : > { %v3839_v63 = vsel %vm482_vm12, %v3836_v58, %v3838_v56 }
 0x396   : > { %v3841_v0 = vsel %vm491_vm13, %v3839_v63, 0  ;;  %5501 = vmatprep.subr.msk.bf16.mxu1 %vm491_vm13, %v3839_v63 }
 0x397   : > { %5211 = vmatpush3.bf16.msra.mxu1 %v3841_v0 }
 0x398   : > { %v3296_v1 = vpop.permute.xlu0 %3295  ;;  %v3294_v2 = vpop.permute.xlu1 %3293 }
 0x399   : > { %v3297_v4 = vsel %vm558_vm11, %v3294_v2, %v3296_v1 }
 0x39a   : > { %v3299_v5 = vsel %vm491_vm13, %v3297_v4, 0  ;;  %5493 = vmatprep.subr.msk.bf16.mxu0 %vm491_vm13, %v3297_v4  ;;  %5213 = vmatmul.mubr.msk.bf16.vlgmr.msra.gmra.mrb[8].mxu1 %vm484_vm10, %v6768_v54 }
 0x39b   : > { %5163 = vmatpush3.bf16.msra.mxu0 %v3299_v5  ;;  %5218 = vmatprep.mubr.msk.bf16.mxu1 %vm484_vm10, %v6772_v57 }
 0x39c   : > { %v3895_v28 = vpop.permute.xlu0 %3894  ;;  %v3893_v8 = vpop.permute.xlu1 %3892 }
 0x39d   : > { %v3896_v12 = vsel %vm558_vm11, %v3893_v8, %v3895_v28  ;;  %vm7117_vm11 = vmmov %vm7116_vm6 }
 0x39e   : > { %v3898_v13 = vsel %vm491_vm13, %v3896_v12, 0  ;;  %5165 = vmatmul.mubr.msk.bf16.vlgmr.msra.gmra.mrb[8].mxu0 %vm484_vm10, %v6789_v6  ;;  %5502 = vmatprep.subr.msk.bf16.mxu1 %vm491_vm13, %v3896_v12 }
 0x39f   : > { %5217 = vmatpush3.bf16.msra.mxu1 %v3898_v13  ;;  %5170 = vmatprep.mubr.msk.bf16.mxu0 %vm484_vm10, %v6793_v15 }
 0x3a0   : > { %v3353_v54 = vpop.permute.xlu0 %3352  ;;  %v3351_v14 = vpop.permute.xlu1 %3350 }
 0x3a1   : > { %v3354_v16 = vsel %vm632_vm14, %v3351_v14, %v3353_v54 }
 0x3a2   : > { %v3356_v57 = vsel %vm491_vm13, %v3354_v16, 0  ;;  %5494 = vmatprep.subr.msk.bf16.mxu0 %vm491_vm13, %v3354_v16 }
 0x3a3   : > { %5169 = vmatpush3.bf16.msra.mxu0 %v3356_v57 }
 0x3a4   : > { %v3952_v61 = vpop.permute.xlu0 %3951  ;;  %v3950_v62 = vpop.permute.xlu1 %3949 }
 0x3a5   : > { %v3953_v17 = vsel %vm632_vm14, %v3950_v62, %v3952_v61 }
 0x3a6   : > { %5219 = vmatmul.mubr.msk.bf16.vlgmr.msra.gmra.mrb[8].mxu1 %vm484_vm10, %v6789_v6  ;;  %v3955_v10 = vsel %vm491_vm13, %v3953_v17, 0  ;;  %5503 = vmatprep.subr.msk.bf16.mxu1 %vm491_vm13, %v3953_v17  ;;  %v5692_v6 = vld [vmem:[#allocation3 + $0x8] ss:$20 sps:$4 sm:$0x1f]  }
 0x3a7   : > { %5224 = vmatprep.mubr.msk.bf16.mxu1 %vm484_vm10, %v6793_v15  ;;  %5223 = vmatpush3.bf16.msra.mxu1 %v3955_v10  ;;  %v3480_v38 = vsel %vm491_vm13, %v5692_v6, 0 }
 0x3a8   : > { %v3414_v22 = vpop.permute.xlu0 %3413  ;;  %v3412_v35 = vpop.permute.xlu1 %3411 }
 0x3a9   : > { %v3415_v36 = vsel %vm710_vm15, %v3412_v35, %v3414_v22  ;;  %v3210_v35 = vld [vmem:[#allocation5] sm:$0x1f] }
 0x3aa   : > { %5171 = vmatmul.mubr.msk.bf16.vlgmr.msra.gmra.mrb[8].mxu0 %vm484_vm10, %v6809_v20  ;;  %v3417_v45 = vsel %vm491_vm13, %v3415_v36, 0  ;;  %5495 = vmatprep.subr.msk.bf16.mxu0 %vm491_vm13, %v3415_v36 }
 0x3ab   : > { %5176 = vmatprep.mubr.msk.bf16.mxu0 %vm484_vm10, %v6814_v49  ;;  %5175 = vmatpush3.bf16.msra.mxu0 %v3417_v45 }
 0x3ac   : > { %v4013_v26 = vpop.permute.xlu0 %4012  ;;  %5496 = vmatprep.subr.msk.bf16.mxu0 %vm491_vm13, %v5692_v6  ;;  %v4011_v15 = vpop.permute.xlu1 %4010 }
 0x3ad   : > { %v4014_v59 = vsel %vm710_vm15, %v4011_v15, %v4013_v26 }
 0x3ae   : > { %5504 = vmatprep.subr.msk.bf16.mxu1 %vm491_vm13, %v4014_v59  ;;  %v4016_v27 = vsel %vm491_vm13, %v4014_v59, 0 }
 0x3b0   : > { %v3548_v60 = vpop.permute.xlu0 %3547  ;;  %v3546_v9 = vpop.permute.xlu1 %3545 }
 0x3b1   : > { %v3549_v21 = vsel %vm877_vm0, %v3546_v9, %v3548_v60  ;;  %v4724_v60 = vld [vmem:[#allocation15] ss:$0 sm:$0xff] }
 0x3b2   : > { %5225 = vmatmul.mubr.msk.bf16.vlgmr.msra.gmra.mrb[8].mxu1 %vm484_vm10, %v6809_v20  ;;  %v3551_v29 = vsel %vm491_vm13, %v3549_v21, 0 }
 0x3b3   : > { %5229 = vmatpush3.bf16.msra.mxu1 %v4016_v27  ;;  %5230 = vmatprep.mubr.msk.bf16.mxu1 %vm484_vm10, %v6814_v49  ;;  %v4079_v49 = vsel %vm491_vm13, %v6804_v18, 0 }
 0x3b4   : > { %5505 = vmatprep.subr.msk.bf16.mxu1 %vm491_vm13, %v6804_v18  ;;  %v4135_v20 = vpop.permute.xlu1 %4134  ;;  %v3607_v23 = vpop.permute.xlu0 %3606 }
 0x3b6   : > { %5177 = vmatmul.mubr.msk.bf16.vlgmr.msra.gmra.mrb[8].mxu0 %vm484_vm10, %v6830_v11 }
 0x3b7   : > { %5181 = vmatpush3.bf16.msra.mxu0 %v3480_v38  ;;  %5182 = vmatprep.mubr.msk.bf16.mxu0 %vm484_vm10, %v6839_v24 }
 0x3b8   : > { %5497 = vmatprep.subr.msk.bf16.mxu0 %vm491_vm13, %v3549_v21  ;;  %v3609_v25 = vpop.permute.xlu1 %3608  ;;  %v4193_v18 = vpop.permute.xlu0 %4192 }
 0x3b9   : > { %v3610_v30 = vsel %vm955_vm1, %v3607_v23, %v3609_v25 }
 0x3ba   : > { %v3612_v37 = vsel %vm491_vm13, %v3610_v30, 0 }
 0x3bc   : > { %v3668_v31 = vpop.permute.xlu1 %3667 }
 0x3be   : > { %5231 = vmatmul.mubr.msk.bf16.vlgmr.msra.gmra.mrb[8].mxu1 %vm484_vm10, %v6830_v11  ;;  %v4137_v11 = vsel %vm491_vm13, %v4135_v20, 0 }
 0x3bf   : > { %5235 = vmatpush3.bf16.msra.mxu1 %v4079_v49  ;;  %5236 = vmatprep.mubr.msk.bf16.mxu1 %vm484_vm10, %v6839_v24  ;;  %v3670_v24 = vpop.permute.xlu0 %3669 }
 0x3c0   : > { %5506 = vmatprep.subr.msk.bf16.mxu1 %vm491_vm13, %v4135_v20  ;;  %v3671_v39 = vsel %vm1033_vm2, %v3668_v31, %v3670_v24 }
 0x3c1   : > { %v3673_v7 = vsel %vm491_vm13, %v3671_v39, 0 }
 0x3c2   : > { %5183 = vmatmul.mubr.msk.bf16.vlgmr.msra.gmra.mrb[8].mxu0 %vm484_vm10, %v6848_v32 }
 0x3c3   : > { %5187 = vmatpush3.bf16.msra.mxu0 %v3551_v29  ;;  %5188 = vmatprep.mubr.msk.bf16.mxu0 %vm484_vm10, %v6850_v34  ;;  %v3729_v47 = vpop.permute.xlu0 %3728 }
 0x3c4   : > { %5498 = vmatprep.subr.msk.bf16.mxu0 %vm491_vm13, %v3610_v30 }
 0x3ca   : > { %5237 = vmatmul.mubr.msk.bf16.vlgmr.msra.gmra.mrb[8].mxu1 %vm484_vm10, %v6848_v32  ;;  %v4251_v32 = vpop.permute.xlu1 %4250 }
 0x3cb   : > { %5241 = vmatpush3.bf16.msra.mxu1 %v4137_v11  ;;  %5242 = vmatprep.mubr.msk.bf16.mxu1 %vm484_vm10, %v6850_v34  ;;  %v4195_v34 = vsel %vm491_vm13, %v4193_v18, 0 }
 0x3cc   : > { %5507 = vmatprep.subr.msk.bf16.mxu1 %vm491_vm13, %v4193_v18 }
 0x3ce   : > { %5189 = vmatmul.mubr.msk.bf16.vlgmr.msra.gmra.mrb[8].mxu0 %vm484_vm10, %v6859_v40  ;;  %v3731_v42 = vpop.permute.xlu1 %3730 }
 0x3cf   : > { %5193 = vmatpush3.bf16.msra.mxu0 %v3612_v37  ;;  %5194 = vmatprep.mubr.msk.bf16.mxu0 %vm484_vm10, %v6861_v41  ;;  %v3732_v48 = vsel %vm7117_vm11, %v3729_v47, %v3731_v42 }
 0x3d0   : > { %5499 = vmatprep.subr.msk.bf16.mxu0 %vm491_vm13, %v3671_v39  ;;  %v3734_v53 = vsel %vm491_vm13, %v3732_v48, 0 }
 0x3d6   : > { %5243 = vmatmul.mubr.msk.bf16.vlgmr.msra.gmra.mrb[8].mxu1 %vm484_vm10, %v6859_v40  ;;  %v4253_v40 = vsel %vm491_vm13, %v4251_v32, 0 }
 0x3d7   : > { %5247 = vmatpush3.bf16.msra.mxu1 %v4195_v34  ;;  %5248 = vmatprep.mubr.msk.bf16.mxu1 %vm484_vm10, %v6861_v41  ;;  %v4309_v41 = vpop.permute.xlu0 %4308 }
 0x3d8   : > { %5508 = vmatprep.subr.msk.bf16.mxu1 %vm491_vm13, %v4251_v32  ;;  %v4311_v56 = vsel %vm491_vm13, %v4309_v41, 0 }
 0x3da   : > { %5195 = vmatmul.mubr.msk.bf16.vlgmr.msra.gmra.mrb[8].mxu0 %vm484_vm10, %v6870_v44 }
 0x3db   : > { %5199 = vmatpush3.bf16.msra.mxu0 %v3673_v7  ;;  %5200 = vmatprep.mubr.msk.bf16.mxu0 %vm484_vm10, %v6872_v46  ;;  %v3184_v1 = vpop.permute.xlu0 %3183 }
 0x3dc   : > { %5500 = vmatprep.subr.msk.bf16.mxu0 %vm491_vm13, %v3732_v48 }
 0x3df   : > { %v7007_v54 = vpop.permute.xlu0 %3205 }
 0x3e2   : > { %5249 = vmatmul.mubr.msk.bf16.vlgmr.msra.gmra.mrb[8].mxu1 %vm484_vm10, %v6870_v44 }
 0x3e3   : > { %5253 = vmatpush3.bf16.msra.mxu1 %v4253_v40  ;;  %5254 = vmatprep.mubr.msk.bf16.mxu1 %vm484_vm10, %v6872_v46  ;;  %v3173_v46 = vpop.permute.xlu1 %3172 }
 0x3e4   : > { %5509 = vmatprep.subr.msk.bf16.mxu1 %vm491_vm13, %v4309_v41 }
 0x3e6   : > { %5201 = vmatmul.mubr.msk.bf16.vlgmr.msra.gmra.mrb[8].mxu0 %vm484_vm10, %v6881_v50 }
 0x3e7   : > { %5205 = vmatpush3.bf16.msra.mxu0 %v3734_v53  ;;  %5206 = vmatprep.mubr.msk.bf16.mxu0 %vm484_vm10, %v6883_v52  ;;  %v3195_v8 = vpop.permute.xlu1 %3194 }
 0x3ee   : > { %5255 = vmatmul.mubr.msk.bf16.vlgmr.msra.gmra.mrb[8].mxu1 %vm484_vm10, %v6881_v50 }
 0x3ef   : > { %5259 = vmatpush3.bf16.msra.mxu1 %v4311_v56  ;;  %5260 = vmatprep.mubr.msk.bf16.mxu1 %vm484_vm10, %v6883_v52 }
 0x3f2   : > { %5207 = vmatmul.mubr.msk.bf16.vlgmr.msra.gmra.mrb[8].mxu0 %vm484_vm10, %v6890_v55 }
 0x3fa   : > { %5261 = vmatmul.mubr.msk.bf16.vlgmr.msra.gmra.mrb[8].mxu1 %vm484_vm10, %v6890_v55 }
 0x463   : > { %v5154_v44 = vpop.f32.mrb[4].mxu1 }
 0x464   : > { %v3151_v58 = vpop.f32.mrb[5].mxu1  ;;  %v3197_v12 = vadd.f32 %v5154_v44, %v3195_v8 }
 0x465   : > { %v3175_v63 = vadd.f32 %v3173_v46, %v3151_v58  ;;  %v5155_v0 = vpop.f32.mrb[6].mxu1 }
 0x466   : > { %v3154_v2 = vpop.f32.mrb[7].mxu1  ;;  %v3198_v13 = vsub.f32 0.0, %v3197_v12  ;;  %v3208_v55 = vadd.f32 %v5155_v0, %v7007_v54 }
 0x467   : > { %v3176_v4 = vsub.f32 0.0, %v3175_v63  ;;  %v3186_v5 = vadd.f32 %v3184_v1, %v3154_v2 }
 0x468   : > { %v3199_v14 = vmul.f32 1.442695, %v3198_v13 }
 0x469   : > { %v3177_v50 = vmul.f32 1.442695, %v3176_v4  ;;  %v3187_v28 = vsub.f32 0.0, %v3186_v5 }
 0x46b   : > { %5741 = vpow2.f32 %v3177_v50  ;;  %v3188_v52 = vmul.f32 1.442695, %v3187_v28 }
 0x46d   : > { %5743 = vpow2.f32 %v3188_v52 }
 0x46e   : > { %5745 = vtanh.f32 %v3208_v55 }
 0x46f   : > { %5747 = vpow2.f32 %v3199_v14  ;;  %v3809_v14 = vld [vmem:[#allocation5 + $0x8] sm:$0x1f] }
 0x475   : > { %v5742_v16 = vpop.eup %5741 }
 0x476   : > { %v3179_v57 = vadd.f32 1.0, %v5742_v16 }
 0x477   : > { %v5744_v61 = vpop.eup %5743 }
 0x478   : > { %5749 = vrcp.f32 %v3179_v57  ;;  %v3190_v62 = vadd.f32 1.0, %v5744_v61  ;;  %v5746_v17 = vpop.eup %5745 }
 0x479   : > { %v5748_v10 = vpop.eup %5747 }
 0x47a   : > { %5751 = vrcp.f32 %v3190_v62  ;;  %v3201_v6 = vadd.f32 1.0, %v5748_v10 }
 0x47c   : > { %5753 = vrcp.f32 %v3201_v6 }
 0x482   : > { %v5750_v22 = vpop.eup %5749 }
 0x483   : > { %v3212_v36 = vmul.f32 %v5750_v22, %v5746_v17 }
 0x484   : > { %v5752_v45 = vpop.eup %5751 }
 0x485   : > { %v3211_v26 = vmul.f32 %v5752_v45, %v3210_v35  ;;  %v4386_v35 = vld [vmem:[#allocation5 + $0x10] sm:$0x1f] }
 0x486   : > { %v5754_v59 = vpop.eup %5753 }
 0x487   : > { %v3213_v15 = vadd.f32 %v3212_v36, %v3211_v26 }
 0x489   : > { %3214 = vst [vmem:[#allocation5] sm:$0x1f] %v3213_v15  ;;  %5755 = vtanh.f32 %v3213_v15 }
 0x493   : > { %v5756_v27 = vpop.eup %5755 }
 0x494   : > { %v3216_v9 = vmul.f32 %v5756_v27, %v5754_v59 }
 0x496   : > { %v3224_v38 = vmul.f32 %v4724_v60, %v3216_v9 }
 0x498   : > { %3225 = vst [vmem:[%s6347_s16] sm:$0x1f] %v3224_v38 }
 0x4c5   : > { %v5208_v21 = vpop.f32.mrb[8].mxu0 }
 0x4c6   : > { %v3770_v20 = vpop.f32.mrb[9].mxu0  ;;  %v3801_v24 = vadd.f32 %v5208_v21, %v3195_v8 }
 0x4c7   : > { %v3789_v49 = vadd.f32 %v3770_v20, %v3173_v46  ;;  %v5209_v23 = vpop.f32.mrb[10].mxu0 }
 0x4c8   : > { %v3773_v25 = vpop.f32.mrb[11].mxu0  ;;  %v3802_v7 = vsub.f32 0.0, %v3801_v24  ;;  %v3807_v53 = vadd.f32 %v5209_v23, %v7007_v54 }
 0x4c9   : > { %v3790_v29 = vsub.f32 0.0, %v3789_v49  ;;  %v3795_v30 = vadd.f32 %v3773_v25, %v3184_v1 }
 0x4ca   : > { %v3803_v56 = vmul.f32 1.442695, %v3802_v7 }
 0x4cb   : > { %v3791_v18 = vmul.f32 1.442695, %v3790_v29  ;;  %v3796_v11 = vsub.f32 0.0, %v3795_v30 }
 0x4cd   : > { %5757 = vpow2.f32 %v3791_v18  ;;  %v3797_v31 = vmul.f32 1.442695, %v3796_v11  ;;  %v5262_v37 = vpop.f32.mrb[8].mxu1 }
 0x4ce   : > { %v4347_v39 = vpop.f32.mrb[9].mxu1  ;;  %v4378_v44 = vadd.f32 %v5262_v37, %v3195_v8 }
 0x4cf   : > { %5759 = vpow2.f32 %v3797_v31  ;;  %v4366_v32 = vadd.f32 %v4347_v39, %v3173_v46  ;;  %v5263_v34 = vpop.f32.mrb[10].mxu1 }
 0x4d0   : > { %v4350_v42 = vpop.f32.mrb[11].mxu1  ;;  %v4379_v46 = vsub.f32 0.0, %v4378_v44 }
 0x4d1   : > { %v4367_v47 = vsub.f32 0.0, %v4366_v32  ;;  %v4372_v48 = vadd.f32 %v4350_v42, %v3184_v1  ;;  %v4384_v1 = vadd.f32 %v5263_v34, %v7007_v54 }
 0x4d2   : > { %v4380_v5 = vmul.f32 1.442695, %v4379_v46 }
 0x4d3   : > { %v4368_v40 = vmul.f32 1.442695, %v4367_v47  ;;  %v4373_v41 = vsub.f32 0.0, %v4372_v48 }
 0x4d5   : > { %5761 = vpow2.f32 %v4368_v40  ;;  %v4374_v58 = vmul.f32 1.442695, %v4373_v41 }
 0x4d7   : > { %v5758_v63 = vpop.eup %5757  ;;  %5763 = vpow2.f32 %v4374_v58 }
 0x4d8   : > { %v3793_v0 = vadd.f32 1.0, %v5758_v63  ;;  %5765 = vtanh.f32 %v3807_v53 }
 0x4d9   : > { %v5760_v2 = vpop.eup %5759  ;;  %5767 = vpow2.f32 %v3803_v56 }
 0x4da   : > { %5769 = vrcp.f32 %v3793_v0  ;;  %v3799_v4 = vadd.f32 1.0, %v5760_v2 }
 0x4dc   : > { %5771 = vrcp.f32 %v3799_v4 }
 0x4dd   : > { %5773 = vtanh.f32 %v4384_v1 }
 0x4de   : > { %5775 = vpow2.f32 %v4380_v5 }
 0x4df   : > { %v5762_v50 = vpop.eup %5761 }
 0x4e0   : > { %v4370_v28 = vadd.f32 1.0, %v5762_v50 }
 0x4e1   : > { %v5764_v12 = vpop.eup %5763 }
 0x4e2   : > { %v5766_v8 = vpop.eup %5765  ;;  %5777 = vrcp.f32 %v4370_v28  ;;  %v4376_v52 = vadd.f32 1.0, %v5764_v12 }
 0x4e3   : > { %v5768_v13 = vpop.eup %5767 }
 0x4e4   : > { %v5770_v55 = vpop.eup %5769  ;;  %5779 = vrcp.f32 %v4376_v52  ;;  %v3805_v61 = vadd.f32 1.0, %v5768_v13 }
 0x4e5   : > { %v3811_v16 = vmul.f32 %v5770_v55, %v5766_v8 }
 0x4e6   : > { %v5772_v57 = vpop.eup %5771  ;;  %5781 = vrcp.f32 %v3805_v61 }
 0x4e7   : > { %v3810_v62 = vmul.f32 %v5772_v57, %v3809_v14  ;;  %v5774_v10 = vpop.eup %5773 }
 0x4e8   : > { %v5776_v54 = vpop.eup %5775 }
 0x4e9   : > { %v3812_v17 = vadd.f32 %v3811_v16, %v3810_v62  ;;  %v4382_v6 = vadd.f32 1.0, %v5776_v54 }
 0x4eb   : > { %3813 = vst [vmem:[#allocation5 + $0x8] sm:$0x1f] %v3812_v17  ;;  %5783 = vtanh.f32 %v3812_v17 }
 0x4ec   : > { %v5778_v22 = vpop.eup %5777  ;;  %5785 = vrcp.f32 %v4382_v6 }
 0x4ed   : > { %v4388_v36 = vmul.f32 %v5778_v22, %v5774_v10 }
 0x4ee   : > { %v5780_v45 = vpop.eup %5779 }
 0x4ef   : > { %v4387_v26 = vmul.f32 %v5780_v45, %v4386_v35 }
 0x4f0   : > { %v5782_v59 = vpop.eup %5781 }
 0x4f1   : > { %v4389_v15 = vadd.f32 %v4388_v36, %v4387_v26 }
 0x4f3   : > { %4390 = vst.msk [vmem:[#allocation5 + $0x10] sm:$0x1f] %vm2401_vm7, %v4389_v15  ;;  %5787 = vtanh.f32 %v4389_v15 }
 0x4f5   : > { %v5784_v27 = vpop.eup %5783 }
 0x4f6   : > { %v3815_v60 = vmul.f32 %v5784_v27, %v5782_v59  ;;  %v5786_v38 = vpop.eup %5785 }
 0x4f8   : > { %v3823_v9 = vmul.f32 %v6690_v33, %v3815_v60  ;;  %v4402_v33 = vld [vmem:[%s6347_s16] sm:$0x1f] }
 0x4fa   : > { %3824 = vst [vmem:[%s6347_s16 + $0x8] sm:$0x1f] %v3823_v9 }
 0x4fd   : > { %v5788_v21 = vpop.eup %5787 }
 0x4fe   : > { %v4392_v20 = vmul.f32 %v5788_v21, %v5786_v38 }
 0x500   : > { %v4400_v49 = vmul.f32 %v6742_v19, %v4392_v20 }
 0x501   : > { %v4403_v23 = vld [vmem:[%s6347_s16 + $0x8] sm:$0x1f] }
 0x502   : > { %4401 = vst.msk [vmem:[%s6347_s16 + $0x10] sm:$0x1f] %vm2401_vm7, %v4400_v49  ;;  %v4776_v25 = vpack.c.bf16 %v4403_v23, %v4402_v33 }
 0x503   : > { %5972 = shalt.err (!%p5969_p6)
}
 0x504   : > { %s5973_s15 = scalar_lea.hbm %s7022_s28, 384  ;;  %s5977_s29 = scalar_lea.hbm %s7084_s6, 1536 }
 0x505   : > { %p5974_p10 = scmp.ne.s32.totalorder %s7022_s28, %s5973_s15  ;;  %p5978_p5 = scmp.lt.u32.totalorder %s7022_s28, %s7084_s6 }
 0x506   : > { %p5979_p9 = scmp.lt.u32.totalorder %s5977_s29, %s5973_s15  ;;  %p5981_p3 = scmp.lt.u32.totalorder %s5973_s15, %s7022_s28 }
 0x507   : > { %p5975_p11 = pnand %p5974_p10, %p7118_p12 }
 0x508   : > { %p5980_p7 = por %p5979_p9, %p5978_p5 }
 0x509   : > { %p5976_p8 = pneg %p5975_p11 }
 0x50a   : > { %p5982_p13 = por %p5981_p3, %p5980_p7 }
 0x50c   : > { %p5983_p1 = pnand %p5982_p13, %p5976_p8 }
 0x50e   : > { %5986 = shalt.err (!%p5983_p1)
}
 0x50f   : > { %5537 = dma.vmem_to_hbm [thread:$0]  (%p7118_p12), %s7024_s9, 384, %s7022_s28, %s4447_s27   ;;  %v4417_v19 = vshrl.u32 %v4776_v25, 16  ;;  %v4420_v29 = vshll.u32 %v4776_v25, 16  ;;  %v4404_v24 = vld [vmem:[%s6347_s16 + $0x10] sm:$0x1f]  ;;  %vm7119_vm10 = vmor %vm6708_vm3, %vm6704_vm4 }
 0x510   : > { %v4438_v31 = vld [vmem:[#allocation3 + $0x4] sm:$0xcc]  ;;  %v4777_v37 = vpack.c.bf16 %v4404_v24, %v4404_v24  ;;  %v4441_v40 = vld [vmem:[#allocation3 + $0xc] sm:$0xc] }
 0x511   : > { %v4419_v30 = vrot.slane %v4417_v19, 5  ;;  %v4422_v18 = vrot.slane %v4420_v29, 6 }
 0x512   : > { %v4425_v34 = vshrl.u32 %v4777_v37, 16  ;;  %v4428_v42 = vshll.u32 %v4777_v37, 16 }
 0x513   : > { %v4423_v11 = vor.u32 %v4422_v18, %v4419_v30 }
 0x514   : > { %v4427_v7 = vrot.slane %v4425_v34, 5  ;;  %v4430_v47 = vrot.slane %v4428_v42, 6 }
 0x515   : > { %v4432_v39 = vrot.slane %v4423_v11, 4  ;;  %v4439_v32 = vsel %vm7119_vm10, %v4423_v11, %v4438_v31 }
 0x516   : > { %4440 = vst [vmem:[#allocation3 + $0x4] sm:$0xcc] %v4439_v32  ;;  %v4431_v48 = vor.u32 %v4430_v47, %v4427_v7 }
 0x517   : > { %4444 = vst [vmem:[#allocation3 + $0x18] sm:$0x11] %v4432_v39 }
 0x518   : > { %v4433_v41 = vrot.slane %v4431_v48, 4  ;;  %v4442_v53 = vsel %vm6750_vm5, %v4431_v48, %v4441_v40 }
 0x519   : > { %4443 = vst [vmem:[#allocation3 + $0xc] sm:$0xc] %v4442_v53 }
 0x51a   : > { %4445 = vst.msk [vmem:[#allocation3 + $0x20] sm:$0x1] %vm2457_vm9, %v4433_v41 }
 0x51b PF: > { %p5574_p12 = scmp.ge.s32.totalorder %s6037_s24, 2  ;;  %s4473_s25 = sand.u32 1, %s6025_s21  }
 0x51c   : > { %p7120_p4 = scmp.ne.s32.totalorder %s7096_s18, 0  ;;  %s4474_s16 = scalar_lea.sflag [#allocation8], %s4473_s25 }
 0x51e   : > { %p5560_p2 = pnand %p5574_p12, %p7120_p4 }
 0x520   : > { %6020 = dma.done.wait (!%p5560_p2), %s4474_s16, 384  }
 0x521   : > { %6022 = vsyncadd (!%p5560_p2), %s4474_s16, 4294966912  ;;  %p22_p0 = scmp.ge.s32.totalorder %s6254_s7, 6   ;;  %s7121_s21 = smov %s6029_s22 }
 0x522   : > { %s7122_s22 = smov %s6033_s23  ;;  %s7123_s23 = smov %s6266_s14 }
 0x523   : > { %s7124_s24 = smov %s6254_s7  ;;  %24 = sbr.rel (!%p22_p0) target bundleno = 8 (0x8), region = 113 }
 0x52a   :  { %4479 = vsyncpa [#allocation7], 1 }
 0x52b   :  { %4481 = vsyncpa [#allocation7 + $0x1], 1 }
 0x52c   :  { %4482 = vsyncpa [#allocation10], 1 }
 0x52d   :  { %4483 = vsyncpa [#allocation13], 1 }
 0x52e   :  { %4484 = vsyncpa [#allocation16], 1 }
 0x52f   :  { %4485 = vsyncpa [#allocation8], 1 }
 0x530   :  { %4487 = vsyncpa [#allocation8 + $0x1], 1 }

</bundles_post_ra>
